<compile_context>
chip_gen: v7x
topology: tpu7x:2x2x1
jax: 0.10.0
libtpu: 0.0.40
codegen_flags: <defaults>
</compile_context>

<pallas_src>
import functools
import math

import jax
import jax.numpy as jnp
from jax.experimental import pallas as pl
from jax.experimental.pallas import tpu as pltpu


# -----------------------------------------------------------------------------
# Shared math helpers (usable both inside Pallas kernels and in the JAX reference)
# -----------------------------------------------------------------------------
def _gelu(x):
    c = 0.7978845608028654  # sqrt(2/pi)
    return 0.5 * x * (1.0 + jnp.tanh(c * (x + 0.044715 * x * x * x)))


def _sigmoid(x):
    return 1.0 / (1.0 + jnp.exp(-x))


def _apply_act(x, act):
    if act == "gelu":
        return _gelu(x)
    if act == "sigmoid":
        return _sigmoid(x)
    return x


def _round_up(a, m):
    return (a + m - 1) // m * m


# -----------------------------------------------------------------------------
# Pallas kernel 1: tiled matmul + bias + activation
# (used for im2col convs, every 1x1 conv, pool-branch MLP and the final Linear)
# -----------------------------------------------------------------------------
def _matmul_bias_act_kernel(x_ref, w_ref, b_ref, o_ref, *, act):
    acc = jnp.dot(x_ref[...].astype(jnp.bfloat16), w_ref[...],
                  preferred_element_type=jnp.float32)
    acc = acc + b_ref[...]
    o_ref[...] = _apply_act(acc, act).astype(o_ref.dtype)


def pallas_linear(x, w, b, act="none", tm=256):
    """x:(M,K) f32, w:(K,N) bf16, b:(N,) f32 -> (M,N) f32 (activation in f32)."""
    M, K = x.shape
    Kw, N = w.shape
    assert K == Kw
    Kp = _round_up(K, 128)                 # lane-aligned contraction dim
    Np = _round_up(N, 128)                 # lane-dense output
    TM = tm if M >= tm else _round_up(max(M, 8), 8)
    Mp = _round_up(M, TM)

    xp = jnp.pad(x, ((0, Mp - M), (0, Kp - K)))
    wp = jnp.pad(w, ((0, Kp - K), (0, Np - N)))
    bp = jnp.pad(b.reshape(1, -1), ((0, 0), (0, Np - N)))

    cost = pl.CostEstimate(
        flops=2 * Mp * Kp * Np,
        transcendentals=Mp * Np if act in ("gelu", "sigmoid") else 0,
        bytes_accessed=xp.size * 4 + wp.size * 2 + bp.size * 4 + Mp * Np * 4,
    )
    out = pl.pallas_call(
        functools.partial(_matmul_bias_act_kernel, act=act),
        out_shape=jax.ShapeDtypeStruct((Mp, Np), jnp.float32),
        grid_spec=pltpu.PrefetchScalarGridSpec(
            num_scalar_prefetch=0,
            grid=(Mp // TM,),
            in_specs=[
                pl.BlockSpec((TM, Kp), lambda i: (i, 0)),
                pl.BlockSpec((Kp, Np), lambda i: (0, 0)),  # weights stay resident in VMEM
                pl.BlockSpec((1, Np), lambda i: (0, 0)),
            ],
            out_specs=pl.BlockSpec((TM, Np), lambda i: (i, 0)),
        ),
        compiler_params=pltpu.CompilerParams(dimension_semantics=("parallel",)),
        cost_estimate=cost,
    )(xp, wp, bp)
    return out[:M, :N]


def linear(x, w, b, act="none", use_pallas=True, tm=256):
    if use_pallas:
        return pallas_linear(x, w, b, act=act, tm=tm)
    acc = jnp.dot(x.astype(jnp.bfloat16), w, preferred_element_type=jnp.float32) + b
    return _apply_act(acc, act)


# -----------------------------------------------------------------------------
# Pallas kernel 2: depthwise 3x3 conv (stride 1, 'same'), BN folded, GELU fused
# -----------------------------------------------------------------------------
def _dwconv3x3_kernel(x_ref, w_ref, b_ref, o_ref):
    x = x_ref[0]                                   # (H+2, W+2, C) f32
    w = w_ref[...]                                 # (9, C) f32
    H, W = o_ref.shape[1], o_ref.shape[2]
    acc = jnp.zeros((H, W, x.shape[-1]), jnp.float32)
    for di in range(3):
        for dj in range(3):
            acc = acc + x[di:di + H, dj:dj + W, :] * w[di * 3 + dj]
    acc = acc + b_ref[...]
    o_ref[0] = _gelu(acc).astype(o_ref.dtype)


def dwconv3x3_bn_gelu(x, w, b, use_pallas=True):
    B, H, W, C = x.shape
    xp = jnp.pad(x, ((0, 0), (1, 1), (1, 1), (0, 0)))
    if not use_pallas:
        acc = jnp.zeros((B, H, W, C), jnp.float32)
        for di in range(3):
            for dj in range(3):
                acc = acc + xp[:, di:di + H, dj:dj + W, :] * w[di * 3 + dj]
        return _gelu(acc + b)
    return pl.pallas_call(
        _dwconv3x3_kernel,
        out_shape=jax.ShapeDtypeStruct((B, H, W, C), jnp.float32),
        grid_spec=pltpu.PrefetchScalarGridSpec(
            num_scalar_prefetch=0,
            grid=(B,),
            in_specs=[
                pl.BlockSpec((1, H + 2, W + 2, C), lambda i: (i, 0, 0, 0)),
                pl.BlockSpec((9, C), lambda i: (0, 0)),
                pl.BlockSpec((1, C), lambda i: (0, 0)),
            ],
            out_specs=pl.BlockSpec((1, H, W, C), lambda i: (i, 0, 0, 0)),
        ),
        compiler_params=pltpu.CompilerParams(dimension_semantics=("parallel",)),
    )(xp, w, b.reshape(1, C))


# -----------------------------------------------------------------------------
# Pallas kernel 3: EfficientAttention core (scaled dot-product + softmax per batch)
# -----------------------------------------------------------------------------
def _attention_kernel(q_ref, k_ref, v_ref, o_ref, *, scale):
    q = q_ref[0]                                   # (heads, L, D)
    k = k_ref[0]
    v = v_ref[0]
    dots = jnp.einsum("hid,hjd->hij", q, k, preferred_element_type=jnp.float32) * scale
    dots = dots - jnp.max(dots, axis=-1, keepdims=True)
    p = jnp.exp(dots)
    attn = p / jnp.sum(p, axis=-1, keepdims=True)
    out = jnp.einsum("hij,hjd->hid", attn, v, preferred_element_type=jnp.float32)
    o_ref[0] = out.astype(o_ref.dtype)


def attention_core(q, k, v, scale, use_pallas=True):
    """q, k, v: (B, heads, L, D) f32 -> (B, heads, L, D) f32."""
    if not use_pallas:
        dots = jnp.einsum("bhid,bhjd->bhij", q, k,
                          preferred_element_type=jnp.float32) * scale
        dots = dots - jnp.max(dots, axis=-1, keepdims=True)
        p = jnp.exp(dots)
        attn = p / jnp.sum(p, axis=-1, keepdims=True)
        return jnp.einsum("bhij,bhjd->bhid", attn, v,
                          preferred_element_type=jnp.float32)
    B, Hh, L, D = q.shape
    blk = pl.BlockSpec((1, Hh, L, D), lambda i: (i, 0, 0, 0))
    return pl.pallas_call(
        functools.partial(_attention_kernel, scale=scale),
        out_shape=jax.ShapeDtypeStruct((B, Hh, L, D), jnp.float32),
        grid_spec=pltpu.PrefetchScalarGridSpec(
            num_scalar_prefetch=0,
            grid=(B,),
            in_specs=[blk, blk, blk],
            out_specs=blk,
        ),
        compiler_params=pltpu.CompilerParams(dimension_semantics=("parallel",)),
    )(q, k, v)


# -----------------------------------------------------------------------------
# Module glue (shared by the Pallas path and the pure-JAX reference path)
# -----------------------------------------------------------------------------
def conv1x1(x, w, b, act="none", use_pallas=True):
    B, H, W, C = x.shape
    y = linear(x.reshape(B * H * W, C), w, b, act=act, use_pallas=use_pallas)
    return y.reshape(B, H, W, -1)


def conv2d_im2col(x, w, b, ksize, stride, pad, act="none", use_pallas=True):
    B, H, W, C = x.shape
    Ho = (H + 2 * pad - ksize) // stride + 1
    Wo = (W + 2 * pad - ksize) // stride + 1
    xp = jnp.pad(x, ((0, 0), (pad, pad), (pad, pad), (0, 0)))
    cols = []
    for di in range(ksize):
        for dj in range(ksize):
            cols.append(xp[:, di:di + stride * Ho:stride, dj:dj + stride * Wo:stride, :])
    patches = jnp.concatenate(cols, axis=-1)                 # (B, Ho, Wo, k*k*C)
    y = linear(patches.reshape(B * Ho * Wo, ksize * ksize * C), w, b,
               act=act, use_pallas=use_pallas)
    return y.reshape(B, Ho, Wo, -1)


def efficient_attention(x, p, use_pallas=True, heads=4, dim_head=64):
    B, H, W, C = x.shape
    L = H * W
    inner = heads * dim_head
    qkv = conv1x1(x, p["qkv_w"], p["qkv_b"], act="none", use_pallas=use_pallas)
    qkv = qkv.reshape(B, L, 3 * inner)

    def split(i):
        t = qkv[:, :, i * inner:(i + 1) * inner].reshape(B, L, heads, dim_head)
        return jnp.transpose(t, (0, 2, 1, 3))                # (B, heads, L, dim_head)

    q, k, v = split(0), split(1), split(2)
    out = attention_core(q, k, v, scale=dim_head ** (-0.5), use_pallas=use_pallas)
    out = jnp.transpose(out, (0, 2, 1, 3)).reshape(B, H, W, inner)
    return conv1x1(out, p["out_w"], p["out_b"], act="none", use_pallas=use_pallas)


def illumination_block(x, p, use_pallas=True):
    # NOTE: the PyTorch block also defines self.norm (LayerNorm) but never uses it.
    residual = x
    h = conv1x1(x, p["c1_w"], p["c1_b"], act="none", use_pallas=use_pallas)
    h = dwconv3x3_bn_gelu(h, p["dw_w"], p["dw_b"], use_pallas=use_pallas)
    h = efficient_attention(h, p, use_pallas=use_pallas)
    h = conv1x1(h, p["c3_w"], p["c3_b"], act="none", use_pallas=use_pallas)
    pooled = jnp.mean(residual, axis=(1, 2))                 # AdaptiveAvgPool2d(1)
    g = linear(pooled, p["pb1_w"], p["pb1_b"], act="gelu", use_pallas=use_pallas)
    g = linear(g, p["pb2_w"], p["pb2_b"], act="sigmoid", use_pallas=use_pallas)
    h = h * g[:, None, None, :]
    return residual + h * p["gamma"]


def adaptive_avg_pool_to_4x4(x):
    B, H, W, C = x.shape
    if H == 4 and W == 4:
        return x
    # TODO(synk): general (non-divisible) PyTorch adaptive-pool bin edges not implemented.
    assert H % 4 == 0 and W % 4 == 0
    return x.reshape(B, 4, H // 4, 4, W // 4, C).mean(axis=(2, 4))


def decoder_forward(x, params, *, use_pallas=True):
    """x: (B, 3, H, W) float32 -> (B, hidden_dim). Mirrors EfficientIlluminationDecoder.forward."""
    B, C, H, W = x.shape
    if H * W > 512 * 512:
        # TODO(synk): bilinear parity with F.interpolate(align_corners=False) is approximate.
        x = jax.image.resize(x, (B, C, H // 2, W // 2), method="bilinear")
    x = jnp.transpose(x, (0, 2, 3, 1)).astype(jnp.float32)   # NHWC
    # input_proj: Conv7x7/s2 + BN + GELU, Conv3x3/s2 + BN + GELU (BN folded into weights)
    x = conv2d_im2col(x, params["ip1_w"], params["ip1_b"], 7, 2, 3,
                      act="gelu", use_pallas=use_pallas)
    x = conv2d_im2col(x, params["ip2_w"], params["ip2_b"], 3, 2, 1,
                      act="gelu", use_pallas=use_pallas)
    for blk in params["blocks"]:
        x = illumination_block(x, blk, use_pallas=use_pallas)
    # reduction: AdaptiveAvgPool2d((4,4)) -> Conv1x1(64->128)+GELU -> AdaptiveAvgPool2d(1)
    x = adaptive_avg_pool_to_4x4(x)
    x = conv1x1(x, params["red_w"], params["red_b"], act="gelu", use_pallas=use_pallas)
    x = jnp.mean(x, axis=(1, 2))                             # (B, 128) == pool(1) + Flatten
    return linear(x, params["fc_w"], params["fc_b"], act="none", use_pallas=use_pallas)


# -----------------------------------------------------------------------------
# Synthetic parameters (conv weights in im2col/matmul layout, BN folded, bf16 matmul weights)
# -----------------------------------------------------------------------------
def make_params(key, in_channels=3, hidden_dim=256, num_blocks=3, dim=64,
                reduction_ratio=4, heads=4, dim_head=64):
    keys = iter(jax.random.split(key, 512))

    def nkey():
        return next(keys)

    def wmat(k_in, c_out):
        w = jax.random.normal(nkey(), (k_in, c_out), jnp.float32) / math.sqrt(k_in)
        b = 0.02 * jax.random.normal(nkey(), (c_out,), jnp.float32)
        return w, b

    def bn(c):
        gamma = 1.0 + 0.1 * jax.random.normal(nkey(), (c,), jnp.float32)
        beta = 0.05 * jax.random.normal(nkey(), (c,), jnp.float32)
        mean = 0.05 * jax.random.normal(nkey(), (c,), jnp.float32)
        var = jnp.abs(1.0 + 0.1 * jax.random.normal(nkey(), (c,), jnp.float32))
        return gamma, beta, mean, var

    def fold_bn(w, b, c, eps=1e-5):
        gamma, beta, mean, var = bn(c)
        s = gamma / jnp.sqrt(var + eps)
        return w * s[None, :], (b - mean) * s + beta

    def conv(k_in, c_out, with_bn=False):
        w, b = wmat(k_in, c_out)
        if with_bn:
            w, b = fold_bn(w, b, c_out)
        return w.astype(jnp.bfloat16), b

    d_red = dim // reduction_ratio          # 16
    inner = heads * dim_head                # 256

    p = {}
    p["ip1_w"], p["ip1_b"] = conv(in_channels * 7 * 7, 32, with_bn=True)
    p["ip2_w"], p["ip2_b"] = conv(32 * 3 * 3, 64, with_bn=True)

    blocks = []
    for _ in range(num_blocks):
        blk = {}
        blk["c1_w"], blk["c1_b"] = conv(dim, d_red)
        dw_w = jax.random.normal(nkey(), (9, d_red), jnp.float32) / 3.0
        dw_b = 0.02 * jax.random.normal(nkey(), (d_red,), jnp.float32)
        blk["dw_w"], blk["dw_b"] = fold_bn(dw_w, dw_b, d_red)   # depthwise + folded BN (f32)
        qkv_w, _ = wmat(d_red, 3 * inner)                       # to_qkv has bias=False
        blk["qkv_w"] = qkv_w.astype(jnp.bfloat16)
        blk["qkv_b"] = jnp.zeros((3 * inner,), jnp.float32)
        blk["out_w"], blk["out_b"] = conv(inner, d_red)
        blk["c3_w"], blk["c3_b"] = conv(d_red, dim)
        blk["pb1_w"], blk["pb1_b"] = conv(dim, d_red)
        blk["pb2_w"], blk["pb2_b"] = conv(d_red, dim)
        # gamma is zero-init in PyTorch (block would be identity); nonzero for a real test.
        blk["gamma"] = 0.5 + 0.1 * jax.random.normal(nkey(), (), jnp.float32)
        blocks.append(blk)
    p["blocks"] = blocks

    p["red_w"], p["red_b"] = conv(dim, 128)
    fc_w, fc_b = wmat(128, hidden_dim)
    p["fc_w"], p["fc_b"] = fc_w.astype(jnp.bfloat16), fc_b
    return p


if __name__ == "__main__":
    B, C, H, W = 2, 3, 16, 16
    hidden_dim = 256

    key = jax.random.PRNGKey(0)
    kx, kp = jax.random.split(key)
    x = jax.random.normal(kx, (B, C, H, W), jnp.float32)
    params = make_params(kp, in_channels=C, hidden_dim=hidden_dim, num_blocks=3)

    fwd = jax.jit(functools.partial(decoder_forward, use_pallas=True))
    ref_fwd = jax.jit(functools.partial(decoder_forward, use_pallas=False))

    out = jax.block_until_ready(fwd(x, params))
    ref = jax.block_until_ready(ref_fwd(x, params))

    assert out.shape == (B, hidden_dim), out.shape
    assert bool(jnp.allclose(out, ref, atol=3e-2, rtol=3e-2)), (
        "mismatch vs reference: max abs diff = %f"
        % float(jnp.max(jnp.abs(out - ref))))
    print("KERNEL_OK")
</pallas_src>

<mosaic_0001>
module attributes {stable_mosaic.version = 11 : i64} {
  func.func @_matmul_bias_act_kernel(%arg0: i32, %arg1: memref<128x256xf32, #tpu.memory_space<vmem>>, %arg2: memref<256x128xbf16, #tpu.memory_space<vmem>>, %arg3: memref<1x128xf32, #tpu.memory_space<vmem>>, %arg4: memref<128x128xf32, #tpu.memory_space<vmem>>) attributes {dimension_semantics = [#tpu.dimension_semantics<parallel>], iteration_bounds = array<i64: 1>, scalar_prefetch = 0 : i64, scratch_operands = 0 : i64, tpu.core_type = #tpu.core_type<tc>, window_params = [{transform_indices = @transform_0, window_bounds = array<i64: 128, 256>}, {pipeline_mode = #tpu.pipeline_mode<synchronous>, transform_indices = @transform_1, window_bounds = array<i64: 256, 128>}, {pipeline_mode = #tpu.pipeline_mode<synchronous>, transform_indices = @transform_2, window_bounds = array<i64: 1, 128>}, {transform_indices = @transform_3, window_bounds = array<i64: 128, 128>}]} {
    %c0 = arith.constant 0 : index
    %c0_0 = arith.constant 0 : index
    %0 = vector.load %arg1[%c0, %c0_0] : memref<128x256xf32, #tpu.memory_space<vmem>>, vector<128x256xf32>
    %1 = arith.truncf %0 : vector<128x256xf32> to vector<128x256xbf16>
    %c0_1 = arith.constant 0 : index
    %c0_2 = arith.constant 0 : index
    %2 = vector.load %arg2[%c0_1, %c0_2] : memref<256x128xbf16, #tpu.memory_space<vmem>>, vector<256x128xbf16>
    %cst = arith.constant dense<0.000000e+00> : vector<128x128xf32>
    %3 = tpu.matmul %1, %2, %cst {dimension_numbers = #tpu.dot_dimension_numbers<[1], [0], [0], [1], [0, 0, 1, 1], [], []>} : vector<128x256xbf16>, vector<256x128xbf16>, vector<128x128xf32> -> vector<128x128xf32>
    %c0_3 = arith.constant 0 : index
    %c0_4 = arith.constant 0 : index
    %4 = vector.load %arg3[%c0_3, %c0_4] : memref<1x128xf32, #tpu.memory_space<vmem>>, vector<1x128xf32>
    %5 = vector.broadcast %4 : vector<1x128xf32> to vector<128x128xf32>
    %6 = arith.addf %3, %5 : vector<128x128xf32>
    %cst_5 = arith.constant 5.000000e-01 : f32
    %7 = vector.broadcast %cst_5 : f32 to vector<128x128xf32>
    %8 = arith.mulf %7, %6 : vector<128x128xf32>
    %cst_6 = arith.constant 4.471500e-02 : f32
    %9 = vector.broadcast %cst_6 : f32 to vector<128x128xf32>
    %10 = arith.mulf %9, %6 : vector<128x128xf32>
    %11 = arith.mulf %10, %6 : vector<128x128xf32>
    %12 = arith.mulf %11, %6 : vector<128x128xf32>
    %13 = arith.addf %6, %12 : vector<128x128xf32>
    %cst_7 = arith.constant 0.797884583 : f32
    %14 = vector.broadcast %cst_7 : f32 to vector<128x128xf32>
    %15 = arith.mulf %14, %13 : vector<128x128xf32>
    %16 = math.tanh %15 : vector<128x128xf32>
    %cst_8 = arith.constant 1.000000e+00 : f32
    %17 = vector.broadcast %cst_8 : f32 to vector<128x128xf32>
    %18 = arith.addf %17, %16 : vector<128x128xf32>
    %19 = arith.mulf %8, %18 : vector<128x128xf32>
    %c0_9 = arith.constant 0 : index
    %c0_10 = arith.constant 0 : index
    %20 = vector.load %arg4[%c0_9, %c0_10] : memref<128x128xf32, #tpu.memory_space<vmem>>, vector<128x128xf32>
    tpu.vector_store %arg4[%c0_9, %c0_10], %19 {strides = array<i32>} : memref<128x128xf32, #tpu.memory_space<vmem>>, vector<128x128xf32>,
    return
  }
  func.func @transform_0(%arg0: i32) -> (i32, i32) {
    %c0_i32 = arith.constant 0 : i32
    %c0_i32_0 = arith.constant 0 : i32
    return %arg0, %c0_i32 : i32, i32
  }
  func.func @transform_1(%arg0: i32) -> (i32, i32) {
    %c0_i32 = arith.constant 0 : i32
    %c0_i32_0 = arith.constant 0 : i32
    %c0_i32_1 = arith.constant 0 : i32
    return %c0_i32, %c0_i32_0 : i32, i32
  }
  func.func @transform_2(%arg0: i32) -> (i32, i32) {
    %c0_i32 = arith.constant 0 : i32
    %c0_i32_0 = arith.constant 0 : i32
    %c0_i32_1 = arith.constant 0 : i32
    return %c0_i32, %c0_i32_0 : i32, i32
  }
  func.func @transform_3(%arg0: i32) -> (i32, i32) {
    %c0_i32 = arith.constant 0 : i32
    %c0_i32_0 = arith.constant 0 : i32
    return %arg0, %c0_i32 : i32, i32
  }
}

module attributes {stable_mosaic.version = 11 : i64} {
  func.func @_matmul_bias_act_kernel(%arg0: i32, %arg1: memref<32x384xf32, #tpu.memory_space<vmem>>, %arg2: memref<384x128xbf16, #tpu.memory_space<vmem>>, %arg3: memref<1x128xf32, #tpu.memory_space<vmem>>, %arg4: memref<32x128xf32, #tpu.memory_space<vmem>>) attributes {dimension_semantics = [#tpu.dimension_semantics<parallel>], iteration_bounds = array<i64: 1>, scalar_prefetch = 0 : i64, scratch_operands = 0 : i64, tpu.core_type = #tpu.core_type<tc>, window_params = [{transform_indices = @transform_0, window_bounds = array<i64: 32, 384>}, {pipeline_mode = #tpu.pipeline_mode<synchronous>, transform_indices = @transform_1, window_bounds = array<i64: 384, 128>}, {pipeline_mode = #tpu.pipeline_mode<synchronous>, transform_indices = @transform_2, window_bounds = array<i64: 1, 128>}, {transform_indices = @transform_3, window_bounds = array<i64: 32, 128>}]} {
    %c0 = arith.constant 0 : index
    %c0_0 = arith.constant 0 : index
    %0 = vector.load %arg1[%c0, %c0_0] : memref<32x384xf32, #tpu.memory_space<vmem>>, vector<32x384xf32>
    %1 = arith.truncf %0 : vector<32x384xf32> to vector<32x384xbf16>
    %c0_1 = arith.constant 0 : index
    %c0_2 = arith.constant 0 : index
    %2 = vector.load %arg2[%c0_1, %c0_2] : memref<384x128xbf16, #tpu.memory_space<vmem>>, vector<384x128xbf16>
    %cst = arith.constant dense<0.000000e+00> : vector<32x128xf32>
    %3 = tpu.matmul %1, %2, %cst {dimension_numbers = #tpu.dot_dimension_numbers<[1], [0], [0], [1], [0, 0, 1, 1], [], []>} : vector<32x384xbf16>, vector<384x128xbf16>, vector<32x128xf32> -> vector<32x128xf32>
    %c0_3 = arith.constant 0 : index
    %c0_4 = arith.constant 0 : index
    %4 = vector.load %arg3[%c0_3, %c0_4] : memref<1x128xf32, #tpu.memory_space<vmem>>, vector<1x128xf32>
    %5 = vector.broadcast %4 : vector<1x128xf32> to vector<32x128xf32>
    %6 = arith.addf %3, %5 : vector<32x128xf32>
    %cst_5 = arith.constant 5.000000e-01 : f32
    %7 = vector.broadcast %cst_5 : f32 to vector<32x128xf32>
    %8 = arith.mulf %7, %6 : vector<32x128xf32>
    %cst_6 = arith.constant 4.471500e-02 : f32
    %9 = vector.broadcast %cst_6 : f32 to vector<32x128xf32>
    %10 = arith.mulf %9, %6 : vector<32x128xf32>
    %11 = arith.mulf %10, %6 : vector<32x128xf32>
    %12 = arith.mulf %11, %6 : vector<32x128xf32>
    %13 = arith.addf %6, %12 : vector<32x128xf32>
    %cst_7 = arith.constant 0.797884583 : f32
    %14 = vector.broadcast %cst_7 : f32 to vector<32x128xf32>
    %15 = arith.mulf %14, %13 : vector<32x128xf32>
    %16 = math.tanh %15 : vector<32x128xf32>
    %cst_8 = arith.constant 1.000000e+00 : f32
    %17 = vector.broadcast %cst_8 : f32 to vector<32x128xf32>
    %18 = arith.addf %17, %16 : vector<32x128xf32>
    %19 = arith.mulf %8, %18 : vector<32x128xf32>
    %c0_9 = arith.constant 0 : index
    %c0_10 = arith.constant 0 : index
    %20 = vector.load %arg4[%c0_9, %c0_10] : memref<32x128xf32, #tpu.memory_space<vmem>>, vector<32x128xf32>
    tpu.vector_store %arg4[%c0_9, %c0_10], %19 {strides = array<i32>} : memref<32x128xf32, #tpu.memory_space<vmem>>, vector<32x128xf32>,
    return
  }
  func.func @transform_0(%arg0: i32) -> (i32, i32) {
    %c0_i32 = arith.constant 0 : i32
    %c0_i32_0 = arith.constant 0 : i32
    return %arg0, %c0_i32 : i32, i32
  }
  func.func @transform_1(%arg0: i32) -> (i32, i32) {
    %c0_i32 = arith.constant 0 : i32
    %c0_i32_0 = arith.constant 0 : i32
    %c0_i32_1 = arith.constant 0 : i32
    return %c0_i32, %c0_i32_0 : i32, i32
  }
  func.func @transform_2(%arg0: i32) -> (i32, i32) {
    %c0_i32 = arith.constant 0 : i32
    %c0_i32_0 = arith.constant 0 : i32
    %c0_i32_1 = arith.constant 0 : i32
    return %c0_i32, %c0_i32_0 : i32, i32
  }
  func.func @transform_3(%arg0: i32) -> (i32, i32) {
    %c0_i32 = arith.constant 0 : i32
    %c0_i32_0 = arith.constant 0 : i32
    return %arg0, %c0_i32 : i32, i32
  }
}

module attributes {stable_mosaic.version = 11 : i64} {
  func.func @_matmul_bias_act_kernel(%arg0: i32, %arg1: memref<32x128xf32, #tpu.memory_space<vmem>>, %arg2: memref<128x128xbf16, #tpu.memory_space<vmem>>, %arg3: memref<1x128xf32, #tpu.memory_space<vmem>>, %arg4: memref<32x128xf32, #tpu.memory_space<vmem>>) attributes {dimension_semantics = [#tpu.dimension_semantics<parallel>], iteration_bounds = array<i64: 1>, scalar_prefetch = 0 : i64, scratch_operands = 0 : i64, tpu.core_type = #tpu.core_type<tc>, window_params = [{transform_indices = @transform_0, window_bounds = array<i64: 32, 128>}, {pipeline_mode = #tpu.pipeline_mode<synchronous>, transform_indices = @transform_1, window_bounds = array<i64: 128, 128>}, {pipeline_mode = #tpu.pipeline_mode<synchronous>, transform_indices = @transform_2, window_bounds = array<i64: 1, 128>}, {transform_indices = @transform_3, window_bounds = array<i64: 32, 128>}]} {
    %c0 = arith.constant 0 : index
    %c0_0 = arith.constant 0 : index
    %0 = vector.load %arg1[%c0, %c0_0] : memref<32x128xf32, #tpu.memory_space<vmem>>, vector<32x128xf32>
    %1 = arith.truncf %0 : vector<32x128xf32> to vector<32x128xbf16>
    %c0_1 = arith.constant 0 : index
    %c0_2 = arith.constant 0 : index
    %2 = vector.load %arg2[%c0_1, %c0_2] : memref<128x128xbf16, #tpu.memory_space<vmem>>, vector<128x128xbf16>
    %cst = arith.constant dense<0.000000e+00> : vector<32x128xf32>
    %3 = tpu.matmul %1, %2, %cst {dimension_numbers = #tpu.dot_dimension_numbers<[1], [0], [0], [1], [0, 0, 1, 1], [], []>} : vector<32x128xbf16>, vector<128x128xbf16>, vector<32x128xf32> -> vector<32x128xf32>
    %c0_3 = arith.constant 0 : index
    %c0_4 = arith.constant 0 : index
    %4 = vector.load %arg3[%c0_3, %c0_4] : memref<1x128xf32, #tpu.memory_space<vmem>>, vector<1x128xf32>
    %5 = vector.broadcast %4 : vector<1x128xf32> to vector<32x128xf32>
    %6 = arith.addf %3, %5 : vector<32x128xf32>
    %c0_5 = arith.constant 0 : index
    %c0_6 = arith.constant 0 : index
    %7 = vector.load %arg4[%c0_5, %c0_6] : memref<32x128xf32, #tpu.memory_space<vmem>>, vector<32x128xf32>
    tpu.vector_store %arg4[%c0_5, %c0_6], %6 {strides = array<i32>} : memref<32x128xf32, #tpu.memory_space<vmem>>, vector<32x128xf32>,
    return
  }
  func.func @transform_0(%arg0: i32) -> (i32, i32) {
    %c0_i32 = arith.constant 0 : i32
    %c0_i32_0 = arith.constant 0 : i32
    return %arg0, %c0_i32 : i32, i32
  }
  func.func @transform_1(%arg0: i32) -> (i32, i32) {
    %c0_i32 = arith.constant 0 : i32
    %c0_i32_0 = arith.constant 0 : i32
    %c0_i32_1 = arith.constant 0 : i32
    return %c0_i32, %c0_i32_0 : i32, i32
  }
  func.func @transform_2(%arg0: i32) -> (i32, i32) {
    %c0_i32 = arith.constant 0 : i32
    %c0_i32_0 = arith.constant 0 : i32
    %c0_i32_1 = arith.constant 0 : i32
    return %c0_i32, %c0_i32_0 : i32, i32
  }
  func.func @transform_3(%arg0: i32) -> (i32, i32) {
    %c0_i32 = arith.constant 0 : i32
    %c0_i32_0 = arith.constant 0 : i32
    return %arg0, %c0_i32 : i32, i32
  }
}

module attributes {stable_mosaic.version = 11 : i64} {
  func.func @_dwconv3x3_kernel(%arg0: i32, %arg1: memref<1x6x6x16xf32, #tpu.memory_space<vmem>>, %arg2: memref<9x16xf32, #tpu.memory_space<vmem>>, %arg3: memref<1x16xf32, #tpu.memory_space<vmem>>, %arg4: memref<1x4x4x16xf32, #tpu.memory_space<vmem>>) attributes {dimension_semantics = [#tpu.dimension_semantics<parallel>], iteration_bounds = array<i64: 2>, scalar_prefetch = 0 : i64, scratch_operands = 0 : i64, tpu.core_type = #tpu.core_type<tc>, window_params = [{transform_indices = @transform_0, window_bounds = array<i64: 1, 6, 6, 16>}, {pipeline_mode = #tpu.pipeline_mode<synchronous>, transform_indices = @transform_1, window_bounds = array<i64: 9, 16>}, {pipeline_mode = #tpu.pipeline_mode<synchronous>, transform_indices = @transform_2, window_bounds = array<i64: 1, 16>}, {transform_indices = @transform_3, window_bounds = array<i64: 1, 4, 4, 16>}]} {
    %c0 = arith.constant 0 : index
    %c0_0 = arith.constant 0 : index
    %c0_1 = arith.constant 0 : index
    %c0_2 = arith.constant 0 : index
    %0 = vector.load %arg1[%c0, %c0_0, %c0_1, %c0_2] : memref<1x6x6x16xf32, #tpu.memory_space<vmem>>, vector<1x6x6x16xf32>
    %1 = vector.shape_cast %0 : vector<1x6x6x16xf32> to vector<6x6x16xf32>
    %c0_3 = arith.constant 0 : index
    %c0_4 = arith.constant 0 : index
    %2 = vector.load %arg2[%c0_3, %c0_4] : memref<9x16xf32, #tpu.memory_space<vmem>>, vector<9x16xf32>
    %cst = arith.constant 0.000000e+00 : f32
    %3 = vector.broadcast %cst : f32 to vector<4x4x16xf32>
    %4 = vector.extract_strided_slice %1 {offsets = [0, 0, 0], sizes = [4, 4, 16], strides = [1, 1, 1]} : vector<6x6x16xf32> to vector<4x4x16xf32>
    %5 = vector.extract_strided_slice %2 {offsets = [0, 0], sizes = [1, 16], strides = [1, 1]} : vector<9x16xf32> to vector<1x16xf32>
    %6 = vector.shape_cast %5 : vector<1x16xf32> to vector<16xf32>
    %7 = vector.shape_cast %6 : vector<16xf32> to vector<1x1x16xf32>
    %8 = vector.broadcast %7 : vector<1x1x16xf32> to vector<4x4x16xf32>
    %9 = arith.mulf %4, %8 : vector<4x4x16xf32>
    %10 = arith.addf %3, %9 : vector<4x4x16xf32>
    %11 = vector.extract_strided_slice %1 {offsets = [0, 1, 0], sizes = [4, 4, 16], strides = [1, 1, 1]} : vector<6x6x16xf32> to vector<4x4x16xf32>
    %12 = vector.extract_strided_slice %2 {offsets = [1, 0], sizes = [1, 16], strides = [1, 1]} : vector<9x16xf32> to vector<1x16xf32>
    %13 = vector.shape_cast %12 : vector<1x16xf32> to vector<16xf32>
    %14 = vector.shape_cast %13 : vector<16xf32> to vector<1x1x16xf32>
    %15 = vector.broadcast %14 : vector<1x1x16xf32> to vector<4x4x16xf32>
    %16 = arith.mulf %11, %15 : vector<4x4x16xf32>
    %17 = arith.addf %10, %16 : vector<4x4x16xf32>
    %18 = vector.extract_strided_slice %1 {offsets = [0, 2, 0], sizes = [4, 4, 16], strides = [1, 1, 1]} : vector<6x6x16xf32> to vector<4x4x16xf32>
    %19 = vector.extract_strided_slice %2 {offsets = [2, 0], sizes = [1, 16], strides = [1, 1]} : vector<9x16xf32> to vector<1x16xf32>
    %20 = vector.shape_cast %19 : vector<1x16xf32> to vector<16xf32>
    %21 = vector.shape_cast %20 : vector<16xf32> to vector<1x1x16xf32>
    %22 = vector.broadcast %21 : vector<1x1x16xf32> to vector<4x4x16xf32>
    %23 = arith.mulf %18, %22 : vector<4x4x16xf32>
    %24 = arith.addf %17, %23 : vector<4x4x16xf32>
    %25 = vector.extract_strided_slice %1 {offsets = [1, 0, 0], sizes = [4, 4, 16], strides = [1, 1, 1]} : vector<6x6x16xf32> to vector<4x4x16xf32>
    %26 = vector.extract_strided_slice %2 {offsets = [3, 0], sizes = [1, 16], strides = [1, 1]} : vector<9x16xf32> to vector<1x16xf32>
    %27 = vector.shape_cast %26 : vector<1x16xf32> to vector<16xf32>
    %28 = vector.shape_cast %27 : vector<16xf32> to vector<1x1x16xf32>
    %29 = vector.broadcast %28 : vector<1x1x16xf32> to vector<4x4x16xf32>
    %30 = arith.mulf %25, %29 : vector<4x4x16xf32>
    %31 = arith.addf %24, %30 : vector<4x4x16xf32>
    %32 = vector.extract_strided_slice %1 {offsets = [1, 1, 0], sizes = [4, 4, 16], strides = [1, 1, 1]} : vector<6x6x16xf32> to vector<4x4x16xf32>
    %33 = vector.extract_strided_slice %2 {offsets = [4, 0], sizes = [1, 16], strides = [1, 1]} : vector<9x16xf32> to vector<1x16xf32>
    %34 = vector.shape_cast %33 : vector<1x16xf32> to vector<16xf32>
    %35 = vector.shape_cast %34 : vector<16xf32> to vector<1x1x16xf32>
    %36 = vector.broadcast %35 : vector<1x1x16xf32> to vector<4x4x16xf32>
    %37 = arith.mulf %32, %36 : vector<4x4x16xf32>
    %38 = arith.addf %31, %37 : vector<4x4x16xf32>
    %39 = vector.extract_strided_slice %1 {offsets = [1, 2, 0], sizes = [4, 4, 16], strides = [1, 1, 1]} : vector<6x6x16xf32> to vector<4x4x16xf32>
    %40 = vector.extract_strided_slice %2 {offsets = [5, 0], sizes = [1, 16], strides = [1, 1]} : vector<9x16xf32> to vector<1x16xf32>
    %41 = vector.shape_cast %40 : vector<1x16xf32> to vector<16xf32>
    %42 = vector.shape_cast %41 : vector<16xf32> to vector<1x1x16xf32>
    %43 = vector.broadcast %42 : vector<1x1x16xf32> to vector<4x4x16xf32>
    %44 = arith.mulf %39, %43 : vector<4x4x16xf32>
    %45 = arith.addf %38, %44 : vector<4x4x16xf32>
    %46 = vector.extract_strided_slice %1 {offsets = [2, 0, 0], sizes = [4, 4, 16], strides = [1, 1, 1]} : vector<6x6x16xf32> to vector<4x4x16xf32>
    %47 = vector.extract_strided_slice %2 {offsets = [6, 0], sizes = [1, 16], strides = [1, 1]} : vector<9x16xf32> to vector<1x16xf32>
    %48 = vector.shape_cast %47 : vector<1x16xf32> to vector<16xf32>
    %49 = vector.shape_cast %48 : vector<16xf32> to vector<1x1x16xf32>
    %50 = vector.broadcast %49 : vector<1x1x16xf32> to vector<4x4x16xf32>
    %51 = arith.mulf %46, %50 : vector<4x4x16xf32>
    %52 = arith.addf %45, %51 : vector<4x4x16xf32>
    %53 = vector.extract_strided_slice %1 {offsets = [2, 1, 0], sizes = [4, 4, 16], strides = [1, 1, 1]} : vector<6x6x16xf32> to vector<4x4x16xf32>
    %54 = vector.extract_strided_slice %2 {offsets = [7, 0], sizes = [1, 16], strides = [1, 1]} : vector<9x16xf32> to vector<1x16xf32>
    %55 = vector.shape_cast %54 : vector<1x16xf32> to vector<16xf32>
    %56 = vector.shape_cast %55 : vector<16xf32> to vector<1x1x16xf32>
    %57 = vector.broadcast %56 : vector<1x1x16xf32> to vector<4x4x16xf32>
    %58 = arith.mulf %53, %57 : vector<4x4x16xf32>
    %59 = arith.addf %52, %58 : vector<4x4x16xf32>
    %60 = vector.extract_strided_slice %1 {offsets = [2, 2, 0], sizes = [4, 4, 16], strides = [1, 1, 1]} : vector<6x6x16xf32> to vector<4x4x16xf32>
    %61 = vector.extract_strided_slice %2 {offsets = [8, 0], sizes = [1, 16], strides = [1, 1]} : vector<9x16xf32> to vector<1x16xf32>
    %62 = vector.shape_cast %61 : vector<1x16xf32> to vector<16xf32>
    %63 = vector.shape_cast %62 : vector<16xf32> to vector<1x1x16xf32>
    %64 = vector.broadcast %63 : vector<1x1x16xf32> to vector<4x4x16xf32>
    %65 = arith.mulf %60, %64 : vector<4x4x16xf32>
    %66 = arith.addf %59, %65 : vector<4x4x16xf32>
    %c0_5 = arith.constant 0 : index
    %c0_6 = arith.constant 0 : index
    %67 = vector.load %arg3[%c0_5, %c0_6] : memref<1x16xf32, #tpu.memory_space<vmem>>, vector<1x16xf32>
    %68 = vector.shape_cast %67 : vector<1x16xf32> to vector<1x1x16xf32>
    %69 = vector.broadcast %68 : vector<1x1x16xf32> to vector<4x4x16xf32>
    %70 = arith.addf %66, %69 : vector<4x4x16xf32>
    %cst_7 = arith.constant 5.000000e-01 : f32
    %71 = vector.broadcast %cst_7 : f32 to vector<4x4x16xf32>
    %72 = arith.mulf %71, %70 : vector<4x4x16xf32>
    %cst_8 = arith.constant 4.471500e-02 : f32
    %73 = vector.broadcast %cst_8 : f32 to vector<4x4x16xf32>
    %74 = arith.mulf %73, %70 : vector<4x4x16xf32>
    %75 = arith.mulf %74, %70 : vector<4x4x16xf32>
    %76 = arith.mulf %75, %70 : vector<4x4x16xf32>
    %77 = arith.addf %70, %76 : vector<4x4x16xf32>
    %cst_9 = arith.constant 0.797884583 : f32
    %78 = vector.broadcast %cst_9 : f32 to vector<4x4x16xf32>
    %79 = arith.mulf %78, %77 : vector<4x4x16xf32>
    %80 = math.tanh %79 : vector<4x4x16xf32>
    %cst_10 = arith.constant 1.000000e+00 : f32
    %81 = vector.broadcast %cst_10 : f32 to vector<4x4x16xf32>
    %82 = arith.addf %81, %80 : vector<4x4x16xf32>
    %83 = arith.mulf %72, %82 : vector<4x4x16xf32>
    %c0_11 = arith.constant 0 : index
    %c0_12 = arith.constant 0 : index
    %c0_13 = arith.constant 0 : index
    %c0_14 = arith.constant 0 : index
    %84 = vector.load %arg4[%c0_11, %c0_12, %c0_13, %c0_14] : memref<1x4x4x16xf32, #tpu.memory_space<vmem>>, vector<1x4x4x16xf32>
    %85 = vector.shape_cast %84 : vector<1x4x4x16xf32> to vector<4x4x16xf32>
    %86 = vector.shape_cast %83 : vector<4x4x16xf32> to vector<1x4x4x16xf32>
    tpu.vector_store %arg4[%c0_11, %c0_12, %c0_13, %c0_14], %86 {strides = array<i32>} : memref<1x4x4x16xf32, #tpu.memory_space<vmem>>, vector<1x4x4x16xf32>,
    return
  }
  func.func @transform_0(%arg0: i32) -> (i32, i32, i32, i32) {
    %c0_i32 = arith.constant 0 : i32
    %c0_i32_0 = arith.constant 0 : i32
    %c0_i32_1 = arith.constant 0 : i32
    %c0_i32_2 = arith.constant 0 : i32
    return %arg0, %c0_i32, %c0_i32_0, %c0_i32_1 : i32, i32, i32, i32
  }
  func.func @transform_1(%arg0: i32) -> (i32, i32) {
    %c0_i32 = arith.constant 0 : i32
    %c0_i32_0 = arith.constant 0 : i32
    %c0_i32_1 = arith.constant 0 : i32
    return %c0_i32, %c0_i32_0 : i32, i32
  }
  func.func @transform_2(%arg0: i32) -> (i32, i32) {
    %c0_i32 = arith.constant 0 : i32
    %c0_i32_0 = arith.constant 0 : i32
    %c0_i32_1 = arith.constant 0 : i32
    return %c0_i32, %c0_i32_0 : i32, i32
  }
  func.func @transform_3(%arg0: i32) -> (i32, i32, i32, i32) {
    %c0_i32 = arith.constant 0 : i32
    %c0_i32_0 = arith.constant 0 : i32
    %c0_i32_1 = arith.constant 0 : i32
    %c0_i32_2 = arith.constant 0 : i32
    return %arg0, %c0_i32, %c0_i32_0, %c0_i32_1 : i32, i32, i32, i32
  }
}

module attributes {stable_mosaic.version = 11 : i64} {
  func.func @_matmul_bias_act_kernel(%arg0: i32, %arg1: memref<32x128xf32, #tpu.memory_space<vmem>>, %arg2: memref<128x768xbf16, #tpu.memory_space<vmem>>, %arg3: memref<1x768xf32, #tpu.memory_space<vmem>>, %arg4: memref<32x768xf32, #tpu.memory_space<vmem>>) attributes {dimension_semantics = [#tpu.dimension_semantics<parallel>], iteration_bounds = array<i64: 1>, scalar_prefetch = 0 : i64, scratch_operands = 0 : i64, tpu.core_type = #tpu.core_type<tc>, window_params = [{transform_indices = @transform_0, window_bounds = array<i64: 32, 128>}, {pipeline_mode = #tpu.pipeline_mode<synchronous>, transform_indices = @transform_1, window_bounds = array<i64: 128, 768>}, {pipeline_mode = #tpu.pipeline_mode<synchronous>, transform_indices = @transform_2, window_bounds = array<i64: 1, 768>}, {transform_indices = @transform_3, window_bounds = array<i64: 32, 768>}]} {
    %c0 = arith.constant 0 : index
    %c0_0 = arith.constant 0 : index
    %0 = vector.load %arg1[%c0, %c0_0] : memref<32x128xf32, #tpu.memory_space<vmem>>, vector<32x128xf32>
    %1 = arith.truncf %0 : vector<32x128xf32> to vector<32x128xbf16>
    %c0_1 = arith.constant 0 : index
    %c0_2 = arith.constant 0 : index
    %2 = vector.load %arg2[%c0_1, %c0_2] : memref<128x768xbf16, #tpu.memory_space<vmem>>, vector<128x768xbf16>
    %cst = arith.constant dense<0.000000e+00> : vector<32x768xf32>
    %3 = tpu.matmul %1, %2, %cst {dimension_numbers = #tpu.dot_dimension_numbers<[1], [0], [0], [1], [0, 0, 1, 1], [], []>} : vector<32x128xbf16>, vector<128x768xbf16>, vector<32x768xf32> -> vector<32x768xf32>
    %c0_3 = arith.constant 0 : index
    %c0_4 = arith.constant 0 : index
    %4 = vector.load %arg3[%c0_3, %c0_4] : memref<1x768xf32, #tpu.memory_space<vmem>>, vector<1x768xf32>
    %5 = vector.broadcast %4 : vector<1x768xf32> to vector<32x768xf32>
    %6 = arith.addf %3, %5 : vector<32x768xf32>
    %c0_5 = arith.constant 0 : index
    %c0_6 = arith.constant 0 : index
    %7 = vector.load %arg4[%c0_5, %c0_6] : memref<32x768xf32, #tpu.memory_space<vmem>>, vector<32x768xf32>
    tpu.vector_store %arg4[%c0_5, %c0_6], %6 {strides = array<i32>} : memref<32x768xf32, #tpu.memory_space<vmem>>, vector<32x768xf32>,
    return
  }
  func.func @transform_0(%arg0: i32) -> (i32, i32) {
    %c0_i32 = arith.constant 0 : i32
    %c0_i32_0 = arith.constant 0 : i32
    return %arg0, %c0_i32 : i32, i32
  }
  func.func @transform_1(%arg0: i32) -> (i32, i32) {
    %c0_i32 = arith.constant 0 : i32
    %c0_i32_0 = arith.constant 0 : i32
    %c0_i32_1 = arith.constant 0 : i32
    return %c0_i32, %c0_i32_0 : i32, i32
  }
  func.func @transform_2(%arg0: i32) -> (i32, i32) {
    %c0_i32 = arith.constant 0 : i32
    %c0_i32_0 = arith.constant 0 : i32
    %c0_i32_1 = arith.constant 0 : i32
    return %c0_i32, %c0_i32_0 : i32, i32
  }
  func.func @transform_3(%arg0: i32) -> (i32, i32) {
    %c0_i32 = arith.constant 0 : i32
    %c0_i32_0 = arith.constant 0 : i32
    return %arg0, %c0_i32 : i32, i32
  }
}

module attributes {stable_mosaic.version = 11 : i64} {
  func.func @_attention_kernel(%arg0: i32, %arg1: memref<1x4x16x64xf32, #tpu.memory_space<vmem>>, %arg2: memref<1x4x16x64xf32, #tpu.memory_space<vmem>>, %arg3: memref<1x4x16x64xf32, #tpu.memory_space<vmem>>, %arg4: memref<1x4x16x64xf32, #tpu.memory_space<vmem>>) attributes {dimension_semantics = [#tpu.dimension_semantics<parallel>], iteration_bounds = array<i64: 2>, scalar_prefetch = 0 : i64, scratch_operands = 0 : i64, tpu.core_type = #tpu.core_type<tc>, window_params = [{transform_indices = @transform_0, window_bounds = array<i64: 1, 4, 16, 64>}, {transform_indices = @transform_1, window_bounds = array<i64: 1, 4, 16, 64>}, {transform_indices = @transform_2, window_bounds = array<i64: 1, 4, 16, 64>}, {transform_indices = @transform_3, window_bounds = array<i64: 1, 4, 16, 64>}]} {
    %c0 = arith.constant 0 : index
    %c0_0 = arith.constant 0 : index
    %c0_1 = arith.constant 0 : index
    %c0_2 = arith.constant 0 : index
    %0 = vector.load %arg1[%c0, %c0_0, %c0_1, %c0_2] : memref<1x4x16x64xf32, #tpu.memory_space<vmem>>, vector<1x4x16x64xf32>
    %1 = vector.shape_cast %0 : vector<1x4x16x64xf32> to vector<4x16x64xf32>
    %c0_3 = arith.constant 0 : index
    %c0_4 = arith.constant 0 : index
    %c0_5 = arith.constant 0 : index
    %c0_6 = arith.constant 0 : index
    %2 = vector.load %arg2[%c0_3, %c0_4, %c0_5, %c0_6] : memref<1x4x16x64xf32, #tpu.memory_space<vmem>>, vector<1x4x16x64xf32>
    %3 = vector.shape_cast %2 : vector<1x4x16x64xf32> to vector<4x16x64xf32>
    %c0_7 = arith.constant 0 : index
    %c0_8 = arith.constant 0 : index
    %c0_9 = arith.constant 0 : index
    %c0_10 = arith.constant 0 : index
    %4 = vector.load %arg3[%c0_7, %c0_8, %c0_9, %c0_10] : memref<1x4x16x64xf32, #tpu.memory_space<vmem>>, vector<1x4x16x64xf32>
    %5 = vector.shape_cast %4 : vector<1x4x16x64xf32> to vector<4x16x64xf32>
    "tpu.trace_start"() <{level = 10 : i32, message = "hid,hjd->hij"}> : () -> ()
    %cst = arith.constant dense<0.000000e+00> : vector<4x16x16xf32>
    %6 = tpu.matmul %1, %3, %cst {dimension_numbers = #tpu.dot_dimension_numbers<[2], [2], [1], [1], [0, 0, 0, 1, 1, 1], [0], [0]>} : vector<4x16x64xf32>, vector<4x16x64xf32>, vector<4x16x16xf32> -> vector<4x16x16xf32>
    "tpu.trace_stop"() : () -> ()
    %cst_11 = arith.constant 1.250000e-01 : f32
    %7 = vector.broadcast %cst_11 : f32 to vector<4x16x16xf32>
    %8 = arith.mulf %6, %7 : vector<4x16x16xf32>
    %cst_12 = arith.constant dense<0xFF800000> : vector<4x16xf32>
    %9 = vector.multi_reduction <maximumf>, %8, %cst_12 [2] : vector<4x16x16xf32> to vector<4x16xf32>
    %10 = vector.shape_cast %9 : vector<4x16xf32> to vector<4x16x1xf32>
    %11 = vector.broadcast %10 : vector<4x16x1xf32> to vector<4x16x16xf32>
    %12 = arith.subf %8, %11 : vector<4x16x16xf32>
    %13 = math.exp %12 : vector<4x16x16xf32>
    %cst_13 = arith.constant dense<0.000000e+00> : vector<4x16xf32>
    %14 = vector.multi_reduction <add>, %13, %cst_13 [2] : vector<4x16x16xf32> to vector<4x16xf32>
    %15 = vector.shape_cast %14 : vector<4x16xf32> to vector<4x16x1xf32>
    %16 = vector.broadcast %15 : vector<4x16x1xf32> to vector<4x16x16xf32>
    %17 = arith.divf %13, %16 : vector<4x16x16xf32>
    "tpu.trace_start"() <{level = 10 : i32, message = "hij,hjd->hid"}> : () -> ()
    %cst_14 = arith.constant dense<0.000000e+00> : vector<4x16x64xf32>
    %18 = tpu.matmul %17, %5, %cst_14 {dimension_numbers = #tpu.dot_dimension_numbers<[2], [1], [1], [2], [0, 0, 0, 1, 1, 2], [0], [0]>} : vector<4x16x16xf32>, vector<4x16x64xf32>, vector<4x16x64xf32> -> vector<4x16x64xf32>
    "tpu.trace_stop"() : () -> ()
    %c0_15 = arith.constant 0 : index
    %c0_16 = arith.constant 0 : index
    %c0_17 = arith.constant 0 : index
    %c0_18 = arith.constant 0 : index
    %19 = vector.load %arg4[%c0_15, %c0_16, %c0_17, %c0_18] : memref<1x4x16x64xf32, #tpu.memory_space<vmem>>, vector<1x4x16x64xf32>
    %20 = vector.shape_cast %19 : vector<1x4x16x64xf32> to vector<4x16x64xf32>
    %21 = vector.shape_cast %18 : vector<4x16x64xf32> to vector<1x4x16x64xf32>
    tpu.vector_store %arg4[%c0_15, %c0_16, %c0_17, %c0_18], %21 {strides = array<i32>} : memref<1x4x16x64xf32, #tpu.memory_space<vmem>>, vector<1x4x16x64xf32>,
    return
  }
  func.func @transform_0(%arg0: i32) -> (i32, i32, i32, i32) {
    %c0_i32 = arith.constant 0 : i32
    %c0_i32_0 = arith.constant 0 : i32
    %c0_i32_1 = arith.constant 0 : i32
    %c0_i32_2 = arith.constant 0 : i32
    return %arg0, %c0_i32, %c0_i32_0, %c0_i32_1 : i32, i32, i32, i32
  }
  func.func @transform_1(%arg0: i32) -> (i32, i32, i32, i32) {
    %c0_i32 = arith.constant 0 : i32
    %c0_i32_0 = arith.constant 0 : i32
    %c0_i32_1 = arith.constant 0 : i32
    %c0_i32_2 = arith.constant 0 : i32
    return %arg0, %c0_i32, %c0_i32_0, %c0_i32_1 : i32, i32, i32, i32
  }
  func.func @transform_2(%arg0: i32) -> (i32, i32, i32, i32) {
    %c0_i32 = arith.constant 0 : i32
    %c0_i32_0 = arith.constant 0 : i32
    %c0_i32_1 = arith.constant 0 : i32
    %c0_i32_2 = arith.constant 0 : i32
    return %arg0, %c0_i32, %c0_i32_0, %c0_i32_1 : i32, i32, i32, i32
  }
  func.func @transform_3(%arg0: i32) -> (i32, i32, i32, i32) {
    %c0_i32 = arith.constant 0 : i32
    %c0_i32_0 = arith.constant 0 : i32
    %c0_i32_1 = arith.constant 0 : i32
    %c0_i32_2 = arith.constant 0 : i32
    return %arg0, %c0_i32, %c0_i32_0, %c0_i32_1 : i32, i32, i32, i32
  }
}

module attributes {stable_mosaic.version = 11 : i64} {
  func.func @_matmul_bias_act_kernel(%arg0: i32, %arg1: memref<32x256xf32, #tpu.memory_space<vmem>>, %arg2: memref<256x128xbf16, #tpu.memory_space<vmem>>, %arg3: memref<1x128xf32, #tpu.memory_space<vmem>>, %arg4: memref<32x128xf32, #tpu.memory_space<vmem>>) attributes {dimension_semantics = [#tpu.dimension_semantics<parallel>], iteration_bounds = array<i64: 1>, scalar_prefetch = 0 : i64, scratch_operands = 0 : i64, tpu.core_type = #tpu.core_type<tc>, window_params = [{transform_indices = @transform_0, window_bounds = array<i64: 32, 256>}, {pipeline_mode = #tpu.pipeline_mode<synchronous>, transform_indices = @transform_1, window_bounds = array<i64: 256, 128>}, {pipeline_mode = #tpu.pipeline_mode<synchronous>, transform_indices = @transform_2, window_bounds = array<i64: 1, 128>}, {transform_indices = @transform_3, window_bounds = array<i64: 32, 128>}]} {
    %c0 = arith.constant 0 : index
    %c0_0 = arith.constant 0 : index
    %0 = vector.load %arg1[%c0, %c0_0] : memref<32x256xf32, #tpu.memory_space<vmem>>, vector<32x256xf32>
    %1 = arith.truncf %0 : vector<32x256xf32> to vector<32x256xbf16>
    %c0_1 = arith.constant 0 : index
    %c0_2 = arith.constant 0 : index
    %2 = vector.load %arg2[%c0_1, %c0_2] : memref<256x128xbf16, #tpu.memory_space<vmem>>, vector<256x128xbf16>
    %cst = arith.constant dense<0.000000e+00> : vector<32x128xf32>
    %3 = tpu.matmul %1, %2, %cst {dimension_numbers = #tpu.dot_dimension_numbers<[1], [0], [0], [1], [0, 0, 1, 1], [], []>} : vector<32x256xbf16>, vector<256x128xbf16>, vector<32x128xf32> -> vector<32x128xf32>
    %c0_3 = arith.constant 0 : index
    %c0_4 = arith.constant 0 : index
    %4 = vector.load %arg3[%c0_3, %c0_4] : memref<1x128xf32, #tpu.memory_space<vmem>>, vector<1x128xf32>
    %5 = vector.broadcast %4 : vector<1x128xf32> to vector<32x128xf32>
    %6 = arith.addf %3, %5 : vector<32x128xf32>
    %c0_5 = arith.constant 0 : index
    %c0_6 = arith.constant 0 : index
    %7 = vector.load %arg4[%c0_5, %c0_6] : memref<32x128xf32, #tpu.memory_space<vmem>>, vector<32x128xf32>
    tpu.vector_store %arg4[%c0_5, %c0_6], %6 {strides = array<i32>} : memref<32x128xf32, #tpu.memory_space<vmem>>, vector<32x128xf32>,
    return
  }
  func.func @transform_0(%arg0: i32) -> (i32, i32) {
    %c0_i32 = arith.constant 0 : i32
    %c0_i32_0 = arith.constant 0 : i32
    return %arg0, %c0_i32 : i32, i32
  }
  func.func @transform_1(%arg0: i32) -> (i32, i32) {
    %c0_i32 = arith.constant 0 : i32
    %c0_i32_0 = arith.constant 0 : i32
    %c0_i32_1 = arith.constant 0 : i32
    return %c0_i32, %c0_i32_0 : i32, i32
  }
  func.func @transform_2(%arg0: i32) -> (i32, i32) {
    %c0_i32 = arith.constant 0 : i32
    %c0_i32_0 = arith.constant 0 : i32
    %c0_i32_1 = arith.constant 0 : i32
    return %c0_i32, %c0_i32_0 : i32, i32
  }
  func.func @transform_3(%arg0: i32) -> (i32, i32) {
    %c0_i32 = arith.constant 0 : i32
    %c0_i32_0 = arith.constant 0 : i32
    return %arg0, %c0_i32 : i32, i32
  }
}

module attributes {stable_mosaic.version = 11 : i64} {
  func.func @_matmul_bias_act_kernel(%arg0: i32, %arg1: memref<8x128xf32, #tpu.memory_space<vmem>>, %arg2: memref<128x128xbf16, #tpu.memory_space<vmem>>, %arg3: memref<1x128xf32, #tpu.memory_space<vmem>>, %arg4: memref<8x128xf32, #tpu.memory_space<vmem>>) attributes {dimension_semantics = [#tpu.dimension_semantics<parallel>], iteration_bounds = array<i64: 1>, scalar_prefetch = 0 : i64, scratch_operands = 0 : i64, tpu.core_type = #tpu.core_type<tc>, window_params = [{transform_indices = @transform_0, window_bounds = array<i64: 8, 128>}, {pipeline_mode = #tpu.pipeline_mode<synchronous>, transform_indices = @transform_1, window_bounds = array<i64: 128, 128>}, {pipeline_mode = #tpu.pipeline_mode<synchronous>, transform_indices = @transform_2, window_bounds = array<i64: 1, 128>}, {transform_indices = @transform_3, window_bounds = array<i64: 8, 128>}]} {
    %c0 = arith.constant 0 : index
    %c0_0 = arith.constant 0 : index
    %0 = vector.load %arg1[%c0, %c0_0] : memref<8x128xf32, #tpu.memory_space<vmem>>, vector<8x128xf32>
    %1 = arith.truncf %0 : vector<8x128xf32> to vector<8x128xbf16>
    %c0_1 = arith.constant 0 : index
    %c0_2 = arith.constant 0 : index
    %2 = vector.load %arg2[%c0_1, %c0_2] : memref<128x128xbf16, #tpu.memory_space<vmem>>, vector<128x128xbf16>
    %cst = arith.constant dense<0.000000e+00> : vector<8x128xf32>
    %3 = tpu.matmul %1, %2, %cst {dimension_numbers = #tpu.dot_dimension_numbers<[1], [0], [0], [1], [0, 0, 1, 1], [], []>} : vector<8x128xbf16>, vector<128x128xbf16>, vector<8x128xf32> -> vector<8x128xf32>
    %c0_3 = arith.constant 0 : index
    %c0_4 = arith.constant 0 : index
    %4 = vector.load %arg3[%c0_3, %c0_4] : memref<1x128xf32, #tpu.memory_space<vmem>>, vector<1x128xf32>
    %5 = vector.broadcast %4 : vector<1x128xf32> to vector<8x128xf32>
    %6 = arith.addf %3, %5 : vector<8x128xf32>
    %cst_5 = arith.constant 5.000000e-01 : f32
    %7 = vector.broadcast %cst_5 : f32 to vector<8x128xf32>
    %8 = arith.mulf %7, %6 : vector<8x128xf32>
    %cst_6 = arith.constant 4.471500e-02 : f32
    %9 = vector.broadcast %cst_6 : f32 to vector<8x128xf32>
    %10 = arith.mulf %9, %6 : vector<8x128xf32>
    %11 = arith.mulf %10, %6 : vector<8x128xf32>
    %12 = arith.mulf %11, %6 : vector<8x128xf32>
    %13 = arith.addf %6, %12 : vector<8x128xf32>
    %cst_7 = arith.constant 0.797884583 : f32
    %14 = vector.broadcast %cst_7 : f32 to vector<8x128xf32>
    %15 = arith.mulf %14, %13 : vector<8x128xf32>
    %16 = math.tanh %15 : vector<8x128xf32>
    %cst_8 = arith.constant 1.000000e+00 : f32
    %17 = vector.broadcast %cst_8 : f32 to vector<8x128xf32>
    %18 = arith.addf %17, %16 : vector<8x128xf32>
    %19 = arith.mulf %8, %18 : vector<8x128xf32>
    %c0_9 = arith.constant 0 : index
    %c0_10 = arith.constant 0 : index
    %20 = vector.load %arg4[%c0_9, %c0_10] : memref<8x128xf32, #tpu.memory_space<vmem>>, vector<8x128xf32>
    tpu.vector_store %arg4[%c0_9, %c0_10], %19 {strides = array<i32>} : memref<8x128xf32, #tpu.memory_space<vmem>>, vector<8x128xf32>,
    return
  }
  func.func @transform_0(%arg0: i32) -> (i32, i32) {
    %c0_i32 = arith.constant 0 : i32
    %c0_i32_0 = arith.constant 0 : i32
    return %arg0, %c0_i32 : i32, i32
  }
  func.func @transform_1(%arg0: i32) -> (i32, i32) {
    %c0_i32 = arith.constant 0 : i32
    %c0_i32_0 = arith.constant 0 : i32
    %c0_i32_1 = arith.constant 0 : i32
    return %c0_i32, %c0_i32_0 : i32, i32
  }
  func.func @transform_2(%arg0: i32) -> (i32, i32) {
    %c0_i32 = arith.constant 0 : i32
    %c0_i32_0 = arith.constant 0 : i32
    %c0_i32_1 = arith.constant 0 : i32
    return %c0_i32, %c0_i32_0 : i32, i32
  }
  func.func @transform_3(%arg0: i32) -> (i32, i32) {
    %c0_i32 = arith.constant 0 : i32
    %c0_i32_0 = arith.constant 0 : i32
    return %arg0, %c0_i32 : i32, i32
  }
}

module attributes {stable_mosaic.version = 11 : i64} {
  func.func @_matmul_bias_act_kernel(%arg0: i32, %arg1: memref<8x128xf32, #tpu.memory_space<vmem>>, %arg2: memref<128x128xbf16, #tpu.memory_space<vmem>>, %arg3: memref<1x128xf32, #tpu.memory_space<vmem>>, %arg4: memref<8x128xf32, #tpu.memory_space<vmem>>) attributes {dimension_semantics = [#tpu.dimension_semantics<parallel>], iteration_bounds = array<i64: 1>, scalar_prefetch = 0 : i64, scratch_operands = 0 : i64, tpu.core_type = #tpu.core_type<tc>, window_params = [{transform_indices = @transform_0, window_bounds = array<i64: 8, 128>}, {pipeline_mode = #tpu.pipeline_mode<synchronous>, transform_indices = @transform_1, window_bounds = array<i64: 128, 128>}, {pipeline_mode = #tpu.pipeline_mode<synchronous>, transform_indices = @transform_2, window_bounds = array<i64: 1, 128>}, {transform_indices = @transform_3, window_bounds = array<i64: 8, 128>}]} {
    %c0 = arith.constant 0 : index
    %c0_0 = arith.constant 0 : index
    %0 = vector.load %arg1[%c0, %c0_0] : memref<8x128xf32, #tpu.memory_space<vmem>>, vector<8x128xf32>
    %1 = arith.truncf %0 : vector<8x128xf32> to vector<8x128xbf16>
    %c0_1 = arith.constant 0 : index
    %c0_2 = arith.constant 0 : index
    %2 = vector.load %arg2[%c0_1, %c0_2] : memref<128x128xbf16, #tpu.memory_space<vmem>>, vector<128x128xbf16>
    %cst = arith.constant dense<0.000000e+00> : vector<8x128xf32>
    %3 = tpu.matmul %1, %2, %cst {dimension_numbers = #tpu.dot_dimension_numbers<[1], [0], [0], [1], [0, 0, 1, 1], [], []>} : vector<8x128xbf16>, vector<128x128xbf16>, vector<8x128xf32> -> vector<8x128xf32>
    %c0_3 = arith.constant 0 : index
    %c0_4 = arith.constant 0 : index
    %4 = vector.load %arg3[%c0_3, %c0_4] : memref<1x128xf32, #tpu.memory_space<vmem>>, vector<1x128xf32>
    %5 = vector.broadcast %4 : vector<1x128xf32> to vector<8x128xf32>
    %6 = arith.addf %3, %5 : vector<8x128xf32>
    %cst_5 = arith.constant 0.000000e+00 : f32
    %7 = vector.broadcast %cst_5 : f32 to vector<8x128xf32>
    %8 = arith.subf %7, %6 : vector<8x128xf32>
    %9 = math.exp %8 : vector<8x128xf32>
    %cst_6 = arith.constant 1.000000e+00 : f32
    %10 = vector.broadcast %cst_6 : f32 to vector<8x128xf32>
    %11 = arith.addf %10, %9 : vector<8x128xf32>
    %cst_7 = arith.constant 1.000000e+00 : f32
    %12 = vector.broadcast %cst_7 : f32 to vector<8x128xf32>
    %13 = arith.divf %12, %11 : vector<8x128xf32>
    %c0_8 = arith.constant 0 : index
    %c0_9 = arith.constant 0 : index
    %14 = vector.load %arg4[%c0_8, %c0_9] : memref<8x128xf32, #tpu.memory_space<vmem>>, vector<8x128xf32>
    tpu.vector_store %arg4[%c0_8, %c0_9], %13 {strides = array<i32>} : memref<8x128xf32, #tpu.memory_space<vmem>>, vector<8x128xf32>,
    return
  }
  func.func @transform_0(%arg0: i32) -> (i32, i32) {
    %c0_i32 = arith.constant 0 : i32
    %c0_i32_0 = arith.constant 0 : i32
    return %arg0, %c0_i32 : i32, i32
  }
  func.func @transform_1(%arg0: i32) -> (i32, i32) {
    %c0_i32 = arith.constant 0 : i32
    %c0_i32_0 = arith.constant 0 : i32
    %c0_i32_1 = arith.constant 0 : i32
    return %c0_i32, %c0_i32_0 : i32, i32
  }
  func.func @transform_2(%arg0: i32) -> (i32, i32) {
    %c0_i32 = arith.constant 0 : i32
    %c0_i32_0 = arith.constant 0 : i32
    %c0_i32_1 = arith.constant 0 : i32
    return %c0_i32, %c0_i32_0 : i32, i32
  }
  func.func @transform_3(%arg0: i32) -> (i32, i32) {
    %c0_i32 = arith.constant 0 : i32
    %c0_i32_0 = arith.constant 0 : i32
    return %arg0, %c0_i32 : i32, i32
  }
}

module attributes {stable_mosaic.version = 11 : i64} {
  func.func @_matmul_bias_act_kernel(%arg0: i32, %arg1: memref<32x128xf32, #tpu.memory_space<vmem>>, %arg2: memref<128x128xbf16, #tpu.memory_space<vmem>>, %arg3: memref<1x128xf32, #tpu.memory_space<vmem>>, %arg4: memref<32x128xf32, #tpu.memory_space<vmem>>) attributes {dimension_semantics = [#tpu.dimension_semantics<parallel>], iteration_bounds = array<i64: 1>, scalar_prefetch = 0 : i64, scratch_operands = 0 : i64, tpu.core_type = #tpu.core_type<tc>, window_params = [{transform_indices = @transform_0, window_bounds = array<i64: 32, 128>}, {pipeline_mode = #tpu.pipeline_mode<synchronous>, transform_indices = @transform_1, window_bounds = array<i64: 128, 128>}, {pipeline_mode = #tpu.pipeline_mode<synchronous>, transform_indices = @transform_2, window_bounds = array<i64: 1, 128>}, {transform_indices = @transform_3, window_bounds = array<i64: 32, 128>}]} {
    %c0 = arith.constant 0 : index
    %c0_0 = arith.constant 0 : index
    %0 = vector.load %arg1[%c0, %c0_0] : memref<32x128xf32, #tpu.memory_space<vmem>>, vector<32x128xf32>
    %1 = arith.truncf %0 : vector<32x128xf32> to vector<32x128xbf16>
    %c0_1 = arith.constant 0 : index
    %c0_2 = arith.constant 0 : index
    %2 = vector.load %arg2[%c0_1, %c0_2] : memref<128x128xbf16, #tpu.memory_space<vmem>>, vector<128x128xbf16>
    %cst = arith.constant dense<0.000000e+00> : vector<32x128xf32>
    %3 = tpu.matmul %1, %2, %cst {dimension_numbers = #tpu.dot_dimension_numbers<[1], [0], [0], [1], [0, 0, 1, 1], [], []>} : vector<32x128xbf16>, vector<128x128xbf16>, vector<32x128xf32> -> vector<32x128xf32>
    %c0_3 = arith.constant 0 : index
    %c0_4 = arith.constant 0 : index
    %4 = vector.load %arg3[%c0_3, %c0_4] : memref<1x128xf32, #tpu.memory_space<vmem>>, vector<1x128xf32>
    %5 = vector.broadcast %4 : vector<1x128xf32> to vector<32x128xf32>
    %6 = arith.addf %3, %5 : vector<32x128xf32>
    %cst_5 = arith.constant 5.000000e-01 : f32
    %7 = vector.broadcast %cst_5 : f32 to vector<32x128xf32>
    %8 = arith.mulf %7, %6 : vector<32x128xf32>
    %cst_6 = arith.constant 4.471500e-02 : f32
    %9 = vector.broadcast %cst_6 : f32 to vector<32x128xf32>
    %10 = arith.mulf %9, %6 : vector<32x128xf32>
    %11 = arith.mulf %10, %6 : vector<32x128xf32>
    %12 = arith.mulf %11, %6 : vector<32x128xf32>
    %13 = arith.addf %6, %12 : vector<32x128xf32>
    %cst_7 = arith.constant 0.797884583 : f32
    %14 = vector.broadcast %cst_7 : f32 to vector<32x128xf32>
    %15 = arith.mulf %14, %13 : vector<32x128xf32>
    %16 = math.tanh %15 : vector<32x128xf32>
    %cst_8 = arith.constant 1.000000e+00 : f32
    %17 = vector.broadcast %cst_8 : f32 to vector<32x128xf32>
    %18 = arith.addf %17, %16 : vector<32x128xf32>
    %19 = arith.mulf %8, %18 : vector<32x128xf32>
    %c0_9 = arith.constant 0 : index
    %c0_10 = arith.constant 0 : index
    %20 = vector.load %arg4[%c0_9, %c0_10] : memref<32x128xf32, #tpu.memory_space<vmem>>, vector<32x128xf32>
    tpu.vector_store %arg4[%c0_9, %c0_10], %19 {strides = array<i32>} : memref<32x128xf32, #tpu.memory_space<vmem>>, vector<32x128xf32>,
    return
  }
  func.func @transform_0(%arg0: i32) -> (i32, i32) {
    %c0_i32 = arith.constant 0 : i32
    %c0_i32_0 = arith.constant 0 : i32
    return %arg0, %c0_i32 : i32, i32
  }
  func.func @transform_1(%arg0: i32) -> (i32, i32) {
    %c0_i32 = arith.constant 0 : i32
    %c0_i32_0 = arith.constant 0 : i32
    %c0_i32_1 = arith.constant 0 : i32
    return %c0_i32, %c0_i32_0 : i32, i32
  }
  func.func @transform_2(%arg0: i32) -> (i32, i32) {
    %c0_i32 = arith.constant 0 : i32
    %c0_i32_0 = arith.constant 0 : i32
    %c0_i32_1 = arith.constant 0 : i32
    return %c0_i32, %c0_i32_0 : i32, i32
  }
  func.func @transform_3(%arg0: i32) -> (i32, i32) {
    %c0_i32 = arith.constant 0 : i32
    %c0_i32_0 = arith.constant 0 : i32
    return %arg0, %c0_i32 : i32, i32
  }
}

module attributes {stable_mosaic.version = 11 : i64} {
  func.func @_matmul_bias_act_kernel(%arg0: i32, %arg1: memref<8x128xf32, #tpu.memory_space<vmem>>, %arg2: memref<128x256xbf16, #tpu.memory_space<vmem>>, %arg3: memref<1x256xf32, #tpu.memory_space<vmem>>, %arg4: memref<8x256xf32, #tpu.memory_space<vmem>>) attributes {dimension_semantics = [#tpu.dimension_semantics<parallel>], iteration_bounds = array<i64: 1>, scalar_prefetch = 0 : i64, scratch_operands = 0 : i64, tpu.core_type = #tpu.core_type<tc>, window_params = [{transform_indices = @transform_0, window_bounds = array<i64: 8, 128>}, {pipeline_mode = #tpu.pipeline_mode<synchronous>, transform_indices = @transform_1, window_bounds = array<i64: 128, 256>}, {pipeline_mode = #tpu.pipeline_mode<synchronous>, transform_indices = @transform_2, window_bounds = array<i64: 1, 256>}, {transform_indices = @transform_3, window_bounds = array<i64: 8, 256>}]} {
    %c0 = arith.constant 0 : index
    %c0_0 = arith.constant 0 : index
    %0 = vector.load %arg1[%c0, %c0_0] : memref<8x128xf32, #tpu.memory_space<vmem>>, vector<8x128xf32>
    %1 = arith.truncf %0 : vector<8x128xf32> to vector<8x128xbf16>
    %c0_1 = arith.constant 0 : index
    %c0_2 = arith.constant 0 : index
    %2 = vector.load %arg2[%c0_1, %c0_2] : memref<128x256xbf16, #tpu.memory_space<vmem>>, vector<128x256xbf16>
    %cst = arith.constant dense<0.000000e+00> : vector<8x256xf32>
    %3 = tpu.matmul %1, %2, %cst {dimension_numbers = #tpu.dot_dimension_numbers<[1], [0], [0], [1], [0, 0, 1, 1], [], []>} : vector<8x128xbf16>, vector<128x256xbf16>, vector<8x256xf32> -> vector<8x256xf32>
    %c0_3 = arith.constant 0 : index
    %c0_4 = arith.constant 0 : index
    %4 = vector.load %arg3[%c0_3, %c0_4] : memref<1x256xf32, #tpu.memory_space<vmem>>, vector<1x256xf32>
    %5 = vector.broadcast %4 : vector<1x256xf32> to vector<8x256xf32>
    %6 = arith.addf %3, %5 : vector<8x256xf32>
    %c0_5 = arith.constant 0 : index
    %c0_6 = arith.constant 0 : index
    %7 = vector.load %arg4[%c0_5, %c0_6] : memref<8x256xf32, #tpu.memory_space<vmem>>, vector<8x256xf32>
    tpu.vector_store %arg4[%c0_5, %c0_6], %6 {strides = array<i32>} : memref<8x256xf32, #tpu.memory_space<vmem>>, vector<8x256xf32>,
    return
  }
  func.func @transform_0(%arg0: i32) -> (i32, i32) {
    %c0_i32 = arith.constant 0 : i32
    %c0_i32_0 = arith.constant 0 : i32
    return %arg0, %c0_i32 : i32, i32
  }
  func.func @transform_1(%arg0: i32) -> (i32, i32) {
    %c0_i32 = arith.constant 0 : i32
    %c0_i32_0 = arith.constant 0 : i32
    %c0_i32_1 = arith.constant 0 : i32
    return %c0_i32, %c0_i32_0 : i32, i32
  }
  func.func @transform_2(%arg0: i32) -> (i32, i32) {
    %c0_i32 = arith.constant 0 : i32
    %c0_i32_0 = arith.constant 0 : i32
    %c0_i32_1 = arith.constant 0 : i32
    return %c0_i32, %c0_i32_0 : i32, i32
  }
  func.func @transform_3(%arg0: i32) -> (i32, i32) {
    %c0_i32 = arith.constant 0 : i32
    %c0_i32_0 = arith.constant 0 : i32
    return %arg0, %c0_i32 : i32, i32
  }
}

</mosaic_0001>

<bundles_post_ra>
// kernel: decoder_forward.28
= control target key start
LH: loop header
LB: loop body
LE: loop exit
PB: predicated region body
PF: predicated region fallthrough
CT: control target
= control target key end

     0   :  { %s949_s1 = inlined_call_operand.vmem [shape: bf16[256,128], index: 1, kind: input, shape index: {}]   ;;  %s950_s0 = inlined_call_operand.vmem [shape: f32[128,256], index: 0, kind: input, shape index: {}]   ;;  %s951_s2 = inlined_call_operand.vmem [shape: f32[1,128], index: 2, kind: input, shape index: {}]   ;;  %s952_s3 = inlined_call_operand.vmem [shape: f32[128,128], index: 3, kind: output, shape index: {}]  }
   0x1   :  { %v556_v0 = vld [vmem:[%s949_s1 + $0x40] sm:$0xff]   ;;  %v558_v2 = vld [vmem:[%s949_s1 + $0x48] sm:$0xff]   ;;  %v560_v4 = vld [vmem:[%s949_s1 + $0x50] sm:$0xff]  }
   0x2   :  { %v557_v1 = vld [vmem:[%s949_s1] sm:$0xff]   ;;  %476 = vmatprep.subr.bf16.mxu0 %v556_v0  ;;  %540 = vmatprep.subr.bf16.mxu1 %v556_v0  ;;  %v559_v3 = vld [vmem:[%s949_s1 + $0x8] sm:$0xff]   ;;  %v561_v5 = vld [vmem:[%s949_s1 + $0x10] sm:$0xff]  }
   0x3   :  { %477 = vmatpush3.bf16.msra.mxu0 %v557_v1  ;;  %548 = vmatpush3.bf16.msra.mxu1 %v557_v1  ;;  %v562_v6 = vld [vmem:[%s949_s1 + $0x58] sm:$0xff]   ;;  %v564_v8 = vld [vmem:[%s949_s1 + $0x60] sm:$0xff]   ;;  %v566_v10 = vld [vmem:[%s949_s1 + $0x68] sm:$0xff]  }
   0x4   :  { %478 = vmatprep.subr.bf16.mxu0 %v558_v2  ;;  %541 = vmatprep.subr.bf16.mxu1 %v558_v2  ;;  %v563_v7 = vld [vmem:[%s949_s1 + $0x18] sm:$0xff]   ;;  %v565_v9 = vld [vmem:[%s949_s1 + $0x20] sm:$0xff]   ;;  %v16_v11 = vld [vmem:[%s950_s0 + $0x8] sm:$0xff] }
   0x5   :  { %v18_v12 = vld [vmem:[%s950_s0 + $0x18] sm:$0xff]  ;;  %v32_v13 = vld [vmem:[%s950_s0 + $0x88] sm:$0xff]  ;;  %v568_v18 = vld [vmem:[%s949_s1 + $0x70] sm:$0xff]  }
   0x6   :  { %v48_v14 = vpack.c.bf16 %v18_v12, %v16_v11  ;;  %v34_v15 = vld [vmem:[%s950_s0 + $0x98] sm:$0xff]  ;;  %v567_v17 = vld [vmem:[%s949_s1 + $0x28] sm:$0xff]   ;;  %v569_v19 = vld [vmem:[%s949_s1 + $0x30] sm:$0xff]  }
   0x7   :  { %479 = vmatpush3.bf16.msra.mxu0 %v559_v3  ;;  %549 = vmatpush3.bf16.msra.mxu1 %v559_v3  ;;  %v56_v16 = vpack.c.bf16 %v34_v15, %v32_v13  ;;  %v570_v20 = vld [vmem:[%s949_s1 + $0x78] sm:$0xff]   ;;  %v15_v22 = vld [vmem:[%s950_s0] sm:$0xff]  ;;  %v17_v23 = vld [vmem:[%s950_s0 + $0x10] sm:$0xff] }
   0x8   :  { %480 = vmatprep.subr.bf16.mxu0 %v560_v4  ;;  %542 = vmatprep.subr.bf16.mxu1 %v560_v4  ;;  %v571_v21 = vld [vmem:[%s949_s1 + $0x38] sm:$0xff]   ;;  %v31_v24 = vld [vmem:[%s950_s0 + $0x80] sm:$0xff]  ;;  %v33_v25 = vld [vmem:[%s950_s0 + $0x90] sm:$0xff]  ;;  %v47_v30 = vpack.c.bf16 %v17_v23, %v15_v22 }
   0x9   :  { %230 = vmatprep.mubr.bf16.mxu0 %v48_v14  ;;  %262 = vmatprep.mubr.bf16.mxu1 %v56_v16  ;;  %v20_v26 = vld [vmem:[%s950_s0 + $0x28] sm:$0xff]  ;;  %v22_v27 = vld [vmem:[%s950_s0 + $0x38] sm:$0xff]  ;;  %v55_v31 = vpack.c.bf16 %v33_v25, %v31_v24  ;;  %v19_v34 = vld [vmem:[%s950_s0 + $0x20] sm:$0xff] }
   0xa   :  { %v36_v28 = vld [vmem:[%s950_s0 + $0xa8] sm:$0xff]  ;;  %v38_v29 = vld [vmem:[%s950_s0 + $0xb8] sm:$0xff]  ;;  %v50_v32 = vpack.c.bf16 %v22_v27, %v20_v26  ;;  %v21_v35 = vld [vmem:[%s950_s0 + $0x30] sm:$0xff] }
   0xb   :  { %481 = vmatpush3.bf16.msra.mxu0 %v561_v5  ;;  %550 = vmatpush3.bf16.msra.mxu1 %v561_v5  ;;  %v58_v33 = vpack.c.bf16 %v38_v29, %v36_v28  ;;  %v35_v36 = vld [vmem:[%s950_s0 + $0xa0] sm:$0xff]  ;;  %v37_v37 = vld [vmem:[%s950_s0 + $0xb0] sm:$0xff]  ;;  %v24_v38 = vld [vmem:[%s950_s0 + $0x48] sm:$0xff]  ;;  %v49_v42 = vpack.c.bf16 %v21_v35, %v19_v34 }
   0xc   :  { %482 = vmatprep.subr.bf16.mxu0 %v562_v6  ;;  %543 = vmatprep.subr.bf16.mxu1 %v562_v6  ;;  %v26_v39 = vld [vmem:[%s950_s0 + $0x58] sm:$0xff]  ;;  %v40_v40 = vld [vmem:[%s950_s0 + $0xc8] sm:$0xff]  ;;  %v57_v43 = vpack.c.bf16 %v37_v37, %v35_v36  ;;  %v23_v46 = vld [vmem:[%s950_s0 + $0x40] sm:$0xff] }
   0xd   :  { %v42_v41 = vld [vmem:[%s950_s0 + $0xd8] sm:$0xff]  ;;  %v52_v44 = vpack.c.bf16 %v26_v39, %v24_v38  ;;  %v25_v47 = vld [vmem:[%s950_s0 + $0x50] sm:$0xff]  ;;  %v39_v48 = vld [vmem:[%s950_s0 + $0xc0] sm:$0xff] }
   0xe   :  { %v60_v45 = vpack.c.bf16 %v42_v41, %v40_v40  ;;  %v41_v49 = vld [vmem:[%s950_s0 + $0xd0] sm:$0xff]  ;;  %v28_v50 = vld [vmem:[%s950_s0 + $0x68] sm:$0xff]  ;;  %v30_v51 = vld [vmem:[%s950_s0 + $0x78] sm:$0xff]  ;;  %v51_v54 = vpack.c.bf16 %v25_v47, %v23_v46 }
   0xf   :  { %483 = vmatpush3.bf16.msra.mxu0 %v563_v7  ;;  %551 = vmatpush3.bf16.msra.mxu1 %v563_v7  ;;  %v44_v52 = vld [vmem:[%s950_s0 + $0xe8] sm:$0xff]  ;;  %v46_v53 = vld [vmem:[%s950_s0 + $0xf8] sm:$0xff]  ;;  %v59_v55 = vpack.c.bf16 %v41_v49, %v39_v48  ;;  %v54_v56 = vpack.c.bf16 %v30_v51, %v28_v50  ;;  %v27_v58 = vld [vmem:[%s950_s0 + $0x60] sm:$0xff] }
  0x10   :  { %484 = vmatprep.subr.bf16.mxu0 %v564_v8  ;;  %544 = vmatprep.subr.bf16.mxu1 %v564_v8  ;;  %v62_v57 = vpack.c.bf16 %v46_v53, %v44_v52  ;;  %v29_v59 = vld [vmem:[%s950_s0 + $0x70] sm:$0xff]  ;;  %v43_v60 = vld [vmem:[%s950_s0 + $0xe0] sm:$0xff] }
  0x11   :  { %v45_v61 = vld [vmem:[%s950_s0 + $0xf0] sm:$0xff]  ;;  %v53_v62 = vpack.c.bf16 %v29_v59, %v27_v58  ;;  %v771_v2 = vld [vmem:[%s951_s2] ss:$0 sm:$0xff] }
  0x12   :  { %v61_v63 = vpack.c.bf16 %v45_v61, %v43_v60 }
  0x13   :  { %485 = vmatpush3.bf16.msra.mxu0 %v565_v9  ;;  %552 = vmatpush3.bf16.msra.mxu1 %v565_v9 }
  0x14   :  { %486 = vmatprep.subr.bf16.mxu0 %v566_v10  ;;  %545 = vmatprep.subr.bf16.mxu1 %v566_v10 }
  0x17   :  { %487 = vmatpush3.bf16.msra.mxu0 %v567_v17  ;;  %553 = vmatpush3.bf16.msra.mxu1 %v567_v17 }
  0x18   :  { %488 = vmatprep.subr.bf16.mxu0 %v568_v18  ;;  %546 = vmatprep.subr.bf16.mxu1 %v568_v18 }
  0x1b   :  { %489 = vmatpush3.bf16.msra.mxu0 %v569_v19  ;;  %554 = vmatpush3.bf16.msra.mxu1 %v569_v19 }
  0x1c   :  { %490 = vmatprep.subr.bf16.mxu0 %v570_v20  ;;  %547 = vmatprep.subr.bf16.mxu1 %v570_v20 }
  0x1f   :  { %491 = vmatpush3.bf16.msra.mxu0 %v571_v21  ;;  %555 = vmatpush3.bf16.msra.mxu1 %v571_v21 }
  0x22   :  { %231 = vmatmul.mubr.bf16.vlgmr.msra.gmra.mrb[0].mxu0 %v47_v30  ;;  %263 = vmatmul.mubr.bf16.vlgmr.msra.gmra.mrb[0].mxu1 %v55_v31 }
  0x23   :  { %238 = vmatprep.mubr.bf16.mxu0 %v50_v32  ;;  %270 = vmatprep.mubr.bf16.mxu1 %v58_v33 }
  0x2a   :  { %239 = vmatmul.mubr.bf16.gmra.mrb[4].mxu0 %v49_v42  ;;  %271 = vmatmul.mubr.bf16.gmra.mrb[4].mxu1 %v57_v43 }
  0x2b   :  { %246 = vmatprep.mubr.bf16.mxu0 %v52_v44  ;;  %278 = vmatprep.mubr.bf16.mxu1 %v60_v45 }
  0x32   :  { %247 = vmatmul.mubr.bf16.gmra.mrb[8].mxu0 %v51_v54  ;;  %279 = vmatmul.mubr.bf16.gmra.mrb[8].mxu1 %v59_v55 }
  0x33   :  { %254 = vmatprep.mubr.bf16.mxu0 %v54_v56  ;;  %286 = vmatprep.mubr.bf16.mxu1 %v62_v57 }
  0x3a   :  { %255 = vmatmul.mubr.bf16.gmra.mrb[12].mxu0 %v53_v62  ;;  %287 = vmatmul.mubr.bf16.gmra.mrb[12].mxu1 %v61_v63 }
  0xf5   :  { %v492_v0 = vpop.f32.mrb[0].mxu0  ;;  %v516_v1 = vpop.f32.mrb[0].mxu1 }
  0xf6   :  { %v493_v3 = vpop.f32.mrb[1].mxu0  ;;  %v517_v4 = vpop.f32.mrb[1].mxu1 }
  0xf7   :  { %v494_v5 = vadd.f32 %v493_v3, %v492_v0  ;;  %v518_v6 = vadd.f32 %v517_v4, %v516_v1  ;;  %v495_v7 = vpop.f32.mrb[2].mxu0  ;;  %v519_v8 = vpop.f32.mrb[2].mxu1 }
  0xf8   :  { %v496_v9 = vpop.f32.mrb[3].mxu0  ;;  %v520_v10 = vpop.f32.mrb[3].mxu1 }
  0xf9   :  { %v774_v11 = vadd.f32 %v494_v5, %v771_v2  ;;  %v777_v12 = vadd.f32 %v518_v6, %v771_v2  ;;  %v497_v13 = vadd.f32 %v496_v9, %v495_v7  ;;  %v521_v14 = vadd.f32 %v520_v10, %v519_v8 }
  0xfb   :  { %v311_v15 = vmul.f32 0.044715, %v774_v11  ;;  %v319_v16 = vmul.f32 0.044715, %v777_v12  ;;  %v782_v17 = vadd.f32 %v497_v13, %v771_v2  ;;  %v785_v18 = vadd.f32 %v521_v14, %v771_v2 }
  0xfd   :  { %v327_v19 = vmul.f32 %v311_v15, %v774_v11  ;;  %v335_v20 = vmul.f32 %v319_v16, %v777_v12  ;;  %v498_v21 = vpop.f32.mrb[4].mxu0  ;;  %v522_v22 = vpop.f32.mrb[4].mxu1  ;;  %v312_v23 = vmul.f32 0.044715, %v782_v17  ;;  %v320_v24 = vmul.f32 0.044715, %v785_v18 }
  0xfe   :  { %v499_v27 = vpop.f32.mrb[5].mxu0  ;;  %v523_v28 = vpop.f32.mrb[5].mxu1 }
  0xff   :  { %v343_v25 = vmul.f32 %v327_v19, %v774_v11  ;;  %v351_v26 = vmul.f32 %v335_v20, %v777_v12  ;;  %v328_v29 = vmul.f32 %v312_v23, %v782_v17  ;;  %v336_v30 = vmul.f32 %v320_v24, %v785_v18  ;;  %v501_v33 = vpop.f32.mrb[6].mxu0  ;;  %v525_v34 = vpop.f32.mrb[6].mxu1 }
 0x100   :  { %v500_v31 = vadd.f32 %v499_v27, %v498_v21  ;;  %v524_v32 = vadd.f32 %v523_v28, %v522_v22  ;;  %v502_v37 = vpop.f32.mrb[7].mxu0  ;;  %v526_v38 = vpop.f32.mrb[7].mxu1  ;;  %v295_v20 = vmul.f32 0.5, %v774_v11  ;;  %v303_v24 = vmul.f32 0.5, %v777_v12 }
 0x101   :  { %v359_v35 = vadd.f32 %v343_v25, %v774_v11  ;;  %v367_v36 = vadd.f32 %v351_v26, %v777_v12  ;;  %v344_v39 = vmul.f32 %v328_v29, %v782_v17  ;;  %v352_v40 = vmul.f32 %v336_v30, %v785_v18 }
 0x102   :  { %v800_v41 = vadd.f32 %v500_v31, %v771_v2  ;;  %v803_v42 = vadd.f32 %v524_v32, %v771_v2  ;;  %v503_v45 = vadd.f32 %v502_v37, %v501_v33  ;;  %v527_v46 = vadd.f32 %v526_v38, %v525_v34 }
 0x103   :  { %v375_v43 = vmul.f32 0.7978846, %v359_v35  ;;  %v383_v44 = vmul.f32 0.7978846, %v367_v36  ;;  %v360_v47 = vadd.f32 %v344_v39, %v782_v17  ;;  %v368_v48 = vadd.f32 %v352_v40, %v785_v18 }
 0x104   :  { %v313_v49 = vmul.f32 0.044715, %v800_v41  ;;  %v321_v50 = vmul.f32 0.044715, %v803_v42  ;;  %v810_v51 = vadd.f32 %v503_v45, %v771_v2  ;;  %v816_v61 = vadd.f32 %v527_v46, %v771_v2 }
 0x105   :  { %572 = vtanh.f32 %v375_v43  ;;  %v504_v52 = vpop.f32.mrb[8].mxu0  ;;  %v528_v53 = vpop.f32.mrb[8].mxu1  ;;  %v376_v54 = vmul.f32 0.7978846, %v360_v47  ;;  %v384_v55 = vmul.f32 0.7978846, %v368_v48 }
 0x106   :  { %574 = vtanh.f32 %v383_v44  ;;  %v329_v56 = vmul.f32 %v313_v49, %v800_v41  ;;  %v505_v57 = vpop.f32.mrb[9].mxu0  ;;  %v529_v58 = vpop.f32.mrb[9].mxu1  ;;  %v337_v59 = vmul.f32 %v321_v50, %v803_v42  ;;  %v314_v60 = vmul.f32 0.044715, %v810_v51 }
 0x107   :  { %v507_v62 = vpop.f32.mrb[10].mxu0  ;;  %v531_v63 = vpop.f32.mrb[10].mxu1  ;;  %576 = vtanh.f32 %v376_v54  ;;  %v506_v1 = vadd.f32 %v505_v57, %v504_v52  ;;  %v530_v3 = vadd.f32 %v529_v58, %v528_v53  ;;  %v322_v9 = vmul.f32 0.044715, %v816_v61 }
 0x108   :  { %v345_v0 = vmul.f32 %v329_v56, %v800_v41  ;;  %v508_v4 = vpop.f32.mrb[11].mxu0  ;;  %v532_v5 = vpop.f32.mrb[11].mxu1  ;;  %578 = vtanh.f32 %v384_v55  ;;  %v353_v6 = vmul.f32 %v337_v59, %v803_v42  ;;  %v330_v7 = vmul.f32 %v314_v60, %v810_v51 }
 0x109   :  { %v824_v10 = vadd.f32 %v506_v1, %v771_v2  ;;  %v827_v13 = vadd.f32 %v530_v3, %v771_v2  ;;  %v509_v16 = vadd.f32 %v508_v4, %v507_v62  ;;  %v533_v19 = vadd.f32 %v532_v5, %v531_v63 }
 0x10a   :  { %v361_v8 = vadd.f32 %v345_v0, %v800_v41  ;;  %v369_v14 = vadd.f32 %v353_v6, %v803_v42  ;;  %v346_v15 = vmul.f32 %v330_v7, %v810_v51  ;;  %v338_v22 = vmul.f32 %v322_v9, %v816_v61 }
 0x10b   :  { %v315_v23 = vmul.f32 0.044715, %v824_v10  ;;  %v323_v27 = vmul.f32 0.044715, %v827_v13  ;;  %v840_v11 = vadd.f32 %v509_v16, %v771_v2  ;;  %v296_v34 = vmul.f32 0.5, %v782_v17 }
 0x10c   :  { %v377_v21 = vmul.f32 0.7978846, %v361_v8  ;;  %v385_v25 = vmul.f32 0.7978846, %v369_v14  ;;  %v362_v26 = vadd.f32 %v346_v15, %v810_v51  ;;  %v354_v29 = vmul.f32 %v338_v22, %v816_v61 }
 0x10d   :  { %v510_v28 = vpop.f32.mrb[12].mxu0  ;;  %v331_v30 = vmul.f32 %v315_v23, %v824_v10  ;;  %v534_v31 = vpop.f32.mrb[12].mxu1  ;;  %v339_v35 = vmul.f32 %v323_v27, %v827_v13  ;;  %v847_v44 = vadd.f32 %v533_v19, %v771_v2  ;;  %v316_v48 = vmul.f32 0.044715, %v840_v11 }
 0x10e   :  { %580 = vtanh.f32 %v377_v21  ;;  %v511_v32 = vpop.f32.mrb[13].mxu0  ;;  %v378_v12 = vmul.f32 0.7978846, %v362_v26  ;;  %v535_v36 = vpop.f32.mrb[13].mxu1  ;;  %v370_v40 = vadd.f32 %v354_v29, %v816_v61  ;;  %v304_v53 = vmul.f32 0.5, %v785_v18 }
 0x10f   :  { %v573_v33 = vpop.eup %572  ;;  %582 = vtanh.f32 %v385_v25  ;;  %v513_v37 = vpop.f32.mrb[14].mxu0  ;;  %v347_v43 = vmul.f32 %v331_v30, %v824_v10  ;;  %v355_v17 = vmul.f32 %v339_v35, %v827_v13  ;;  %v332_v60 = vmul.f32 %v316_v48, %v840_v11 }
 0x110   :  { %v575_v38 = vpop.eup %574  ;;  %v407_v39 = vadd.f32 1.0, %v573_v33  ;;  %v537_v45 = vpop.f32.mrb[14].mxu1  ;;  %584 = vtanh.f32 %v378_v12  ;;  %v386_v54 = vmul.f32 0.7978846, %v370_v40  ;;  %v324_v0 = vmul.f32 0.044715, %v847_v44 }
 0x111   :  { %v514_v46 = vpop.f32.mrb[15].mxu0  ;;  %v415_v47 = vadd.f32 1.0, %v575_v38  ;;  %v538_v49 = vpop.f32.mrb[15].mxu1  ;;  %v363_v55 = vadd.f32 %v347_v43, %v824_v10  ;;  %v371_v59 = vadd.f32 %v355_v17, %v827_v13  ;;  %v348_v3 = vmul.f32 %v332_v60, %v840_v11 }
 0x112   :  { %v577_v50 = vpop.eup %576  ;;  %v423_v52 = vmul.f32 %v407_v39, %v295_v20  ;;  %586 = vtanh.f32 %v386_v54  ;;  %v512_v4 = vadd.f32 %v511_v32, %v510_v28  ;;  %v340_v6 = vmul.f32 %v324_v0, %v847_v44 }
 0x113   :  { %v579_v56 = vpop.eup %578  ;;  %v431_v57 = vmul.f32 %v415_v47, %v303_v24  ;;  %v408_v58 = vadd.f32 1.0, %v577_v50  ;;  %v379_v63 = vmul.f32 0.7978846, %v363_v55  ;;  %v387_v1 = vmul.f32 0.7978846, %v371_v59 }
 0x114   :  { %439 = vst [vmem:[%s952_s3] sm:$0xff] %v423_v52  ;;  %v416_v62 = vadd.f32 1.0, %v579_v56  ;;  %v536_v7 = vadd.f32 %v535_v36, %v534_v31  ;;  %v364_v8 = vadd.f32 %v348_v3, %v840_v11  ;;  %v869_v9 = vadd.f32 %v512_v4, %v771_v2 }
 0x115   :  { %447 = vst [vmem:[%s952_s3 + $0x40] sm:$0xff] %v431_v57  ;;  %v424_v18 = vmul.f32 %v408_v58, %v296_v34  ;;  %588 = vtanh.f32 %v379_v63  ;;  %v515_v14 = vadd.f32 %v514_v46, %v513_v37  ;;  %v297_v16 = vmul.f32 0.5, %v800_v41 }
 0x116   :  { %v432_v5 = vmul.f32 %v416_v62, %v304_v53  ;;  %590 = vtanh.f32 %v387_v1  ;;  %v356_v19 = vmul.f32 %v340_v6, %v847_v44  ;;  %v877_v20 = vadd.f32 %v536_v7, %v771_v2 }
 0x117   :  { %440 = vst [vmem:[%s952_s3 + $0x8] sm:$0xff] %v424_v18  ;;  %v539_v21 = vadd.f32 %v538_v49, %v537_v45  ;;  %v305_v24 = vmul.f32 0.5, %v803_v42  ;;  %v380_v25 = vmul.f32 0.7978846, %v364_v8  ;;  %v317_v26 = vmul.f32 0.044715, %v869_v9 }
 0x118   :  { %v581_v15 = vpop.eup %580  ;;  %448 = vst [vmem:[%s952_s3 + $0x48] sm:$0xff] %v432_v5  ;;  %v298_v28 = vmul.f32 0.5, %v810_v51  ;;  %v372_v29 = vadd.f32 %v356_v19, %v847_v44  ;;  %v325_v41 = vmul.f32 0.044715, %v877_v20  ;;  %v886_v33 = vadd.f32 %v515_v14, %v771_v2 }
 0x119   :  { %v583_v22 = vpop.eup %582  ;;  %v409_v23 = vadd.f32 1.0, %v581_v15  ;;  %592 = vtanh.f32 %v380_v25  ;;  %v333_v32 = vmul.f32 %v317_v26, %v869_v9  ;;  %v895_v37 = vadd.f32 %v539_v21, %v771_v2 }
 0x11a   :  { %v417_v27 = vadd.f32 1.0, %v583_v22  ;;  %v585_v30 = vpop.eup %584  ;;  %v388_v12 = vmul.f32 0.7978846, %v372_v29  ;;  %v341_v35 = vmul.f32 %v325_v41, %v877_v20  ;;  %v318_v36 = vmul.f32 0.044715, %v886_v33 }
 0x11b   :  { %v425_v31 = vmul.f32 %v409_v23, %v297_v16  ;;  %v410_v42 = vadd.f32 1.0, %v585_v30  ;;  %v349_v51 = vmul.f32 %v333_v32, %v869_v9  ;;  %v306_v43 = vmul.f32 0.5, %v816_v61 }
 0x11c   :  { %v433_v34 = vmul.f32 %v417_v27, %v305_v24  ;;  %v587_v38 = vpop.eup %586  ;;  %594 = vtanh.f32 %v388_v12  ;;  %v357_v40 = vmul.f32 %v341_v35, %v877_v20  ;;  %v334_v47 = vmul.f32 %v318_v36, %v886_v33 }
 0x11d   :  { %441 = vst [vmem:[%s952_s3 + $0x10] sm:$0xff] %v425_v31  ;;  %v426_v39 = vmul.f32 %v410_v42, %v298_v28  ;;  %v418_v45 = vadd.f32 1.0, %v587_v38  ;;  %v365_v46 = vadd.f32 %v349_v51, %v869_v9  ;;  %v299_v2 = vmul.f32 0.5, %v824_v10 }
 0x11e   :  { %449 = vst [vmem:[%s952_s3 + $0x50] sm:$0xff] %v433_v34  ;;  %v373_v48 = vadd.f32 %v357_v40, %v877_v20  ;;  %v326_v49 = vmul.f32 0.044715, %v895_v37  ;;  %v350_v54 = vmul.f32 %v334_v47, %v886_v33  ;;  %v307_v55 = vmul.f32 0.5, %v827_v13 }
 0x11f   :  { %v589_v17 = vpop.eup %588  ;;  %442 = vst [vmem:[%s952_s3 + $0x18] sm:$0xff] %v426_v39  ;;  %v434_v52 = vmul.f32 %v418_v45, %v306_v43  ;;  %v381_v61 = vmul.f32 0.7978846, %v365_v46  ;;  %v300_v0 = vmul.f32 0.5, %v840_v11  ;;  %v308_v6 = vmul.f32 0.5, %v847_v44 }
 0x120   :  { %v591_v50 = vpop.eup %590  ;;  %v411_v53 = vadd.f32 1.0, %v589_v17  ;;  %v389_v57 = vmul.f32 0.7978846, %v373_v48  ;;  %v342_v58 = vmul.f32 %v326_v49, %v895_v37  ;;  %v366_v59 = vadd.f32 %v350_v54, %v886_v33 }
 0x121   :  { %v419_v56 = vadd.f32 1.0, %v591_v50  ;;  %450 = vst [vmem:[%s952_s3 + $0x58] sm:$0xff] %v434_v52  ;;  %596 = vtanh.f32 %v381_v61  ;;  %v301_v15 = vmul.f32 0.5, %v869_v9  ;;  %v309_v19 = vmul.f32 0.5, %v877_v20 }
 0x122   :  { %v427_v10 = vmul.f32 %v411_v53, %v299_v2  ;;  %598 = vtanh.f32 %v389_v57  ;;  %v358_v62 = vmul.f32 %v342_v58, %v895_v37  ;;  %v382_v13 = vmul.f32 0.7978846, %v366_v59 }
 0x123   :  { %v435_v60 = vmul.f32 %v419_v56, %v307_v55  ;;  %v593_v63 = vpop.eup %592  ;;  %v302_v24 = vmul.f32 0.5, %v886_v33  ;;  %v310_v27 = vmul.f32 0.5, %v895_v37 }
 0x124   :  { %443 = vst [vmem:[%s952_s3 + $0x20] sm:$0xff] %v427_v10  ;;  %v412_v18 = vadd.f32 1.0, %v593_v63  ;;  %v374_v1 = vadd.f32 %v358_v62, %v895_v37  ;;  %600 = vtanh.f32 %v382_v13 }
 0x125   :  { %451 = vst [vmem:[%s952_s3 + $0x60] sm:$0xff] %v435_v60 }
 0x126   :  { %v595_v3 = vpop.eup %594  ;;  %v428_v4 = vmul.f32 %v412_v18, %v300_v0  ;;  %v390_v5 = vmul.f32 0.7978846, %v374_v1 }
 0x127   :  { %v420_v7 = vadd.f32 1.0, %v595_v3 }
 0x128   :  { %444 = vst [vmem:[%s952_s3 + $0x28] sm:$0xff] %v428_v4  ;;  %602 = vtanh.f32 %v390_v5 }
 0x129   :  { %v436_v8 = vmul.f32 %v420_v7, %v308_v6 }
 0x12b   :  { %v597_v14 = vpop.eup %596  ;;  %452 = vst [vmem:[%s952_s3 + $0x68] sm:$0xff] %v436_v8 }
 0x12c   :  { %v599_v11 = vpop.eup %598  ;;  %v413_v16 = vadd.f32 1.0, %v597_v14 }
 0x12d   :  { %v421_v21 = vadd.f32 1.0, %v599_v11 }
 0x12e   :  { %v429_v44 = vmul.f32 %v413_v16, %v301_v15  ;;  %v601_v22 = vpop.eup %600 }
 0x12f   :  { %v437_v23 = vmul.f32 %v421_v21, %v309_v19  ;;  %v414_v25 = vadd.f32 1.0, %v601_v22 }
 0x130   :  { %445 = vst [vmem:[%s952_s3 + $0x30] sm:$0xff] %v429_v44 }
 0x131   :  { %453 = vst [vmem:[%s952_s3 + $0x70] sm:$0xff] %v437_v23  ;;  %v430_v9 = vmul.f32 %v414_v25, %v302_v24 }
 0x132   :  { %v603_v26 = vpop.eup %602 }
 0x133   :  { %v422_v20 = vadd.f32 1.0, %v603_v26  ;;  %446 = vst [vmem:[%s952_s3 + $0x38] sm:$0xff] %v430_v9 }
 0x135   :  { %v438_v28 = vmul.f32 %v422_v20, %v310_v27 }
 0x137   :  { %454 = vst [vmem:[%s952_s3 + $0x78] sm:$0xff] %v438_v28 }

// kernel: decoder_forward.30
= control target key start
LH: loop header
LB: loop body
LE: loop exit
PB: predicated region body
PF: predicated region fallthrough
CT: control target
= control target key end

     0   :  { %s267_s1 = inlined_call_operand.vmem [shape: bf16[128,128], index: 1, kind: input, shape index: {}]   ;;  %s268_s0 = inlined_call_operand.vmem [shape: f32[32,128], index: 0, kind: input, shape index: {}]   ;;  %s269_s2 = inlined_call_operand.vmem [shape: f32[1,128], index: 2, kind: input, shape index: {}]   ;;  %s270_s3 = inlined_call_operand.vmem [shape: f32[32,128], index: 3, kind: output, shape index: {}]  }
   0x1   :  { %v188_v0 = vld [vmem:[%s267_s1] sm:$0xff]   ;;  %v189_v1 = vld [vmem:[%s267_s1 + $0x8] sm:$0xff]   ;;  %v190_v2 = vld [vmem:[%s267_s1 + $0x10] sm:$0xff]  }
   0x2   :  { %168 = vmatprep.subr.bf16.mxu0 %v188_v0  ;;  %v191_v3 = vld [vmem:[%s267_s1 + $0x18] sm:$0xff]   ;;  %v15_v4 = vld [vmem:[%s268_s0] sm:$0xff]  ;;  %v16_v5 = vld [vmem:[%s268_s0 + $0x8] sm:$0xff] }
   0x3   :  { %169 = vmatpush3.bf16.msra.mxu0 %v188_v0  ;;  %v19_v6 = vpack.c.bf16 %v16_v5, %v15_v4  ;;  %v192_v7 = vld [vmem:[%s267_s1 + $0x20] sm:$0xff]   ;;  %v193_v8 = vld [vmem:[%s267_s1 + $0x28] sm:$0xff]   ;;  %v194_v9 = vld [vmem:[%s267_s1 + $0x30] sm:$0xff]  }
   0x4   :  { %170 = vmatprep.subr.bf16.mxu0 %v189_v1  ;;  %v195_v10 = vld [vmem:[%s267_s1 + $0x38] sm:$0xff]   ;;  %v17_v11 = vld [vmem:[%s268_s0 + $0x10] sm:$0xff]  ;;  %v149_v14 = vld [vmem:[%s269_s2] ss:$0 sm:$0xff] }
   0x5   :  { %184 = vmatprep.mubr.bf16.mxu0 %v19_v6  ;;  %v18_v12 = vld [vmem:[%s268_s0 + $0x18] sm:$0xff] }
   0x6   :  { %v20_v13 = vpack.c.bf16 %v18_v12, %v17_v11 }
   0x7   :  { %171 = vmatpush3.bf16.msra.mxu0 %v189_v1 }
   0x8   :  { %172 = vmatprep.subr.bf16.mxu0 %v190_v2 }
   0xb   :  { %173 = vmatpush3.bf16.msra.mxu0 %v190_v2 }
   0xc   :  { %174 = vmatprep.subr.bf16.mxu0 %v191_v3 }
   0xf   :  { %175 = vmatpush3.bf16.msra.mxu0 %v191_v3 }
  0x10   :  { %176 = vmatprep.subr.bf16.mxu0 %v192_v7 }
  0x13   :  { %177 = vmatpush3.bf16.msra.mxu0 %v192_v7 }
  0x14   :  { %178 = vmatprep.subr.bf16.mxu0 %v193_v8 }
  0x17   :  { %179 = vmatpush3.bf16.msra.mxu0 %v193_v8 }
  0x18   :  { %180 = vmatprep.subr.bf16.mxu0 %v194_v9 }
  0x1b   :  { %181 = vmatpush3.bf16.msra.mxu0 %v194_v9 }
  0x1c   :  { %182 = vmatprep.subr.bf16.mxu0 %v195_v10 }
  0x1f   :  { %183 = vmatpush3.bf16.msra.mxu0 %v195_v10 }
  0x22   :  { %185 = vmatmul.mubr.bf16.vlgmr.msra.gmra.mrb[0].mxu0 %v20_v13 }
  0xf5   :  { %v186_v15 = vpop.f32.mrb[0].mxu0 }
  0xf6   :  { %v135_v16 = vadd.f32 %v186_v15, %v149_v14  ;;  %v126_v17 = vpop.f32.mrb[1].mxu0 }
  0xf7   :  { %v127_v18 = vadd.f32 %v149_v14, %v126_v17  ;;  %v187_v19 = vpop.f32.mrb[2].mxu0 }
  0xf8   :  { %143 = vst [vmem:[%s270_s3 + $0x10] sm:$0xff] %v135_v16  ;;  %v138_v20 = vadd.f32 %v187_v19, %v149_v14  ;;  %v129_v21 = vpop.f32.mrb[3].mxu0 }
  0xf9   :  { %141 = vst [vmem:[%s270_s3] sm:$0xff] %v127_v18  ;;  %v130_v22 = vadd.f32 %v149_v14, %v129_v21 }
  0xfa   :  { %144 = vst [vmem:[%s270_s3 + $0x18] sm:$0xff] %v138_v20 }
  0xfb   :  { %142 = vst [vmem:[%s270_s3 + $0x8] sm:$0xff] %v130_v22 }

// kernel: decoder_forward.29
= control target key start
LH: loop header
LB: loop body
LE: loop exit
PB: predicated region body
PF: predicated region fallthrough
CT: control target
= control target key end

     0   :  { %s632_s1 = inlined_call_operand.vmem [shape: bf16[384,128], index: 1, kind: input, shape index: {}]   ;;  %s633_s0 = inlined_call_operand.vmem [shape: f32[32,384], index: 0, kind: input, shape index: {}]   ;;  %s634_s2 = inlined_call_operand.vmem [shape: f32[1,128], index: 2, kind: input, shape index: {}]   ;;  %s635_s3 = inlined_call_operand.vmem [shape: f32[32,128], index: 3, kind: output, shape index: {}]  }
   0x1   :  { %v457_v0 = vld [vmem:[%s632_s1 + $0x40] sm:$0xff]   ;;  %v459_v2 = vld [vmem:[%s632_s1 + $0x48] sm:$0xff]   ;;  %v462_v5 = vld [vmem:[%s632_s1 + $0x50] sm:$0xff]  }
   0x2   :  { %v458_v1 = vld [vmem:[%s632_s1] sm:$0xff]   ;;  %399 = vmatprep.subr.bf16.mxu0 %v457_v0  ;;  %v461_v4 = vld [vmem:[%s632_s1 + $0x8] sm:$0xff]   ;;  %v464_v7 = vld [vmem:[%s632_s1 + $0x10] sm:$0xff]  }
   0x3   :  { %400 = vmatpush3.bf16.msra.mxu0 %v458_v1  ;;  %v460_v3 = vld [vmem:[%s632_s1 + $0x80] sm:$0xff]   ;;  %v463_v6 = vld [vmem:[%s632_s1 + $0x88] sm:$0xff]   ;;  %v465_v8 = vld [vmem:[%s632_s1 + $0x58] sm:$0xff]  }
   0x4   :  { %401 = vmatprep.subr.bf16.mxu0 %v459_v2  ;;  %437 = vmatprep.subr.bf16.mxu1 %v460_v3  ;;  %v466_v9 = vld [vmem:[%s632_s1 + $0x90] sm:$0xff]   ;;  %v467_v10 = vld [vmem:[%s632_s1 + $0x18] sm:$0xff]   ;;  %v468_v11 = vld [vmem:[%s632_s1 + $0x60] sm:$0xff]  }
   0x5   :  { %438 = vmatpush3.bf16.msra.mxu1 %v460_v3  ;;  %v469_v12 = vld [vmem:[%s632_s1 + $0x98] sm:$0xff]   ;;  %v470_v13 = vld [vmem:[%s632_s1 + $0x20] sm:$0xff]   ;;  %v471_v15 = vld [vmem:[%s632_s1 + $0x68] sm:$0xff]  }
   0x6   :  { %439 = vmatprep.subr.bf16.mxu1 %v463_v6  ;;  %v472_v14 = vld [vmem:[%s632_s1 + $0xa0] sm:$0xff]   ;;  %v473_v16 = vld [vmem:[%s632_s1 + $0x28] sm:$0xff]   ;;  %v474_v18 = vld [vmem:[%s632_s1 + $0x70] sm:$0xff]  }
   0x7   :  { %402 = vmatpush3.bf16.msra.mxu0 %v461_v4  ;;  %v475_v17 = vld [vmem:[%s632_s1 + $0xa8] sm:$0xff]   ;;  %v476_v19 = vld [vmem:[%s632_s1 + $0x30] sm:$0xff]   ;;  %v19_v22 = vld [vmem:[%s633_s0 + $0x20] sm:$0xff] }
   0x8   :  { %403 = vmatprep.subr.bf16.mxu0 %v462_v5  ;;  %v478_v20 = vld [vmem:[%s632_s1 + $0xb0] sm:$0xff]   ;;  %v16_v21 = vld [vmem:[%s633_s0 + $0x8] sm:$0xff]  ;;  %v477_v23 = vld [vmem:[%s632_s1 + $0x78] sm:$0xff]  }
   0x9   :  { %440 = vmatpush3.bf16.msra.mxu1 %v463_v6  ;;  %v28_v24 = vpack.c.bf16 %v19_v22, %v16_v21  ;;  %v17_v25 = vld [vmem:[%s633_s0 + $0x10] sm:$0xff]  ;;  %v20_v26 = vld [vmem:[%s633_s0 + $0x28] sm:$0xff]  ;;  %v479_v27 = vld [vmem:[%s632_s1 + $0x38] sm:$0xff]  }
   0xa   :  { %441 = vmatprep.subr.bf16.mxu1 %v466_v9  ;;  %v29_v28 = vpack.c.bf16 %v20_v26, %v17_v25  ;;  %v15_v29 = vld [vmem:[%s633_s0] sm:$0xff]  ;;  %v18_v30 = vld [vmem:[%s633_s0 + $0x18] sm:$0xff]  ;;  %v25_v33 = vld [vmem:[%s633_s0 + $0x50] sm:$0xff] }
   0xb   :  { %404 = vmatpush3.bf16.msra.mxu0 %v464_v7  ;;  %264 = vmatprep.mubr.bf16.mxu0 %v28_v24  ;;  %v480_v31 = vld [vmem:[%s632_s1 + $0xb8] sm:$0xff]   ;;  %v27_v34 = vpack.c.bf16 %v18_v30, %v15_v29  ;;  %v23_v35 = vld [vmem:[%s633_s0 + $0x40] sm:$0xff]  ;;  %v21_v39 = vld [vmem:[%s633_s0 + $0x30] sm:$0xff] }
   0xc   :  { %405 = vmatprep.subr.bf16.mxu0 %v465_v8  ;;  %453 = vmatprep.mubr.bf16.mxu1 %v29_v28  ;;  %v22_v32 = vld [vmem:[%s633_s0 + $0x38] sm:$0xff]  ;;  %v24_v40 = vld [vmem:[%s633_s0 + $0x48] sm:$0xff]  ;;  %v374_v44 = vld [vmem:[%s634_s2] ss:$0 sm:$0xff] }
   0xd   :  { %442 = vmatpush3.bf16.msra.mxu1 %v466_v9  ;;  %v26_v36 = vld [vmem:[%s633_s0 + $0x58] sm:$0xff]  ;;  %v31_v37 = vpack.c.bf16 %v25_v33, %v22_v32  ;;  %v30_v41 = vpack.c.bf16 %v24_v40, %v21_v39 }
   0xe   :  { %443 = vmatprep.subr.bf16.mxu1 %v469_v12  ;;  %v32_v38 = vpack.c.bf16 %v26_v36, %v23_v35 }
   0xf   :  { %406 = vmatpush3.bf16.msra.mxu0 %v467_v10 }
  0x10   :  { %407 = vmatprep.subr.bf16.mxu0 %v468_v11 }
  0x11   :  { %444 = vmatpush3.bf16.msra.mxu1 %v469_v12 }
  0x12   :  { %445 = vmatprep.subr.bf16.mxu1 %v472_v14 }
  0x13   :  { %408 = vmatpush3.bf16.msra.mxu0 %v470_v13 }
  0x14   :  { %409 = vmatprep.subr.bf16.mxu0 %v471_v15 }
  0x15   :  { %446 = vmatpush3.bf16.msra.mxu1 %v472_v14 }
  0x16   :  { %447 = vmatprep.subr.bf16.mxu1 %v475_v17 }
  0x17   :  { %410 = vmatpush3.bf16.msra.mxu0 %v473_v16 }
  0x18   :  { %411 = vmatprep.subr.bf16.mxu0 %v474_v18 }
  0x19   :  { %448 = vmatpush3.bf16.msra.mxu1 %v475_v17 }
  0x1a   :  { %449 = vmatprep.subr.bf16.mxu1 %v478_v20 }
  0x1b   :  { %412 = vmatpush3.bf16.msra.mxu0 %v476_v19 }
  0x1c   :  { %413 = vmatprep.subr.bf16.mxu0 %v477_v23 }
  0x1d   :  { %450 = vmatpush3.bf16.msra.mxu1 %v478_v20 }
  0x1e   :  { %451 = vmatprep.subr.bf16.mxu1 %v480_v31 }
  0x1f   :  { %414 = vmatpush3.bf16.msra.mxu0 %v479_v27 }
  0x21   :  { %452 = vmatpush3.bf16.msra.mxu1 %v480_v31 }
  0x22   :  { %265 = vmatmul.mubr.bf16.vlgmr.msra.gmra.mrb[0].mxu0 %v27_v34 }
  0x23   :  { %272 = vmatprep.mubr.bf16.mxu0 %v31_v37 }
  0x24   :  { %454 = vmatmul.mubr.bf16.vlgmr.msra.gmra.mrb[0].mxu1 %v32_v38 }
  0x2a   :  { %273 = vmatmul.mubr.bf16.gmra.mrb[4].mxu0 %v30_v41 }
  0xf5   :  { %v415_v42 = vpop.f32.mrb[0].mxu0 }
  0xf6   :  { %v416_v43 = vpop.f32.mrb[1].mxu0 }
  0xf7   :  { %v417_v45 = vadd.f32 %v416_v43, %v415_v42  ;;  %v418_v46 = vpop.f32.mrb[2].mxu0  ;;  %v455_v48 = vpop.f32.mrb[0].mxu1 }
  0xf8   :  { %v419_v47 = vpop.f32.mrb[3].mxu0  ;;  %v315_v51 = vpop.f32.mrb[1].mxu1 }
  0xf9   :  { %v420_v49 = vadd.f32 %v419_v47, %v418_v46  ;;  %v267_v50 = vadd.f32 %v417_v45, %v374_v44  ;;  %v456_v52 = vpop.f32.mrb[2].mxu1 }
  0xfa   :  { %v318_v55 = vpop.f32.mrb[3].mxu1 }
  0xfb   :  { %v316_v53 = vadd.f32 %v315_v51, %v267_v50  ;;  %v270_v54 = vadd.f32 %v420_v49, %v374_v44 }
  0xfd   :  { %v334_v56 = vmul.f32 0.044715, %v316_v53  ;;  %v319_v57 = vadd.f32 %v318_v55, %v270_v54  ;;  %v421_v58 = vpop.f32.mrb[4].mxu0  ;;  %v330_v24 = vmul.f32 0.5, %v316_v53 }
  0xfe   :  { %v422_v59 = vpop.f32.mrb[5].mxu0 }
  0xff   :  { %v338_v60 = vmul.f32 %v334_v56, %v316_v53  ;;  %v335_v61 = vmul.f32 0.044715, %v319_v57  ;;  %v423_v62 = vadd.f32 %v422_v59, %v421_v58  ;;  %v424_v63 = vpop.f32.mrb[6].mxu0  ;;  %v331_v28 = vmul.f32 0.5, %v319_v57 }
 0x100   :  { %v425_v0 = vpop.f32.mrb[7].mxu0 }
 0x101   :  { %v342_v1 = vmul.f32 %v338_v60, %v316_v53  ;;  %v339_v2 = vmul.f32 %v335_v61, %v319_v57  ;;  %v275_v3 = vadd.f32 %v423_v62, %v374_v44  ;;  %v426_v4 = vadd.f32 %v425_v0, %v424_v63 }
 0x103   :  { %v346_v5 = vadd.f32 %v342_v1, %v316_v53  ;;  %v343_v6 = vmul.f32 %v339_v2, %v319_v57  ;;  %v324_v7 = vadd.f32 %v455_v48, %v275_v3  ;;  %v278_v8 = vadd.f32 %v426_v4, %v374_v44 }
 0x105   :  { %v350_v9 = vmul.f32 0.7978846, %v346_v5  ;;  %v347_v10 = vadd.f32 %v343_v6, %v319_v57  ;;  %v336_v11 = vmul.f32 0.044715, %v324_v7  ;;  %v327_v12 = vadd.f32 %v456_v52, %v278_v8 }
 0x106   :  { %v332_v32 = vmul.f32 0.5, %v324_v7 }
 0x107   :  { %481 = vtanh.f32 %v350_v9  ;;  %v351_v13 = vmul.f32 0.7978846, %v347_v10  ;;  %v340_v14 = vmul.f32 %v336_v11, %v324_v7  ;;  %v337_v15 = vmul.f32 0.044715, %v327_v12 }
 0x108   :  { %v333_v36 = vmul.f32 0.5, %v327_v12 }
 0x109   :  { %483 = vtanh.f32 %v351_v13  ;;  %v344_v16 = vmul.f32 %v340_v14, %v324_v7  ;;  %v341_v17 = vmul.f32 %v337_v15, %v327_v12 }
 0x10b   :  { %v348_v18 = vadd.f32 %v344_v16, %v324_v7  ;;  %v345_v19 = vmul.f32 %v341_v17, %v327_v12 }
 0x10d   :  { %v352_v20 = vmul.f32 0.7978846, %v348_v18  ;;  %v349_v21 = vadd.f32 %v345_v19, %v327_v12 }
 0x10f   :  { %485 = vtanh.f32 %v352_v20  ;;  %v353_v22 = vmul.f32 0.7978846, %v349_v21 }
 0x111   :  { %v482_v23 = vpop.eup %481  ;;  %487 = vtanh.f32 %v353_v22 }
 0x112   :  { %v358_v25 = vadd.f32 1.0, %v482_v23 }
 0x113   :  { %v484_v26 = vpop.eup %483 }
 0x114   :  { %v362_v27 = vmul.f32 %v358_v25, %v330_v24  ;;  %v359_v29 = vadd.f32 1.0, %v484_v26 }
 0x116   :  { %366 = vst [vmem:[%s635_s3] sm:$0xff] %v362_v27  ;;  %v363_v30 = vmul.f32 %v359_v29, %v331_v28 }
 0x118   :  { %367 = vst [vmem:[%s635_s3 + $0x8] sm:$0xff] %v363_v30 }
 0x119   :  { %v486_v31 = vpop.eup %485 }
 0x11a   :  { %v360_v33 = vadd.f32 1.0, %v486_v31 }
 0x11b   :  { %v488_v34 = vpop.eup %487 }
 0x11c   :  { %v364_v35 = vmul.f32 %v360_v33, %v332_v32  ;;  %v361_v37 = vadd.f32 1.0, %v488_v34 }
 0x11e   :  { %368 = vst [vmem:[%s635_s3 + $0x10] sm:$0xff] %v364_v35  ;;  %v365_v38 = vmul.f32 %v361_v37, %v333_v36 }
 0x120   :  { %369 = vst [vmem:[%s635_s3 + $0x18] sm:$0xff] %v365_v38 }

// kernel: decoder_forward.31
= control target key start
LH: loop header
LB: loop body
LE: loop exit
PB: predicated region body
PF: predicated region fallthrough
CT: control target
= control target key end

     0   :  { %s524_s12 = smov 0   ;;  %s638_s0 = inlined_call_operand.vmem [shape: f32[2,6,6,16], index: 0, kind: input, shape index: {}]   ;;  %s639_s1 = inlined_call_operand.vmem [shape: f32[9,16], index: 1, kind: input, shape index: {}]   ;;  %s640_s2 = inlined_call_operand.vmem [shape: f32[1,16], index: 2, kind: input, shape index: {}]   ;;  %s641_s3 = inlined_call_operand.vmem [shape: f32[2,4,4,16], index: 3, kind: output, shape index: {}]  }
   0x1 LB: > { %s466_s13 = sadd.s32 4294967295, %s502_s12   ;;  %p470_p0 = scmp.ge.s32.totalorder %s502_s12, 1  ;;  %s502_s12 = sphi %s524_s12, %s13_s12  }
   0x2   : > { %p137_p1 = scmp.lt.s32.totalorder %s502_s12, 3 }
   0x4   : > { %p138_p2 = pnand %p470_p0, %p137_p1 }
   0x5   : > { %p161_p3 = scmp.lt.s32.totalorder (!%p138_p2), %s466_s13, 1  ;;  %v179_v0 = vlaneseq (!%p138_p2)  ;;  %v177_v2 = vld [vmem:[%s639_s1] sm:$0xff] (!%p138_p2)  ;;  %v586_v51 = vld [vmem:[%s639_s1 + $0x8] ss:$0 sm:$0xff] (!%p138_p2)  ;;  %vm406_vm0 = vcmask (!%p138_p2), 125952  }
   0x6   : > { %141 = sbr.rel (%p138_p2) target bundleno = 79 (0x4f), region = 32 }
   0x7   : > { %v180_v1 = vshrl.u32 (!%p138_p2), %v179_v0, 7 }
   0x9   : > { %v181_v3 = vsub.s32 (!%p138_p2), 0, %v180_v1  ;;  %v193_v4 = vsub.s32 (!%p138_p2), 1, %v180_v1  ;;  %v217_v5 = vsub.s32 (!%p138_p2), 2, %v180_v1  ;;  %v241_v6 = vsub.s32 (!%p138_p2), 3, %v180_v1 }
   0xa   : > { %v253_v7 = vsub.s32 (!%p138_p2), 4, %v180_v1  ;;  %v277_v8 = vsub.s32 (!%p138_p2), 5, %v180_v1  ;;  %v301_v9 = vsub.s32 (!%p138_p2), 6, %v180_v1  ;;  %v313_v10 = vsub.s32 (!%p138_p2), 7, %v180_v1 }
   0xb   : > { %v182_v11 = vrot.slane (!%p138_p2), %v177_v2, %v181_v3  ;;  %v194_v12 = vrot.slane (!%p138_p2), %v177_v2, %v193_v4  ;;  %v543_v13 = vrot.slane (!%p138_p2), %v177_v2, %v217_v5  ;;  %v547_v16 = vrot.slane (!%p138_p2), %v177_v2, %v241_v6 }
   0xc   : > { %v549_v17 = vrot.slane (!%p138_p2), %v177_v2, %v253_v7  ;;  %v551_v18 = vrot.slane (!%p138_p2), %v177_v2, %v277_v8  ;;  %v559_v23 = vrot.slane (!%p138_p2), %v177_v2, %v301_v9  ;;  %v561_v24 = vrot.slane (!%p138_p2), %v177_v2, %v313_v10 }
   0xd   : > { %s643_s13 = smov (!%p161_p3, %s466_s13), 1 }
   0xe   : > { %s479_s16 = smul.u32 48, %s643_s13  ;;  %s478_s24 = sshll.u32 %s643_s13, 4 }
   0xf   : > { %s170_s27 = scalar_lea.vmem %s641_s3, %s478_s24 }
  0x10   : > { %s541_s19 = scalar_lea.vmem %s638_s0, %s479_s16 }
  0x11   : > { %v171_v14 = vld [vmem:[%s541_s19] sm:$0x3f]  ;;  %v172_v15 = vld [vmem:[%s541_s19 + $0x8] sm:$0x3f]  ;;  %v554_v19 = vld [vmem:[%s541_s19 + $0x10] sm:$0x3f] }
  0x12   : > { %v557_v20 = vld [vmem:[%s541_s19 + $0x18] sm:$0x3f]  ;;  %v183_v21 = vmul.f32 %v182_v11, %v171_v14  ;;  %v195_v22 = vmul.f32 %v194_v12, %v171_v14  ;;  %v184_v25 = vmul.f32 %v182_v11, %v172_v15  ;;  %v196_v27 = vmul.f32 %v194_v12, %v172_v15  ;;  %v566_v29 = vld [vmem:[%s541_s19 + $0x20] sm:$0x3f]  ;;  %v176_v50 = vld [vmem:[%s541_s19 + $0x28] sm:$0x3f] }
  0x13   : > { %v186_v26 = vmul.f32 %v182_v11, %v557_v20  ;;  %v198_v28 = vmul.f32 %v194_v12, %v557_v20  ;;  %v219_v31 = vmul.f32 %v543_v13, %v171_v14  ;;  %v220_v32 = vmul.f32 %v543_v13, %v172_v15 }
  0x14   : > { %v203_v30 = vrot.slane %v195_v22, 1  ;;  %v222_v33 = vmul.f32 %v543_v13, %v557_v20  ;;  %v197_v34 = vmul.f32 %v194_v12, %v554_v19  ;;  %v204_v35 = vrot.slane %v196_v27, 1 }
  0x15   : > { %v206_v36 = vrot.slane %v198_v28, 1  ;;  %v243_v37 = vmul.f32 %v547_v16, %v172_v15  ;;  %v227_v39 = vrot.slane %v219_v31, 2  ;;  %v228_v40 = vrot.slane %v220_v32, 2 }
  0x16   : > { %v211_v38 = vadd.f32 %v203_v30, %v183_v21  ;;  %v230_v41 = vrot.slane %v222_v33, 2  ;;  %v212_v42 = vadd.f32 %v204_v35, %v184_v25  ;;  %v246_v44 = vmul.f32 %v547_v16, %v566_v29 }
  0x17   : > { %v214_v43 = vadd.f32 %v206_v36, %v186_v26  ;;  %v255_v45 = vmul.f32 %v549_v17, %v172_v15  ;;  %v258_v47 = vmul.f32 %v549_v17, %v566_v29  ;;  %v279_v48 = vmul.f32 %v551_v18, %v172_v15 }
  0x18   : > { %v235_v46 = vadd.f32 %v227_v39, %v211_v38  ;;  %v282_v49 = vmul.f32 %v551_v18, %v566_v29  ;;  %v185_v52 = vmul.f32 %v182_v11, %v554_v19  ;;  %v205_v53 = vrot.slane %v197_v34, 1 }
  0x19   : > { %v238_v54 = vadd.f32 %v230_v41, %v214_v43  ;;  %v263_v55 = vrot.slane %v255_v45, 1  ;;  %v236_v56 = vadd.f32 %v228_v40, %v212_v42  ;;  %v266_v58 = vrot.slane %v258_v47, 1 }
  0x1a   : > { %v247_v57 = vadd.f32 %v243_v37, %v235_v46  ;;  %v287_v59 = vrot.slane %v279_v48, 2  ;;  %v290_v61 = vrot.slane %v282_v49, 2  ;;  %v303_v62 = vmul.f32 %v559_v23, %v554_v19  ;;  %v475_v37 = vld [vmem:[%s640_s2] ss:$0 sm:$0xff] }
  0x1b   : > { %v250_v60 = vadd.f32 %v246_v44, %v238_v54  ;;  %v315_v63 = vmul.f32 %v561_v24, %v554_v19  ;;  %v318_v1 = vmul.f32 %v561_v24, %v176_v50  ;;  %v339_v2 = vmul.f32 %v586_v51, %v554_v19 }
  0x1c   : > { %v271_v0 = vadd.f32 %v263_v55, %v247_v57  ;;  %v342_v3 = vmul.f32 %v586_v51, %v176_v50  ;;  %v306_v5 = vmul.f32 %v559_v23, %v176_v50  ;;  %v244_v6 = vmul.f32 %v547_v16, %v554_v19 }
  0x1d   : > { %v274_v4 = vadd.f32 %v266_v58, %v250_v60  ;;  %v256_v7 = vmul.f32 %v549_v17, %v554_v19  ;;  %v323_v9 = vrot.slane %v315_v63, 1  ;;  %v326_v10 = vrot.slane %v318_v1, 1 }
  0x1e   : > { %v295_v8 = vadd.f32 %v287_v59, %v271_v0  ;;  %v347_v11 = vrot.slane %v339_v2, 2  ;;  %v248_v14 = vadd.f32 %v244_v6, %v236_v56  ;;  %v280_v21 = vmul.f32 %v551_v18, %v554_v19 }
  0x1f   : > { %v298_v12 = vadd.f32 %v290_v61, %v274_v4  ;;  %v264_v15 = vrot.slane %v256_v7, 1  ;;  %v350_v25 = vrot.slane %v342_v3, 2  ;;  %v304_v26 = vmul.f32 %v559_v23, %v557_v20 }
  0x20   : > { %v307_v22 = vadd.f32 %v303_v62, %v295_v8  ;;  %v316_v27 = vmul.f32 %v561_v24, %v557_v20  ;;  %v288_v31 = vrot.slane %v280_v21, 2  ;;  %v340_v32 = vmul.f32 %v586_v51, %v557_v20 }
  0x21   : > { %v310_v28 = vadd.f32 %v306_v5, %v298_v12  ;;  %v272_v30 = vadd.f32 %v264_v15, %v248_v14  ;;  %v213_v34 = vadd.f32 %v205_v53, %v185_v52  ;;  %v221_v35 = vmul.f32 %v543_v13, %v554_v19 }
  0x22   : > { %v331_v33 = vadd.f32 %v323_v9, %v307_v22  ;;  %v324_v39 = vrot.slane %v316_v27, 1  ;;  %v257_v40 = vmul.f32 %v549_v17, %v557_v20  ;;  %v245_v43 = vmul.f32 %v547_v16, %v557_v20 }
  0x23   : > { %v334_v36 = vadd.f32 %v326_v10, %v310_v28  ;;  %v296_v38 = vadd.f32 %v288_v31, %v272_v30  ;;  %v229_v42 = vrot.slane %v221_v35, 2  ;;  %v281_v44 = vmul.f32 %v551_v18, %v557_v20 }
  0x24   : > { %v355_v41 = vadd.f32 %v347_v11, %v331_v33  ;;  %v348_v13 = vrot.slane %v340_v32, 2  ;;  %v265_v48 = vrot.slane %v257_v40, 1  ;;  %v317_v17 = vmul.f32 %v561_v24, %v566_v29 }
  0x25   : > { %v308_v45 = vadd.f32 %v304_v26, %v296_v38  ;;  %v358_v19 = vadd.f32 %v350_v25, %v334_v36  ;;  %v237_v47 = vadd.f32 %v229_v42, %v213_v34  ;;  %v289_v54 = vrot.slane %v281_v44, 2 }
  0x26   : > { %v366_v46 = vadd.f32 %v475_v37, %v355_v41  ;;  %v305_v16 = vmul.f32 %v559_v23, %v566_v29  ;;  %v341_v57 = vmul.f32 %v586_v51, %v566_v29  ;;  %v325_v62 = vrot.slane %v317_v17, 1 }
  0x27   : > { %v332_v49 = vadd.f32 %v324_v39, %v308_v45  ;;  %v369_v50 = vadd.f32 %v475_v37, %v358_v19  ;;  %v249_v53 = vadd.f32 %v245_v43, %v237_v47 }
  0x28   : > { %v374_v52 = vmul.f32 0.044715, %v366_v46  ;;  %v349_v24 = vrot.slane %v341_v57, 2  ;;  %v370_v14 = vmul.f32 0.5, %v366_v46 }
  0x29   : > { %v356_v55 = vadd.f32 %v348_v13, %v332_v49  ;;  %v377_v56 = vmul.f32 0.044715, %v369_v50  ;;  %v273_v20 = vadd.f32 %v265_v48, %v249_v53  ;;  %v373_v22 = vmul.f32 0.5, %v369_v50 }
  0x2a   : > { %v378_v18 = vmul.f32 %v374_v52, %v366_v46 }
  0x2b   : > { %v367_v58 = vadd.f32 %v475_v37, %v356_v55  ;;  %v381_v59 = vmul.f32 %v377_v56, %v369_v50  ;;  %v297_v61 = vadd.f32 %v289_v54, %v273_v20 }
  0x2c   : > { %v382_v60 = vmul.f32 %v378_v18, %v366_v46 }
  0x2d   : > { %v375_v63 = vmul.f32 0.044715, %v367_v58  ;;  %v385_v0 = vmul.f32 %v381_v59, %v369_v50  ;;  %v309_v2 = vadd.f32 %v305_v16, %v297_v61  ;;  %v371_v31 = vmul.f32 0.5, %v367_v58 }
  0x2e   : > { %v386_v1 = vadd.f32 %v382_v60, %v366_v46 }
  0x2f   : > { %v379_v3 = vmul.f32 %v375_v63, %v367_v58  ;;  %v389_v4 = vadd.f32 %v385_v0, %v369_v50  ;;  %v333_v23 = vadd.f32 %v325_v62, %v309_v2 }
  0x30   : > { %v390_v5 = vmul.f32 0.7978846, %v386_v1 }
  0x31   : > { %v383_v6 = vmul.f32 %v379_v3, %v367_v58  ;;  %v393_v7 = vmul.f32 0.7978846, %v389_v4  ;;  %v357_v8 = vadd.f32 %v349_v24, %v333_v23 }
  0x32   : > { %488 = vtanh.f32 %v390_v5 }
  0x33   : > { %v387_v29 = vadd.f32 %v383_v6, %v367_v58  ;;  %490 = vtanh.f32 %v393_v7  ;;  %v368_v51 = vadd.f32 %v475_v37, %v357_v8 }
  0x35   : > { %v391_v9 = vmul.f32 0.7978846, %v387_v29  ;;  %v376_v10 = vmul.f32 0.044715, %v368_v51  ;;  %v372_v36 = vmul.f32 0.5, %v368_v51 }
  0x37   : > { %492 = vtanh.f32 %v391_v9  ;;  %v380_v11 = vmul.f32 %v376_v10, %v368_v51 }
  0x39   : > { %v384_v12 = vmul.f32 %v380_v11, %v368_v51 }
  0x3b   : > { %v388_v21 = vadd.f32 %v384_v12, %v368_v51 }
  0x3c   : > { %v489_v15 = vpop.eup %488 }
  0x3d   : > { %v491_v25 = vpop.eup %490  ;;  %v398_v26 = vadd.f32 1.0, %v489_v15  ;;  %v392_v27 = vmul.f32 0.7978846, %v388_v21 }
  0x3e   : > { %v401_v28 = vadd.f32 1.0, %v491_v25 }
  0x3f   : > { %v402_v30 = vmul.f32 %v398_v26, %v370_v14  ;;  %494 = vtanh.f32 %v392_v27 }
  0x40   : > { %v405_v32 = vmul.f32 %v401_v28, %v373_v22 }
  0x41   : > { %v493_v33 = vpop.eup %492  ;;  %407 = vst.msk [vmem:[%s170_s27] sm:$0xf] %vm406_vm0, %v402_v30 }
  0x42   : > { %v399_v34 = vadd.f32 1.0, %v493_v33  ;;  %410 = vst.msk [vmem:[%s170_s27 + $0xc] sm:$0xf] %vm406_vm0, %v405_v32 }
  0x44   : > { %v403_v35 = vmul.f32 %v399_v34, %v371_v31 }
  0x46   : > { %408 = vst.msk [vmem:[%s170_s27 + $0x4] sm:$0xf] %vm406_vm0, %v403_v35 }
  0x49   : > { %v495_v37 = vpop.eup %494 }
  0x4a   : > { %v400_v38 = vadd.f32 1.0, %v495_v37 }
  0x4c   : > { %v404_v39 = vmul.f32 %v400_v38, %v372_v36 }
  0x4e   : > { %409 = vst.msk [vmem:[%s170_s27 + $0x8] sm:$0xf] %vm406_vm0, %v404_v39 }
  0x4f PF: > { %s13_s12 = sadd.s32 1, %s502_s12  }
  0x50   : > { %p10_p4 = scmp.ge.s32.totalorder %s13_s12, 4  }
  0x52   :  { %12 = sbr.rel (!%p10_p4) target bundleno = 1 (0x1), region = 62 }

// kernel: decoder_forward.32
= control target key start
LH: loop header
LB: loop body
LE: loop exit
PB: predicated region body
PF: predicated region fallthrough
CT: control target
= control target key end

     0   :  { %v665_v1 = vmov 0   ;;  %v71_v55 = vlaneseq  ;;  %s931_s1 = inlined_call_operand.vmem [shape: bf16[128,768], index: 1, kind: input, shape index: {}]   ;;  %s932_s0 = inlined_call_operand.vmem [shape: f32[32,128], index: 0, kind: input, shape index: {}]   ;;  %s933_s2 = inlined_call_operand.vmem [shape: f32[1,768], index: 2, kind: input, shape index: {}]   ;;  %s934_s3 = inlined_call_operand.vmem [shape: f32[32,768], index: 3, kind: output, shape index: {}]  }
   0x1   :  { %v593_v0 = vld [vmem:[%s931_s1 + $0x4] ss:$24 sps:$4 sm:$0xff]   ;;  %373 = vmatprep.mubr.bf16.mxu0 %v665_v1  ;;  %426 = vmatprep.mubr.bf16.mxu1 %v665_v1  ;;  %v597_v3 = vld [vmem:[%s931_s1] ss:$24 sps:$4 sm:$0xff]   ;;  %v599_v5 = vld [vmem:[%s931_s1 + $0x34] ss:$24 sps:$4 sm:$0xff]  }
   0x2   :  { %v595_v2 = vld [vmem:[%s931_s1 + $0xc] ss:$24 sps:$4 sm:$0xff]   ;;  %341 = vmatprep.subr.bf16.mxu0 %v593_v0  ;;  %v598_v4 = vld [vmem:[%s931_s1 + $0x8] ss:$24 sps:$4 sm:$0xff]   ;;  %v601_v6 = vld [vmem:[%s931_s1 + $0x3c] ss:$24 sps:$4 sm:$0xff]  }
   0x3   :  { %394 = vmatprep.subr.bf16.mxu1 %v595_v2  ;;  %342 = vmatpush1.bf16.msra.mxu0 %v597_v3  ;;  %v603_v7 = vld [vmem:[%s931_s1 + $0x30] ss:$24 sps:$4 sm:$0xff]   ;;  %v605_v9 = vld [vmem:[%s931_s1 + $0x64] ss:$24 sps:$4 sm:$0xff]   ;;  %v609_v11 = vld [vmem:[%s931_s1 + $0x60] ss:$24 sps:$4 sm:$0xff]  }
   0x4   :  { %395 = vmatpush1.bf16.msra.mxu1 %v598_v4  ;;  %343 = vmatprep.subr.bf16.mxu0 %v599_v5  ;;  %v604_v8 = vld [vmem:[%s931_s1 + $0x38] ss:$24 sps:$4 sm:$0xff]   ;;  %v607_v10 = vld [vmem:[%s931_s1 + $0x6c] ss:$24 sps:$4 sm:$0xff]   ;;  %v610_v12 = vld [vmem:[%s931_s1 + $0x68] ss:$24 sps:$4 sm:$0xff]  }
   0x5   :  { %396 = vmatprep.subr.bf16.mxu1 %v601_v6  ;;  %v611_v13 = vld [vmem:[%s931_s1 + $0x94] ss:$24 sps:$4 sm:$0xff]   ;;  %v615_v15 = vld [vmem:[%s931_s1 + $0x90] ss:$24 sps:$4 sm:$0xff]   ;;  %v617_v17 = vld [vmem:[%s931_s1 + $0xc4] ss:$24 sps:$4 sm:$0xff]  }
   0x6   :  { %v613_v14 = vld [vmem:[%s931_s1 + $0x9c] ss:$24 sps:$4 sm:$0xff]   ;;  %v616_v16 = vld [vmem:[%s931_s1 + $0x98] ss:$24 sps:$4 sm:$0xff]   ;;  %v619_v18 = vld [vmem:[%s931_s1 + $0xcc] ss:$24 sps:$4 sm:$0xff]  }
   0x7   :  { %344 = vmatpush1.bf16.msra.mxu0 %v603_v7  ;;  %v621_v19 = vld [vmem:[%s931_s1 + $0xc0] ss:$24 sps:$4 sm:$0xff]   ;;  %v623_v21 = vld [vmem:[%s931_s1 + $0xf4] ss:$24 sps:$4 sm:$0xff]   ;;  %v627_v23 = vld [vmem:[%s931_s1 + $0xf0] ss:$24 sps:$4 sm:$0xff]  }
   0x8   :  { %397 = vmatpush1.bf16.msra.mxu1 %v604_v8  ;;  %345 = vmatprep.subr.bf16.mxu0 %v605_v9  ;;  %v622_v20 = vld [vmem:[%s931_s1 + $0xc8] ss:$24 sps:$4 sm:$0xff]   ;;  %v625_v22 = vld [vmem:[%s931_s1 + $0xfc] ss:$24 sps:$4 sm:$0xff]   ;;  %v628_v24 = vld [vmem:[%s931_s1 + $0xf8] ss:$24 sps:$4 sm:$0xff]  }
   0x9   :  { %398 = vmatprep.subr.bf16.mxu1 %v607_v10  ;;  %v629_v25 = vld [vmem:[%s931_s1 + $0x124] ss:$24 sps:$4 sm:$0xff]   ;;  %v633_v27 = vld [vmem:[%s931_s1 + $0x120] ss:$24 sps:$4 sm:$0xff]   ;;  %v635_v29 = vld [vmem:[%s931_s1 + $0x154] ss:$24 sps:$4 sm:$0xff]  }
   0xa   :  { %v631_v26 = vld [vmem:[%s931_s1 + $0x12c] ss:$24 sps:$4 sm:$0xff]   ;;  %v634_v28 = vld [vmem:[%s931_s1 + $0x128] ss:$24 sps:$4 sm:$0xff]   ;;  %v637_v30 = vld [vmem:[%s931_s1 + $0x15c] ss:$24 sps:$4 sm:$0xff]  }
   0xb   :  { %346 = vmatpush1.bf16.msra.mxu0 %v609_v11  ;;  %v639_v31 = vld [vmem:[%s931_s1 + $0x150] ss:$24 sps:$4 sm:$0xff]   ;;  %v15_v33 = vld [vmem:[%s932_s0] sm:$0xff]  ;;  %v643_v35 = vld [vmem:[%s931_s1 + $0x14] ss:$24 sps:$4 sm:$0xff]   ;;  %v848_v56 = vshrl.u32 %v71_v55, 7 }
   0xc   :  { %399 = vmatpush1.bf16.msra.mxu1 %v610_v12  ;;  %347 = vmatprep.subr.bf16.mxu0 %v611_v13  ;;  %v640_v32 = vld [vmem:[%s931_s1 + $0x158] ss:$24 sps:$4 sm:$0xff]   ;;  %v16_v34 = vld [vmem:[%s932_s0 + $0x8] sm:$0xff]  ;;  %v646_v38 = vld [vmem:[%s931_s1 + $0x44] ss:$24 sps:$4 sm:$0xff]  }
   0xd   :  { %400 = vmatprep.subr.bf16.mxu1 %v613_v14  ;;  %v19_v36 = vpack.c.bf16 %v16_v34, %v15_v33  ;;  %v641_v37 = vld [vmem:[%s931_s1 + $0x10] ss:$24 sps:$4 sm:$0xff]   ;;  %v644_v39 = vld [vmem:[%s931_s1 + $0x40] ss:$24 sps:$4 sm:$0xff]   ;;  %v649_v42 = vld [vmem:[%s931_s1 + $0x74] ss:$24 sps:$4 sm:$0xff]  }
   0xe   :  { %v17_v40 = vld [vmem:[%s932_s0 + $0x10] sm:$0xff]  ;;  %v18_v41 = vld [vmem:[%s932_s0 + $0x18] sm:$0xff]  ;;  %v73_v57 = vsub.s32 0, %v848_v56  ;;  %v81_v58 = vsub.s32 2, %v848_v56  ;;  %v69_v59 = vld [vmem:[%s933_s2] sm:$0x3f] }
   0xf   :  { %348 = vmatpush1.bf16.msra.mxu0 %v615_v15  ;;  %v20_v43 = vpack.c.bf16 %v18_v41, %v17_v40  ;;  %v647_v44 = vld [vmem:[%s931_s1 + $0x70] ss:$24 sps:$4 sm:$0xff]   ;;  %v652_v45 = vld [vmem:[%s931_s1 + $0xa4] ss:$24 sps:$4 sm:$0xff]   ;;  %v650_v46 = vld [vmem:[%s931_s1 + $0xa0] ss:$24 sps:$4 sm:$0xff]  }
  0x10   :  { %401 = vmatpush1.bf16.msra.mxu1 %v616_v16  ;;  %349 = vmatprep.subr.bf16.mxu0 %v617_v17  ;;  %v655_v47 = vld [vmem:[%s931_s1 + $0xd4] ss:$24 sps:$4 sm:$0xff]   ;;  %v653_v48 = vld [vmem:[%s931_s1 + $0xd0] ss:$24 sps:$4 sm:$0xff]   ;;  %v658_v49 = vld [vmem:[%s931_s1 + $0x104] ss:$24 sps:$4 sm:$0xff]   ;;  %v74_v62 = vrot.slane %v69_v59, %v73_v57  ;;  %v82_v63 = vrot.slane %v69_v59, %v81_v58 }
  0x11   :  { %402 = vmatprep.subr.bf16.mxu1 %v619_v18  ;;  %v656_v50 = vld [vmem:[%s931_s1 + $0x100] ss:$24 sps:$4 sm:$0xff]   ;;  %v661_v51 = vld [vmem:[%s931_s1 + $0x134] ss:$24 sps:$4 sm:$0xff]   ;;  %v659_v52 = vld [vmem:[%s931_s1 + $0x130] ss:$24 sps:$4 sm:$0xff]  }
  0x12   :  { %v664_v53 = vld [vmem:[%s931_s1 + $0x164] ss:$24 sps:$4 sm:$0xff]   ;;  %v662_v54 = vld [vmem:[%s931_s1 + $0x160] ss:$24 sps:$4 sm:$0xff]   ;;  %v77_v60 = vsub.s32 1, %v848_v56  ;;  %v85_v61 = vsub.s32 3, %v848_v56 }
  0x13   :  { %350 = vmatpush1.bf16.msra.mxu0 %v621_v19  ;;  %v89_v34 = vsub.s32 4, %v848_v56 }
  0x14   :  { %403 = vmatpush1.bf16.msra.mxu1 %v622_v20  ;;  %351 = vmatprep.subr.bf16.mxu0 %v623_v21  ;;  %v78_v0 = vrot.slane %v69_v59, %v77_v60 }
  0x15   :  { %404 = vmatprep.subr.bf16.mxu1 %v625_v22 }
  0x17   :  { %352 = vmatpush1.bf16.msra.mxu0 %v627_v23 }
  0x18   :  { %405 = vmatpush1.bf16.msra.mxu1 %v628_v24  ;;  %353 = vmatprep.subr.bf16.mxu0 %v629_v25 }
  0x19   :  { %406 = vmatprep.subr.bf16.mxu1 %v631_v26 }
  0x1b   :  { %354 = vmatpush1.bf16.msra.mxu0 %v633_v27 }
  0x1c   :  { %407 = vmatpush1.bf16.msra.mxu1 %v634_v28  ;;  %355 = vmatprep.subr.bf16.mxu0 %v635_v29 }
  0x1d   :  { %408 = vmatprep.subr.bf16.mxu1 %v637_v30 }
  0x1f   :  { %356 = vmatpush1.bf16.msra.mxu0 %v639_v31 }
  0x20   :  { %409 = vmatpush1.bf16.msra.mxu1 %v640_v32  ;;  %447 = vmatprep.subr.bf16.mxu0 %v643_v35 }
  0x21   :  { %576 = vmatprep.subr.bf16.mxu1 %v643_v35  ;;  %v93_v35 = vsub.s32 5, %v848_v56 }
  0x22   :  { %374 = vmatmul.mubr.bf16.vlgmr.msra.gmra.mrb[0].mxu0 %v19_v36 }
  0x23   :  { %427 = vmatmul.mubr.bf16.vlgmr.msra.gmra.mrb[0].mxu1 %v19_v36  ;;  %448 = vmatpush1.bf16.msra.mxu0 %v641_v37 }
  0x24   :  { %584 = vmatpush1.bf16.msra.mxu1 %v641_v37  ;;  %449 = vmatprep.subr.bf16.mxu0 %v646_v38  ;;  %v94_v37 = vrot.slane %v69_v59, %v93_v35 }
  0x25   :  { %577 = vmatprep.subr.bf16.mxu1 %v646_v38  ;;  %383 = vmatprep.mubr.bf16.mxu0 %v665_v1 }
  0x26   :  { %436 = vmatprep.mubr.bf16.mxu1 %v665_v1 }
  0x27   :  { %450 = vmatpush1.bf16.msra.mxu0 %v644_v39 }
  0x28   :  { %585 = vmatpush1.bf16.msra.mxu1 %v644_v39  ;;  %451 = vmatprep.subr.bf16.mxu0 %v649_v42 }
  0x29   :  { %578 = vmatprep.subr.bf16.mxu1 %v649_v42 }
  0x2a   :  { %384 = vmatmul.mubr.bf16.gmra.mrb[4].mxu0 %v20_v43 }
  0x2b   :  { %437 = vmatmul.mubr.bf16.gmra.mrb[4].mxu1 %v20_v43  ;;  %452 = vmatpush1.bf16.msra.mxu0 %v647_v44 }
  0x2c   :  { %586 = vmatpush1.bf16.msra.mxu1 %v647_v44  ;;  %453 = vmatprep.subr.bf16.mxu0 %v652_v45 }
  0x2d   :  { %579 = vmatprep.subr.bf16.mxu1 %v652_v45  ;;  %479 = vmatprep.mubr.bf16.mxu0 %v665_v1 }
  0x2e   :  { %489 = vmatprep.mubr.bf16.mxu1 %v665_v1  ;;  %v86_v1 = vrot.slane %v69_v59, %v85_v61 }
  0x2f   :  { %454 = vmatpush1.bf16.msra.mxu0 %v650_v46 }
  0x30   :  { %587 = vmatpush1.bf16.msra.mxu1 %v650_v46  ;;  %455 = vmatprep.subr.bf16.mxu0 %v655_v47 }
  0x31   :  { %580 = vmatprep.subr.bf16.mxu1 %v655_v47 }
  0x33   :  { %456 = vmatpush1.bf16.msra.mxu0 %v653_v48 }
  0x34   :  { %588 = vmatpush1.bf16.msra.mxu1 %v653_v48  ;;  %457 = vmatprep.subr.bf16.mxu0 %v658_v49 }
  0x35   :  { %581 = vmatprep.subr.bf16.mxu1 %v658_v49 }
  0x37   :  { %458 = vmatpush1.bf16.msra.mxu0 %v656_v50 }
  0x38   :  { %589 = vmatpush1.bf16.msra.mxu1 %v656_v50  ;;  %459 = vmatprep.subr.bf16.mxu0 %v661_v51 }
  0x39   :  { %582 = vmatprep.subr.bf16.mxu1 %v661_v51 }
  0x3b   :  { %460 = vmatpush1.bf16.msra.mxu0 %v659_v52 }
  0x3c   :  { %590 = vmatpush1.bf16.msra.mxu1 %v659_v52  ;;  %461 = vmatprep.subr.bf16.mxu0 %v664_v53 }
  0x3d   :  { %583 = vmatprep.subr.bf16.mxu1 %v664_v53 }
  0x3f   :  { %462 = vmatpush1.bf16.msra.mxu0 %v662_v54 }
  0x40   :  { %591 = vmatpush1.bf16.msra.mxu1 %v662_v54 }
  0x42   :  { %480 = vmatmul.mubr.bf16.vlgmr.msra.gmra.mrb[8].mxu0 %v19_v36  ;;  %v90_v36 = vrot.slane %v69_v59, %v89_v34 }
  0x43   :  { %490 = vmatmul.mubr.bf16.vlgmr.msra.gmra.mrb[8].mxu1 %v20_v43 }
  0xf5   :  { %v375_v2 = vpop.f32.mrb[0].mxu0 }
  0xf6   :  { %v428_v3 = vpop.f32.mrb[0].mxu1  ;;  %v376_v4 = vadd.f32 %v375_v2, %v74_v62  ;;  %v377_v6 = vpop.f32.mrb[1].mxu0 }
  0xf7   :  { %v429_v5 = vadd.f32 %v428_v3, %v82_v63  ;;  %v430_v7 = vpop.f32.mrb[1].mxu1  ;;  %v378_v8 = vadd.f32 %v377_v6, %v78_v0  ;;  %v379_v10 = vpop.f32.mrb[2].mxu0 }
  0xf8   :  { %v431_v9 = vadd.f32 %v430_v7, %v86_v1  ;;  %v432_v11 = vpop.f32.mrb[2].mxu1  ;;  %500 = vst [vmem:[%s934_s3] sm:$0xff] %v376_v4  ;;  %v380_v12 = vadd.f32 %v379_v10, %v74_v62  ;;  %v381_v14 = vpop.f32.mrb[3].mxu0 }
  0xf9   :  { %502 = vst [vmem:[%s934_s3 + $0x10] sm:$0xff] %v429_v5  ;;  %v433_v13 = vadd.f32 %v432_v11, %v82_v63  ;;  %v434_v15 = vpop.f32.mrb[3].mxu1  ;;  %501 = vst [vmem:[%s934_s3 + $0x8] sm:$0xff] %v378_v8  ;;  %v382_v16 = vadd.f32 %v381_v14, %v78_v0 }
  0xfa   :  { %503 = vst [vmem:[%s934_s3 + $0x18] sm:$0xff] %v431_v9  ;;  %v435_v17 = vadd.f32 %v434_v15, %v86_v1  ;;  %506 = vst [vmem:[%s934_s3 + $0x30] sm:$0xff] %v380_v12 }
  0xfb   :  { %508 = vst [vmem:[%s934_s3 + $0x40] sm:$0xff] %v433_v13  ;;  %507 = vst [vmem:[%s934_s3 + $0x38] sm:$0xff] %v382_v16 }
  0xfc   :  { %509 = vst [vmem:[%s934_s3 + $0x48] sm:$0xff] %v435_v17 }
  0xfd   :  { %v385_v18 = vpop.f32.mrb[4].mxu0 }
  0xfe   :  { %v438_v19 = vpop.f32.mrb[4].mxu1  ;;  %v386_v20 = vadd.f32 %v385_v18, %v74_v62  ;;  %v387_v22 = vpop.f32.mrb[5].mxu0 }
  0xff   :  { %v439_v21 = vadd.f32 %v438_v19, %v82_v63  ;;  %v440_v23 = vpop.f32.mrb[5].mxu1  ;;  %v388_v24 = vadd.f32 %v387_v22, %v78_v0  ;;  %v389_v26 = vpop.f32.mrb[6].mxu0 }
 0x100   :  { %v441_v25 = vadd.f32 %v440_v23, %v86_v1  ;;  %v442_v27 = vpop.f32.mrb[6].mxu1  ;;  %512 = vst [vmem:[%s934_s3 + $0x60] sm:$0xff] %v386_v20  ;;  %v390_v28 = vadd.f32 %v389_v26, %v74_v62  ;;  %v391_v30 = vpop.f32.mrb[7].mxu0 }
 0x101   :  { %514 = vst [vmem:[%s934_s3 + $0x70] sm:$0xff] %v439_v21  ;;  %v443_v29 = vadd.f32 %v442_v27, %v82_v63  ;;  %v444_v31 = vpop.f32.mrb[7].mxu1  ;;  %513 = vst [vmem:[%s934_s3 + $0x68] sm:$0xff] %v388_v24  ;;  %v392_v32 = vadd.f32 %v391_v30, %v78_v0 }
 0x102   :  { %515 = vst [vmem:[%s934_s3 + $0x78] sm:$0xff] %v441_v25  ;;  %v445_v33 = vadd.f32 %v444_v31, %v86_v1  ;;  %518 = vst [vmem:[%s934_s3 + $0x90] sm:$0xff] %v390_v28 }
 0x103   :  { %520 = vst [vmem:[%s934_s3 + $0xa0] sm:$0xff] %v443_v29  ;;  %519 = vst [vmem:[%s934_s3 + $0x98] sm:$0xff] %v392_v32 }
 0x104   :  { %521 = vst [vmem:[%s934_s3 + $0xa8] sm:$0xff] %v445_v33 }
 0x115   :  { %v481_v38 = vpop.f32.mrb[8].mxu0 }
 0x116   :  { %v491_v39 = vpop.f32.mrb[8].mxu1  ;;  %v482_v40 = vadd.f32 %v481_v38, %v90_v36  ;;  %v483_v42 = vpop.f32.mrb[9].mxu0 }
 0x117   :  { %v492_v41 = vadd.f32 %v491_v39, %v90_v36  ;;  %v493_v43 = vpop.f32.mrb[9].mxu1  ;;  %v484_v44 = vadd.f32 %v483_v42, %v94_v37  ;;  %v485_v46 = vpop.f32.mrb[10].mxu0 }
 0x118   :  { %v494_v45 = vadd.f32 %v493_v43, %v94_v37  ;;  %v495_v47 = vpop.f32.mrb[10].mxu1  ;;  %504 = vst [vmem:[%s934_s3 + $0x20] sm:$0xff] %v482_v40  ;;  %v486_v48 = vadd.f32 %v485_v46, %v90_v36  ;;  %v487_v50 = vpop.f32.mrb[11].mxu0 }
 0x119   :  { %516 = vst [vmem:[%s934_s3 + $0x80] sm:$0xff] %v492_v41  ;;  %v496_v49 = vadd.f32 %v495_v47, %v90_v36  ;;  %v497_v51 = vpop.f32.mrb[11].mxu1  ;;  %505 = vst [vmem:[%s934_s3 + $0x28] sm:$0xff] %v484_v44  ;;  %v488_v52 = vadd.f32 %v487_v50, %v94_v37 }
 0x11a   :  { %517 = vst [vmem:[%s934_s3 + $0x88] sm:$0xff] %v494_v45  ;;  %v498_v53 = vadd.f32 %v497_v51, %v94_v37  ;;  %510 = vst [vmem:[%s934_s3 + $0x50] sm:$0xff] %v486_v48 }
 0x11b   :  { %522 = vst [vmem:[%s934_s3 + $0xb0] sm:$0xff] %v496_v49  ;;  %511 = vst [vmem:[%s934_s3 + $0x58] sm:$0xff] %v488_v52 }
 0x11c   :  { %523 = vst [vmem:[%s934_s3 + $0xb8] sm:$0xff] %v498_v53 }

// kernel: decoder_forward.33
= control target key start
LH: loop header
LB: loop body
LE: loop exit
PB: predicated region body
PF: predicated region fallthrough
CT: control target
= control target key end

     0   :  { %s1331_s12 = smov 0   ;;  %s1452_s0 = inlined_call_operand.vmem [shape: f32[2,4,16,64], index: 0, kind: input, shape index: {}]   ;;  %s1453_s1 = inlined_call_operand.vmem [shape: f32[2,4,16,64], index: 1, kind: input, shape index: {}]   ;;  %s1454_s2 = inlined_call_operand.vmem [shape: f32[2,4,16,64], index: 2, kind: input, shape index: {}]   ;;  %s1455_s3 = inlined_call_operand.vmem [shape: f32[2,4,16,64], index: 3, kind: output, shape index: {}]  }
   0x1 LB: > { %s1092_s13 = sadd.s32 4294967295, %s1309_s12   ;;  %p1096_p0 = scmp.ge.s32.totalorder %s1309_s12, 1  ;;  %s1309_s12 = sphi %s1331_s12, %s13_s12  }
   0x2   : > { %p157_p1 = scmp.lt.s32.totalorder %s1309_s12, 3 }
   0x4   : > { %p158_p2 = pnand %p1096_p0, %p157_p1 }
   0x5   : > { %p191_p3 = scmp.lt.s32.totalorder (!%p158_p2), %s1092_s13, 1  ;;  %vm235_vm0 = vcmask (!%p158_p2), 523264   ;;  %vm592_vm2 = vcmask (!%p158_p2), 130048  }
   0x6   : > { %161 = sbr.rel (%p158_p2) target bundleno = 785 (0x311), region = 32  ;;  %vm1347_vm1 = vmpackc.low (!%p158_p2), %vm235_vm0, %vm235_vm0 }
   0xd   : > { %s1459_s13 = smov (!%p191_p3, %s1092_s13), 1 }
   0xe   : > { %s1339_s14 = sshll.u32 %s1459_s13, 6 }
   0xf   : > { %s200_s17 = scalar_lea.vmem %s1453_s1, %s1339_s14  ;;  %s1355_s20 = scalar_lea.vmem %s1452_s0, %s1339_s14 }
  0x10   : > { %v219_v1 = vld [vmem:[%s200_s17] sm:$0xff]  ;;  %v220_v2 = vld [vmem:[%s200_s17 + $0x8] sm:$0xff]  ;;  %v221_v3 = vld [vmem:[%s200_s17 + $0x10] sm:$0xff]  ;;  %s205_s23 = scalar_lea.vmem %s1454_s2, %s1339_s14  ;;  %s210_s26 = scalar_lea.vmem %s1455_s3, %s1339_s14 }
  0x11   : > { %v1223_v4 = vpack.c.bf16 %v220_v2, %v219_v1  ;;  %v222_v5 = vld [vmem:[%s200_s17 + $0x18] sm:$0xff]  ;;  %v211_v6 = vld [vmem:[%s1355_s20] sm:$0xff]  ;;  %v213_v8 = vld [vmem:[%s1355_s20 + $0x10] sm:$0xff] }
  0x12   : > { %v1229_v7 = vpack.c.bf16 %v222_v5, %v221_v3  ;;  %1171 = vmatprep.mubr.msk.f32.mxu0 %vm235_vm0, %v211_v6  ;;  %v223_v9 = vld [vmem:[%s200_s17 + $0x20] sm:$0xff]  ;;  %v224_v10 = vld [vmem:[%s200_s17 + $0x28] sm:$0xff]  ;;  %1178 = vmatprep.mubr.msk.f32.mxu1 %vm235_vm0, %v213_v8  ;;  %v225_v12 = vld [vmem:[%s200_s17 + $0x30] sm:$0xff] }
  0x13   : > { %1225 = vmatprep.subr.msk.bf16.mxu0 %vm1347_vm1, %v1223_v4  ;;  %v1235_v11 = vpack.c.bf16 %v224_v10, %v223_v9  ;;  %v226_v13 = vld [vmem:[%s200_s17 + $0x38] sm:$0xff]  ;;  %v212_v15 = vld [vmem:[%s1355_s20 + $0x8] sm:$0xff]  ;;  %v215_v17 = vld [vmem:[%s1355_s20 + $0x20] sm:$0xff] }
  0x14   : > { %1231 = vmatprep.subr.msk.bf16.mxu1 %vm1347_vm1, %v1229_v7  ;;  %1228 = vmatpush3.bf16.xpose.msk.msra.mxu0 %vm1347_vm1, %v1223_v4  ;;  %v1241_v14 = vpack.c.bf16 %v226_v13, %v225_v12  ;;  %v214_v16 = vld [vmem:[%s1355_s20 + $0x18] sm:$0xff]  ;;  %v217_v18 = vld [vmem:[%s1355_s20 + $0x30] sm:$0xff]  ;;  %v216_v19 = vld [vmem:[%s1355_s20 + $0x28] sm:$0xff] }
  0x15   : > { %1234 = vmatpush3.bf16.xpose.msk.msra.mxu1 %vm1347_vm1, %v1229_v7  ;;  %1237 = vmatprep.subr.msk.bf16.mxu0 %vm1347_vm1, %v1235_v11  ;;  %v218_v20 = vld [vmem:[%s1355_s20 + $0x38] sm:$0xff] }
  0x16   : > { %1243 = vmatprep.subr.msk.bf16.mxu1 %vm1347_vm1, %v1241_v14 }
  0x1b   : > { %1172 = vmatmul.mubr.msk.f32.vlgmr.msra.gmra.mrb[0].mxu0 %vm235_vm0, %v212_v15 }
  0x1c   : > { %1179 = vmatmul.mubr.msk.f32.vlgmr.msra.gmra.mrb[0].mxu1 %vm235_vm0, %v214_v16  ;;  %1240 = vmatpush3.bf16.xpose.msk.msra.mxu0 %vm1347_vm1, %v1235_v11 }
  0x1d   : > { %1246 = vmatpush3.bf16.xpose.msk.msra.mxu1 %vm1347_vm1, %v1241_v14  ;;  %1185 = vmatprep.mubr.msk.f32.mxu0 %vm235_vm0, %v215_v17 }
  0x1e   : > { %1192 = vmatprep.mubr.msk.f32.mxu1 %vm235_vm0, %v217_v18 }
  0x23   : > { %1186 = vmatmul.mubr.msk.f32.vlgmr.msra.gmra.mrb[2].mxu0 %vm235_vm0, %v216_v19 }
  0x24   : > { %1193 = vmatmul.mubr.msk.f32.vlgmr.msra.gmra.mrb[2].mxu1 %vm235_vm0, %v218_v20 }
  0xee   : > { %v1173_v21 = vpop.f32.mrb[0].mxu0 }
  0xef   : > { %v585_v22 = vmul.f32 0.125, %v1173_v21  ;;  %v314_v23 = vpop.f32.mrb[1].mxu0  ;;  %v1180_v24 = vpop.f32.mrb[0].mxu1  ;;  %v227_v21 = vld [vmem:[%s205_s23] sm:$0xff] }
  0xf0   : > { %v584_v25 = vmul.f32 0.125, %v314_v23  ;;  %v587_v26 = vmul.f32 0.125, %v1180_v24  ;;  %v401_v27 = vpop.f32.mrb[1].mxu1  ;;  %v229_v24 = vld [vmem:[%s205_s23 + $0x10] sm:$0xff] }
  0xf1   : > { %v586_v28 = vmul.f32 0.125, %v401_v27  ;;  %v596_v29 = vsel %vm592_vm2, %v585_v22, -inf  ;;  %v231_v27 = vld [vmem:[%s205_s23 + $0x20] sm:$0xff] }
  0xf2   : > { %597 = vmax.xlane.f32.xlu1 %v596_v29  ;;  %v593_v30 = vsel %vm592_vm2, %v584_v25, -inf  ;;  %v602_v31 = vsel %vm592_vm2, %v587_v26, -inf }
  0xf3   : > { %594 = vmax.xlane.f32.xlu0 %v593_v30  ;;  %v599_v32 = vsel %vm592_vm2, %v586_v28, -inf  ;;  %v233_v30 = vld [vmem:[%s205_s23 + $0x30] sm:$0xff] }
  0xf6   : > { %603 = vmax.xlane.f32.xlu1 %v602_v31  ;;  %v1187_v33 = vpop.f32.mrb[2].mxu0  ;;  %v234_v31 = vld [vmem:[%s205_s23 + $0x38] sm:$0xff] }
  0xf7   : > { %v1194_v34 = vpop.f32.mrb[2].mxu1  ;;  %600 = vmax.xlane.f32.xlu0 %v599_v32  ;;  %v488_v35 = vpop.f32.mrb[3].mxu0  ;;  %v589_v39 = vmul.f32 0.125, %v1187_v33  ;;  %v1259_v32 = vpack.c.bf16 %v234_v31, %v233_v30 }
  0xf8   : > { %v575_v36 = vpop.f32.mrb[3].mxu1  ;;  %v588_v37 = vmul.f32 0.125, %v488_v35  ;;  %v591_v41 = vmul.f32 0.125, %v1194_v34 }
  0xf9   : > { %v590_v38 = vmul.f32 0.125, %v575_v36  ;;  %v608_v43 = vsel %vm592_vm2, %v589_v39, -inf }
  0xfa   : > { %v605_v40 = vsel %vm592_vm2, %v588_v37, -inf  ;;  %v614_v44 = vsel %vm592_vm2, %v591_v41, -inf }
  0xfb   : > { %v611_v42 = vsel %vm592_vm2, %v590_v38, -inf  ;;  %606 = vmax.xlane.f32.xlu0 %v605_v40 }
  0xfc   : > { %612 = vmax.xlane.f32.xlu1 %v611_v42 }
  0xff   : > { %609 = vmax.xlane.f32.xlu0 %v608_v43 }
 0x100   : > { %615 = vmax.xlane.f32.xlu1 %v614_v44 }
 0x17f   : > { %v598_v45 = vpop.xlane.xlu1 %597 }
 0x180   : > { %v618_v46 = vsub.f32 %v585_v22, %v598_v45  ;;  %v595_v47 = vpop.xlane.xlu0 %594  ;;  %v228_v22 = vld [vmem:[%s205_s23 + $0x8] sm:$0xff] }
 0x181   : > { %v617_v48 = vsub.f32 %v584_v25, %v595_v47  ;;  %v1247_v23 = vpack.c.bf16 %v228_v22, %v227_v21  ;;  %v230_v25 = vld [vmem:[%s205_s23 + $0x18] sm:$0xff] }
 0x182   : > { %v627_v49 = vmul.f32 1.442695, %v618_v46 }
 0x183   : > { %v625_v50 = vmul.f32 1.442695, %v617_v48  ;;  %v604_v51 = vpop.xlane.xlu1 %603  ;;  %1248 = vmatprep.subr.bf16.mxu0 %v1247_v23 }
 0x184   : > { %1271 = vpow2.f32 %v627_v49  ;;  %v620_v52 = vsub.f32 %v587_v26, %v604_v51  ;;  %v601_v53 = vpop.xlane.xlu0 %600  ;;  %1250 = vmatpush3.bf16.msra.mxu0 %v1247_v23  ;;  %v1251_v26 = vpack.c.bf16 %v230_v25, %v229_v24 }
 0x185   : > { %v619_v54 = vsub.f32 %v586_v28, %v601_v53  ;;  %1273 = vpow2.f32 %v625_v50  ;;  %v232_v28 = vld [vmem:[%s205_s23 + $0x28] sm:$0xff] }
 0x186   : > { %v631_v55 = vmul.f32 1.442695, %v620_v52  ;;  %1252 = vmatprep.subr.bf16.mxu1 %v1251_v26  ;;  %v1255_v29 = vpack.c.bf16 %v232_v28, %v231_v27 }
 0x187   : > { %v629_v56 = vmul.f32 1.442695, %v619_v54  ;;  %1254 = vmatpush3.bf16.msra.mxu1 %v1251_v26 }
 0x188   : > { %1275 = vpow2.f32 %v631_v55  ;;  %v607_v57 = vpop.xlane.xlu0 %606  ;;  %1256 = vmatprep.subr.bf16.mxu0 %v1255_v29  ;;  %1260 = vmatprep.subr.bf16.mxu1 %v1259_v32 }
 0x189   : > { %v613_v58 = vpop.xlane.xlu1 %612  ;;  %v621_v59 = vsub.f32 %v588_v37, %v607_v57  ;;  %1277 = vpow2.f32 %v629_v56 }
 0x18a   : > { %v623_v60 = vsub.f32 %v590_v38, %v613_v58 }
 0x18b   : > { %v633_v61 = vmul.f32 1.442695, %v621_v59 }
 0x18c   : > { %v637_v62 = vmul.f32 1.442695, %v623_v60  ;;  %v610_v63 = vpop.xlane.xlu0 %609 }
 0x18d   : > { %1279 = vpow2.f32 %v633_v61  ;;  %v616_v0 = vpop.xlane.xlu1 %615  ;;  %v622_v1 = vsub.f32 %v589_v39, %v610_v63 }
 0x18e   : > { %v1397_v2 = vpop.eup %1271  ;;  %1281 = vpow2.f32 %v637_v62  ;;  %v624_v3 = vsub.f32 %v591_v41, %v616_v0 }
 0x18f   : > { %v635_v4 = vmul.f32 1.442695, %v622_v1  ;;  %v644_v5 = vsel %vm592_vm2, %v1397_v2, 0.0  ;;  %v1274_v6 = vpop.eup %1273 }
 0x190   : > { %v639_v7 = vmul.f32 1.442695, %v624_v3  ;;  %645 = vadd.xlane.f32.xlu0 %v644_v5  ;;  %v641_v10 = vsel %vm592_vm2, %v1274_v6, 0.0 }
 0x191   : > { %1283 = vpow2.f32 %v635_v4 }
 0x192   : > { %v1401_v8 = vpop.eup %1275  ;;  %1285 = vpow2.f32 %v639_v7 }
 0x193   : > { %v650_v9 = vsel %vm592_vm2, %v1401_v8, 0.0  ;;  %v1278_v11 = vpop.eup %1277 }
 0x194   : > { %651 = vadd.xlane.f32.xlu1 %v650_v9  ;;  %642 = vadd.xlane.f32.xlu0 %v641_v10  ;;  %v647_v13 = vsel %vm592_vm2, %v1278_v11, 0.0 }
 0x197   : > { %v1280_v12 = vpop.eup %1279 }
 0x198   : > { %v1407_v14 = vpop.eup %1281  ;;  %648 = vadd.xlane.f32.xlu1 %v647_v13  ;;  %v653_v15 = vsel %vm592_vm2, %v1280_v12, 0.0 }
 0x199   : > { %654 = vadd.xlane.f32.xlu0 %v653_v15  ;;  %v659_v17 = vsel %vm592_vm2, %v1407_v14, 0.0 }
 0x19b   : > { %v1410_v16 = vpop.eup %1283 }
 0x19c   : > { %v1414_v18 = vpop.eup %1285  ;;  %660 = vadd.xlane.f32.xlu1 %v659_v17  ;;  %v656_v19 = vsel %vm592_vm2, %v1410_v16, 0.0 }
 0x19d   : > { %657 = vadd.xlane.f32.xlu0 %v656_v19  ;;  %v662_v20 = vsel %vm592_vm2, %v1414_v18, 0.0 }
 0x1a0   : > { %663 = vadd.xlane.f32.xlu1 %v662_v20 }
 0x21d   : > { %v646_v33 = vpop.xlane.xlu0 %645 }
 0x21e   : > { %1287 = vrcp.f32 %v646_v33 }
 0x221   : > { %v652_v34 = vpop.xlane.xlu1 %651  ;;  %v643_v35 = vpop.xlane.xlu0 %642 }
 0x222   : > { %1289 = vrcp.f32 %v643_v35 }
 0x223   : > { %1291 = vrcp.f32 %v652_v34 }
 0x225   : > { %v649_v36 = vpop.xlane.xlu1 %648 }
 0x226   : > { %1293 = vrcp.f32 %v649_v36  ;;  %v655_v37 = vpop.xlane.xlu0 %654 }
 0x227   : > { %1295 = vrcp.f32 %v655_v37 }
 0x228   : > { %v1288_v40 = vpop.eup %1287 }
 0x229   : > { %v661_v38 = vpop.xlane.xlu1 %660  ;;  %v668_v45 = vmul.f32 %v1288_v40, %v1397_v2 }
 0x22a   : > { %1297 = vrcp.f32 %v661_v38  ;;  %v658_v39 = vpop.xlane.xlu0 %657 }
 0x22b   : > { %1299 = vrcp.f32 %v658_v39 }
 0x22c   : > { %v1290_v41 = vpop.eup %1289 }
 0x22d   : > { %v664_v42 = vpop.xlane.xlu1 %663  ;;  %v666_v43 = vmul.f32 %v1290_v41, %v1274_v6  ;;  %v1292_v44 = vpop.eup %1291 }
 0x22e   : > { %1301 = vrcp.f32 %v664_v42  ;;  %v672_v49 = vmul.f32 %v1292_v44, %v1401_v8 }
 0x22f   : > { %1199 = vmatprep.mubr.msk.f32.mxu0 %vm592_vm2, %v666_v43 }
 0x230   : > { %v1294_v46 = vpop.eup %1293  ;;  %1200 = vmatmul.mubr.msk.f32.vlgmr.msra.gmra.mrb[4].mxu0 %vm592_vm2, %v668_v45 }
 0x231   : > { %v1296_v47 = vpop.eup %1295  ;;  %v670_v48 = vmul.f32 %v1294_v46, %v1278_v11  ;;  %1258 = vmatpush3.bf16.msra.mxu0 %v1255_v29 }
 0x232   : > { %v674_v50 = vmul.f32 %v1296_v47, %v1280_v12 }
 0x233   : > { %1206 = vmatprep.mubr.msk.f32.mxu1 %vm592_vm2, %v670_v48 }
 0x234   : > { %v1298_v51 = vpop.eup %1297  ;;  %1207 = vmatmul.mubr.msk.f32.vlgmr.msra.gmra.mrb[4].mxu1 %vm592_vm2, %v672_v49  ;;  %1213 = vmatprep.mubr.msk.f32.mxu0 %vm592_vm2, %v674_v50 }
 0x235   : > { %v1300_v52 = vpop.eup %1299  ;;  %1262 = vmatpush3.bf16.msra.mxu1 %v1259_v32  ;;  %v678_v53 = vmul.f32 %v1298_v51, %v1407_v14 }
 0x236   : > { %v676_v54 = vmul.f32 %v1300_v52, %v1410_v16 }
 0x237   : > { %1220 = vmatprep.mubr.msk.f32.mxu1 %vm592_vm2, %v678_v53 }
 0x238   : > { %v1302_v55 = vpop.eup %1301  ;;  %1214 = vmatmul.mubr.msk.f32.vlgmr.msra.gmra.mrb[6].mxu0 %vm592_vm2, %v676_v54 }
 0x239   : > { %v680_v56 = vmul.f32 %v1302_v55, %v1414_v18 }
 0x23b   : > { %1221 = vmatmul.mubr.msk.f32.vlgmr.msra.gmra.mrb[6].mxu1 %vm592_vm2, %v680_v56 }
 0x303   : > { %v1201_v57 = vpop.f32.mrb[4].mxu0 }
 0x304   : > { %1006 = vst.msk [vmem:[%s210_s26 + $0x8] sm:$0xff] %vm235_vm0, %v1201_v57  ;;  %v753_v58 = vpop.f32.mrb[5].mxu0 }
 0x305   : > { %1005 = vst.msk [vmem:[%s210_s26] sm:$0xff] %vm235_vm0, %v753_v58 }
 0x307   : > { %v1208_v59 = vpop.f32.mrb[4].mxu1 }
 0x308   : > { %1008 = vst.msk [vmem:[%s210_s26 + $0x18] sm:$0xff] %vm235_vm0, %v1208_v59  ;;  %v834_v60 = vpop.f32.mrb[5].mxu1 }
 0x309   : > { %1007 = vst.msk [vmem:[%s210_s26 + $0x10] sm:$0xff] %vm235_vm0, %v834_v60 }
 0x30b   : > { %v1215_v61 = vpop.f32.mrb[6].mxu0 }
 0x30c   : > { %1010 = vst.msk [vmem:[%s210_s26 + $0x28] sm:$0xff] %vm235_vm0, %v1215_v61  ;;  %v915_v62 = vpop.f32.mrb[7].mxu0 }
 0x30d   : > { %1009 = vst.msk [vmem:[%s210_s26 + $0x20] sm:$0xff] %vm235_vm0, %v915_v62 }
 0x30e   : > { %v1222_v63 = vpop.f32.mrb[6].mxu1 }
 0x30f   : > { %1012 = vst.msk [vmem:[%s210_s26 + $0x38] sm:$0xff] %vm235_vm0, %v1222_v63  ;;  %v996_v0 = vpop.f32.mrb[7].mxu1 }
 0x310   : > { %1011 = vst.msk [vmem:[%s210_s26 + $0x30] sm:$0xff] %vm235_vm0, %v996_v0 }
 0x311 PF: > { %s13_s12 = sadd.s32 1, %s1309_s12  }
 0x312   : > { %p10_p4 = scmp.ge.s32.totalorder %s13_s12, 4  }
 0x314   :  { %12 = sbr.rel (!%p10_p4) target bundleno = 1 (0x1), region = 68 }

// kernel: decoder_forward.34
= control target key start
LH: loop header
LB: loop body
LE: loop exit
PB: predicated region body
PF: predicated region fallthrough
CT: control target
= control target key end

     0   :  { %s403_s1 = inlined_call_operand.vmem [shape: bf16[256,128], index: 1, kind: input, shape index: {}]   ;;  %s404_s0 = inlined_call_operand.vmem [shape: f32[32,256], index: 0, kind: input, shape index: {}]   ;;  %s405_s2 = inlined_call_operand.vmem [shape: f32[1,128], index: 2, kind: input, shape index: {}]   ;;  %s406_s3 = inlined_call_operand.vmem [shape: f32[32,128], index: 3, kind: output, shape index: {}]  }
   0x1   :  { %v280_v0 = vld [vmem:[%s403_s1 + $0x40] sm:$0xff]   ;;  %v282_v2 = vld [vmem:[%s403_s1 + $0x48] sm:$0xff]   ;;  %v284_v4 = vld [vmem:[%s403_s1 + $0x50] sm:$0xff]  }
   0x2   :  { %v281_v1 = vld [vmem:[%s403_s1] sm:$0xff]   ;;  %236 = vmatprep.subr.bf16.mxu0 %v280_v0  ;;  %264 = vmatprep.subr.bf16.mxu1 %v280_v0  ;;  %v283_v3 = vld [vmem:[%s403_s1 + $0x8] sm:$0xff]   ;;  %v285_v5 = vld [vmem:[%s403_s1 + $0x10] sm:$0xff]  }
   0x3   :  { %237 = vmatpush3.bf16.msra.mxu0 %v281_v1  ;;  %272 = vmatpush3.bf16.msra.mxu1 %v281_v1  ;;  %v286_v6 = vld [vmem:[%s403_s1 + $0x58] sm:$0xff]   ;;  %v288_v8 = vld [vmem:[%s403_s1 + $0x60] sm:$0xff]   ;;  %v290_v10 = vld [vmem:[%s403_s1 + $0x68] sm:$0xff]  }
   0x4   :  { %238 = vmatprep.subr.bf16.mxu0 %v282_v2  ;;  %265 = vmatprep.subr.bf16.mxu1 %v282_v2  ;;  %v287_v7 = vld [vmem:[%s403_s1 + $0x18] sm:$0xff]   ;;  %v289_v9 = vld [vmem:[%s403_s1 + $0x20] sm:$0xff]   ;;  %v16_v11 = vld [vmem:[%s404_s0 + $0x8] sm:$0xff] }
   0x5   :  { %v18_v12 = vld [vmem:[%s404_s0 + $0x18] sm:$0xff]  ;;  %v20_v13 = vld [vmem:[%s404_s0 + $0x28] sm:$0xff]  ;;  %v292_v18 = vld [vmem:[%s403_s1 + $0x70] sm:$0xff]  }
   0x6   :  { %v24_v14 = vpack.c.bf16 %v18_v12, %v16_v11  ;;  %v22_v15 = vld [vmem:[%s404_s0 + $0x38] sm:$0xff]  ;;  %v291_v17 = vld [vmem:[%s403_s1 + $0x28] sm:$0xff]   ;;  %v293_v19 = vld [vmem:[%s403_s1 + $0x30] sm:$0xff]  }
   0x7   :  { %239 = vmatpush3.bf16.msra.mxu0 %v283_v3  ;;  %273 = vmatpush3.bf16.msra.mxu1 %v283_v3  ;;  %v26_v16 = vpack.c.bf16 %v22_v15, %v20_v13  ;;  %v294_v20 = vld [vmem:[%s403_s1 + $0x78] sm:$0xff]   ;;  %v15_v22 = vld [vmem:[%s404_s0] sm:$0xff]  ;;  %v17_v23 = vld [vmem:[%s404_s0 + $0x10] sm:$0xff] }
   0x8   :  { %240 = vmatprep.subr.bf16.mxu0 %v284_v4  ;;  %266 = vmatprep.subr.bf16.mxu1 %v284_v4  ;;  %v295_v21 = vld [vmem:[%s403_s1 + $0x38] sm:$0xff]   ;;  %v19_v24 = vld [vmem:[%s404_s0 + $0x20] sm:$0xff]  ;;  %v21_v25 = vld [vmem:[%s404_s0 + $0x30] sm:$0xff]  ;;  %v23_v26 = vpack.c.bf16 %v17_v23, %v15_v22 }
   0x9   :  { %194 = vmatprep.mubr.bf16.mxu0 %v24_v14  ;;  %202 = vmatprep.mubr.bf16.mxu1 %v26_v16  ;;  %v25_v27 = vpack.c.bf16 %v21_v25, %v19_v24  ;;  %v219_v30 = vld [vmem:[%s405_s2] ss:$0 sm:$0xff] }
   0xb   :  { %241 = vmatpush3.bf16.msra.mxu0 %v285_v5  ;;  %274 = vmatpush3.bf16.msra.mxu1 %v285_v5 }
   0xc   :  { %242 = vmatprep.subr.bf16.mxu0 %v286_v6  ;;  %267 = vmatprep.subr.bf16.mxu1 %v286_v6 }
   0xf   :  { %243 = vmatpush3.bf16.msra.mxu0 %v287_v7  ;;  %275 = vmatpush3.bf16.msra.mxu1 %v287_v7 }
  0x10   :  { %244 = vmatprep.subr.bf16.mxu0 %v288_v8  ;;  %268 = vmatprep.subr.bf16.mxu1 %v288_v8 }
  0x13   :  { %245 = vmatpush3.bf16.msra.mxu0 %v289_v9  ;;  %276 = vmatpush3.bf16.msra.mxu1 %v289_v9 }
  0x14   :  { %246 = vmatprep.subr.bf16.mxu0 %v290_v10  ;;  %269 = vmatprep.subr.bf16.mxu1 %v290_v10 }
  0x17   :  { %247 = vmatpush3.bf16.msra.mxu0 %v291_v17  ;;  %277 = vmatpush3.bf16.msra.mxu1 %v291_v17 }
  0x18   :  { %248 = vmatprep.subr.bf16.mxu0 %v292_v18  ;;  %270 = vmatprep.subr.bf16.mxu1 %v292_v18 }
  0x1b   :  { %249 = vmatpush3.bf16.msra.mxu0 %v293_v19  ;;  %278 = vmatpush3.bf16.msra.mxu1 %v293_v19 }
  0x1c   :  { %250 = vmatprep.subr.bf16.mxu0 %v294_v20  ;;  %271 = vmatprep.subr.bf16.mxu1 %v294_v20 }
  0x1f   :  { %251 = vmatpush3.bf16.msra.mxu0 %v295_v21  ;;  %279 = vmatpush3.bf16.msra.mxu1 %v295_v21 }
  0x22   :  { %195 = vmatmul.mubr.bf16.vlgmr.msra.gmra.mrb[0].mxu0 %v23_v26  ;;  %203 = vmatmul.mubr.bf16.vlgmr.msra.gmra.mrb[0].mxu1 %v25_v27 }
  0xf5   :  { %v252_v28 = vpop.f32.mrb[0].mxu0  ;;  %v258_v29 = vpop.f32.mrb[0].mxu1 }
  0xf6   :  { %v253_v31 = vpop.f32.mrb[1].mxu0  ;;  %v259_v32 = vpop.f32.mrb[1].mxu1 }
  0xf7   :  { %v254_v33 = vadd.f32 %v253_v31, %v252_v28  ;;  %v260_v34 = vadd.f32 %v259_v32, %v258_v29  ;;  %v255_v35 = vpop.f32.mrb[2].mxu0  ;;  %v261_v36 = vpop.f32.mrb[2].mxu1 }
  0xf8   :  { %v256_v37 = vpop.f32.mrb[3].mxu0  ;;  %v262_v38 = vpop.f32.mrb[3].mxu1 }
  0xf9   :  { %v197_v39 = vadd.f32 %v254_v33, %v219_v30  ;;  %v205_v40 = vadd.f32 %v260_v34, %v219_v30  ;;  %v257_v41 = vadd.f32 %v256_v37, %v255_v35  ;;  %v263_v42 = vadd.f32 %v262_v38, %v261_v36 }
  0xfb   :  { %211 = vst [vmem:[%s406_s3] sm:$0xff] %v197_v39  ;;  %213 = vst [vmem:[%s406_s3 + $0x10] sm:$0xff] %v205_v40  ;;  %v200_v43 = vadd.f32 %v257_v41, %v219_v30  ;;  %v208_v44 = vadd.f32 %v263_v42, %v219_v30 }
  0xfd   :  { %212 = vst [vmem:[%s406_s3 + $0x8] sm:$0xff] %v200_v43  ;;  %214 = vst [vmem:[%s406_s3 + $0x18] sm:$0xff] %v208_v44 }

// kernel: decoder_forward.36
= control target key start
LH: loop header
LB: loop body
LE: loop exit
PB: predicated region body
PF: predicated region fallthrough
CT: control target
= control target key end

     0   :  { %v192_v0 = vmov 0.0   ;;  %vm193_vm0 = vmmov 0   ;;  %s247_s1 = inlined_call_operand.vmem [shape: bf16[128,128], index: 1, kind: input, shape index: {}]   ;;  %s248_s0 = inlined_call_operand.vmem [shape: f32[8,128], index: 0, kind: input, shape index: {}]   ;;  %s249_s2 = inlined_call_operand.vmem [shape: f32[1,128], index: 2, kind: input, shape index: {}]   ;;  %s250_s3 = inlined_call_operand.vmem [shape: f32[8,128], index: 3, kind: output, shape index: {}]  }
   0x1   :  { %160 = vmatprep.subr.bf16.mxu0 %v192_v0  ;;  %v182_v1 = vld [vmem:[%s247_s1] sm:$0xff]   ;;  %176 = vmatprep.mubr.msk.bf16.mxu0 %vm193_vm0, %v192_v0  ;;  %v183_v2 = vld [vmem:[%s247_s1 + $0x8] sm:$0xff]   ;;  %v184_v3 = vld [vmem:[%s247_s1 + $0x10] sm:$0xff]  }
   0x2   :  { %161 = vmatpush3.bf16.msra.mxu0 %v182_v1  ;;  %v185_v4 = vld [vmem:[%s247_s1 + $0x18] sm:$0xff]   ;;  %v186_v5 = vld [vmem:[%s247_s1 + $0x20] sm:$0xff]   ;;  %v187_v6 = vld [vmem:[%s247_s1 + $0x28] sm:$0xff]  }
   0x3   :  { %162 = vmatprep.subr.bf16.mxu0 %v192_v0  ;;  %v188_v7 = vld [vmem:[%s247_s1 + $0x30] sm:$0xff]   ;;  %v189_v8 = vld [vmem:[%s247_s1 + $0x38] sm:$0xff]   ;;  %v15_v9 = vld [vmem:[%s248_s0] sm:$0xff] }
   0x4   :  { %v16_v10 = vpack.c.bf16 %v15_v9, %v15_v9  ;;  %v142_v11 = vld [vmem:[%s249_s2] ss:$0 sm:$0xff] }
   0x6   :  { %163 = vmatpush3.bf16.msra.mxu0 %v183_v2 }
   0x7   :  { %164 = vmatprep.subr.bf16.mxu0 %v192_v0 }
   0xa   :  { %165 = vmatpush3.bf16.msra.mxu0 %v184_v3 }
   0xb   :  { %166 = vmatprep.subr.bf16.mxu0 %v192_v0 }
   0xe   :  { %167 = vmatpush3.bf16.msra.mxu0 %v185_v4 }
   0xf   :  { %168 = vmatprep.subr.bf16.mxu0 %v192_v0 }
  0x12   :  { %169 = vmatpush3.bf16.msra.mxu0 %v186_v5 }
  0x13   :  { %170 = vmatprep.subr.bf16.mxu0 %v192_v0 }
  0x16   :  { %171 = vmatpush3.bf16.msra.mxu0 %v187_v6 }
  0x17   :  { %172 = vmatprep.subr.bf16.mxu0 %v192_v0 }
  0x1a   :  { %173 = vmatpush3.bf16.msra.mxu0 %v188_v7 }
  0x1b   :  { %174 = vmatprep.subr.bf16.mxu0 %v192_v0 }
  0x1e   :  { %175 = vmatpush3.bf16.msra.mxu0 %v189_v8 }
  0x21   :  { %177 = vmatmul.mubr.bf16.vlgmr.msra.gmra.mrb[0].mxu0 %v16_v10 }
  0xf4   :  { %v122_v12 = vpop.f32.mrb[0].mxu0 }
  0xf5   :  { %v123_v13 = vadd.f32 %v142_v11, %v122_v12  ;;  %v178_v14 = vpop.f32.mrb[1].mxu0 }
  0xf6   :  { %v125_v15 = vpop.f32.mrb[2].mxu0 }
  0xf7   :  { %v129_v16 = vmul.f32 0.044715, %v123_v13  ;;  %v179_v17 = vpop.f32.mrb[3].mxu0  ;;  %v128_v23 = vmul.f32 0.5, %v123_v13 }
  0xf9   :  { %v130_v18 = vmul.f32 %v129_v16, %v123_v13 }
  0xfb   :  { %v131_v19 = vmul.f32 %v130_v18, %v123_v13 }
  0xfd   :  { %v132_v20 = vadd.f32 %v131_v19, %v123_v13 }
  0xff   :  { %v133_v21 = vmul.f32 0.7978846, %v132_v20 }
 0x101   :  { %190 = vtanh.f32 %v133_v21 }
 0x10b   :  { %v191_v22 = vpop.eup %190 }
 0x10c   :  { %v135_v24 = vadd.f32 1.0, %v191_v22 }
 0x10e   :  { %v136_v25 = vmul.f32 %v135_v24, %v128_v23 }
 0x110   :  { %137 = vst [vmem:[%s250_s3] sm:$0xff] %v136_v25 }

// kernel: decoder_forward.37
= control target key start
LH: loop header
LB: loop body
LE: loop exit
PB: predicated region body
PF: predicated region fallthrough
CT: control target
= control target key end

     0   :  { %v191_v0 = vmov 0.0   ;;  %vm192_vm0 = vmmov 0   ;;  %s246_s1 = inlined_call_operand.vmem [shape: bf16[128,128], index: 1, kind: input, shape index: {}]   ;;  %s247_s0 = inlined_call_operand.vmem [shape: f32[8,128], index: 0, kind: input, shape index: {}]   ;;  %s248_s2 = inlined_call_operand.vmem [shape: f32[1,128], index: 2, kind: input, shape index: {}]   ;;  %s249_s3 = inlined_call_operand.vmem [shape: f32[8,128], index: 3, kind: output, shape index: {}]  }
   0x1   :  { %157 = vmatprep.subr.bf16.mxu0 %v191_v0  ;;  %v179_v1 = vld [vmem:[%s246_s1] sm:$0xff]   ;;  %173 = vmatprep.mubr.msk.bf16.mxu0 %vm192_vm0, %v191_v0  ;;  %v180_v2 = vld [vmem:[%s246_s1 + $0x8] sm:$0xff]   ;;  %v181_v3 = vld [vmem:[%s246_s1 + $0x10] sm:$0xff]  }
   0x2   :  { %158 = vmatpush3.bf16.msra.mxu0 %v179_v1  ;;  %v182_v4 = vld [vmem:[%s246_s1 + $0x18] sm:$0xff]   ;;  %v183_v5 = vld [vmem:[%s246_s1 + $0x20] sm:$0xff]   ;;  %v184_v6 = vld [vmem:[%s246_s1 + $0x28] sm:$0xff]  }
   0x3   :  { %159 = vmatprep.subr.bf16.mxu0 %v191_v0  ;;  %v185_v7 = vld [vmem:[%s246_s1 + $0x30] sm:$0xff]   ;;  %v186_v8 = vld [vmem:[%s246_s1 + $0x38] sm:$0xff]   ;;  %v15_v9 = vld [vmem:[%s247_s0] sm:$0xff] }
   0x4   :  { %v16_v10 = vpack.c.bf16 %v15_v9, %v15_v9  ;;  %v139_v11 = vld [vmem:[%s248_s2] ss:$0 sm:$0xff] }
   0x6   :  { %160 = vmatpush3.bf16.msra.mxu0 %v180_v2 }
   0x7   :  { %161 = vmatprep.subr.bf16.mxu0 %v191_v0 }
   0xa   :  { %162 = vmatpush3.bf16.msra.mxu0 %v181_v3 }
   0xb   :  { %163 = vmatprep.subr.bf16.mxu0 %v191_v0 }
   0xe   :  { %164 = vmatpush3.bf16.msra.mxu0 %v182_v4 }
   0xf   :  { %165 = vmatprep.subr.bf16.mxu0 %v191_v0 }
  0x12   :  { %166 = vmatpush3.bf16.msra.mxu0 %v183_v5 }
  0x13   :  { %167 = vmatprep.subr.bf16.mxu0 %v191_v0 }
  0x16   :  { %168 = vmatpush3.bf16.msra.mxu0 %v184_v6 }
  0x17   :  { %169 = vmatprep.subr.bf16.mxu0 %v191_v0 }
  0x1a   :  { %170 = vmatpush3.bf16.msra.mxu0 %v185_v7 }
  0x1b   :  { %171 = vmatprep.subr.bf16.mxu0 %v191_v0 }
  0x1e   :  { %172 = vmatpush3.bf16.msra.mxu0 %v186_v8 }
  0x21   :  { %174 = vmatmul.mubr.bf16.vlgmr.msra.gmra.mrb[0].mxu0 %v16_v10 }
  0xf4   :  { %v122_v12 = vpop.f32.mrb[0].mxu0 }
  0xf5   :  { %v123_v13 = vadd.f32 %v139_v11, %v122_v12  ;;  %v175_v14 = vpop.f32.mrb[1].mxu0 }
  0xf6   :  { %v125_v15 = vpop.f32.mrb[2].mxu0 }
  0xf7   :  { %v128_v16 = vsub.f32 0.0, %v123_v13  ;;  %v176_v17 = vpop.f32.mrb[3].mxu0 }
  0xf9   :  { %v129_v18 = vmul.f32 1.442695, %v128_v16 }
  0xfb   :  { %187 = vpow2.f32 %v129_v18 }
 0x105   :  { %v188_v19 = vpop.eup %187 }
 0x106   :  { %v131_v20 = vadd.f32 1.0, %v188_v19 }
 0x108   :  { %189 = vrcp.f32 %v131_v20 }
 0x112   :  { %v190_v21 = vpop.eup %189 }
 0x113   :  { %134 = vst [vmem:[%s249_s3] sm:$0xff] %v190_v21 }

// kernel: decoder_forward.54
= control target key start
LH: loop header
LB: loop body
LE: loop exit
PB: predicated region body
PF: predicated region fallthrough
CT: control target
= control target key end

     0   :  { %s311_s1 = inlined_call_operand.vmem [shape: bf16[128,128], index: 1, kind: input, shape index: {}]   ;;  %s312_s0 = inlined_call_operand.vmem [shape: f32[32,128], index: 0, kind: input, shape index: {}]   ;;  %s313_s2 = inlined_call_operand.vmem [shape: f32[1,128], index: 2, kind: input, shape index: {}]   ;;  %s314_s3 = inlined_call_operand.vmem [shape: f32[32,128], index: 3, kind: output, shape index: {}]  }
   0x1   :  { %v224_v0 = vld [vmem:[%s311_s1] sm:$0xff]   ;;  %v225_v1 = vld [vmem:[%s311_s1 + $0x8] sm:$0xff]   ;;  %v226_v2 = vld [vmem:[%s311_s1 + $0x10] sm:$0xff]  }
   0x2   :  { %204 = vmatprep.subr.bf16.mxu0 %v224_v0  ;;  %v227_v3 = vld [vmem:[%s311_s1 + $0x18] sm:$0xff]   ;;  %v15_v4 = vld [vmem:[%s312_s0] sm:$0xff]  ;;  %v16_v5 = vld [vmem:[%s312_s0 + $0x8] sm:$0xff] }
   0x3   :  { %205 = vmatpush3.bf16.msra.mxu0 %v224_v0  ;;  %v19_v6 = vpack.c.bf16 %v16_v5, %v15_v4  ;;  %v228_v7 = vld [vmem:[%s311_s1 + $0x20] sm:$0xff]   ;;  %v229_v8 = vld [vmem:[%s311_s1 + $0x28] sm:$0xff]   ;;  %v230_v9 = vld [vmem:[%s311_s1 + $0x30] sm:$0xff]  }
   0x4   :  { %206 = vmatprep.subr.bf16.mxu0 %v225_v1  ;;  %v231_v10 = vld [vmem:[%s311_s1 + $0x38] sm:$0xff]   ;;  %v17_v11 = vld [vmem:[%s312_s0 + $0x10] sm:$0xff]  ;;  %v185_v14 = vld [vmem:[%s313_s2] ss:$0 sm:$0xff] }
   0x5   :  { %220 = vmatprep.mubr.bf16.mxu0 %v19_v6  ;;  %v18_v12 = vld [vmem:[%s312_s0 + $0x18] sm:$0xff] }
   0x6   :  { %v20_v13 = vpack.c.bf16 %v18_v12, %v17_v11 }
   0x7   :  { %207 = vmatpush3.bf16.msra.mxu0 %v225_v1 }
   0x8   :  { %208 = vmatprep.subr.bf16.mxu0 %v226_v2 }
   0xb   :  { %209 = vmatpush3.bf16.msra.mxu0 %v226_v2 }
   0xc   :  { %210 = vmatprep.subr.bf16.mxu0 %v227_v3 }
   0xf   :  { %211 = vmatpush3.bf16.msra.mxu0 %v227_v3 }
  0x10   :  { %212 = vmatprep.subr.bf16.mxu0 %v228_v7 }
  0x13   :  { %213 = vmatpush3.bf16.msra.mxu0 %v228_v7 }
  0x14   :  { %214 = vmatprep.subr.bf16.mxu0 %v229_v8 }
  0x17   :  { %215 = vmatpush3.bf16.msra.mxu0 %v229_v8 }
  0x18   :  { %216 = vmatprep.subr.bf16.mxu0 %v230_v9 }
  0x1b   :  { %217 = vmatpush3.bf16.msra.mxu0 %v230_v9 }
  0x1c   :  { %218 = vmatprep.subr.bf16.mxu0 %v231_v10 }
  0x1f   :  { %219 = vmatpush3.bf16.msra.mxu0 %v231_v10 }
  0x22   :  { %221 = vmatmul.mubr.bf16.vlgmr.msra.gmra.mrb[0].mxu0 %v20_v13 }
  0xf5   :  { %v222_v15 = vpop.f32.mrb[0].mxu0 }
  0xf6   :  { %v135_v16 = vadd.f32 %v222_v15, %v185_v14  ;;  %v126_v17 = vpop.f32.mrb[1].mxu0 }
  0xf7   :  { %v127_v18 = vadd.f32 %v185_v14, %v126_v17  ;;  %v223_v19 = vpop.f32.mrb[2].mxu0 }
  0xf8   :  { %v147_v20 = vmul.f32 0.044715, %v135_v16  ;;  %v138_v21 = vadd.f32 %v223_v19, %v185_v14  ;;  %v129_v22 = vpop.f32.mrb[3].mxu0  ;;  %v143_v45 = vmul.f32 0.5, %v135_v16 }
  0xf9   :  { %v145_v23 = vmul.f32 0.044715, %v127_v18  ;;  %v130_v24 = vadd.f32 %v185_v14, %v129_v22  ;;  %v141_v48 = vmul.f32 0.5, %v127_v18 }
  0xfa   :  { %v151_v25 = vmul.f32 %v147_v20, %v135_v16  ;;  %v148_v26 = vmul.f32 0.044715, %v138_v21  ;;  %v144_v52 = vmul.f32 0.5, %v138_v21 }
  0xfb   :  { %v149_v27 = vmul.f32 %v145_v23, %v127_v18  ;;  %v146_v28 = vmul.f32 0.044715, %v130_v24  ;;  %v142_v55 = vmul.f32 0.5, %v130_v24 }
  0xfc   :  { %v155_v29 = vmul.f32 %v151_v25, %v135_v16  ;;  %v152_v30 = vmul.f32 %v148_v26, %v138_v21 }
  0xfd   :  { %v153_v31 = vmul.f32 %v149_v27, %v127_v18  ;;  %v150_v32 = vmul.f32 %v146_v28, %v130_v24 }
  0xfe   :  { %v159_v33 = vadd.f32 %v155_v29, %v135_v16  ;;  %v156_v34 = vmul.f32 %v152_v30, %v138_v21 }
  0xff   :  { %v157_v35 = vadd.f32 %v153_v31, %v127_v18  ;;  %v154_v36 = vmul.f32 %v150_v32, %v130_v24 }
 0x100   :  { %v163_v37 = vmul.f32 0.7978846, %v159_v33  ;;  %v160_v38 = vadd.f32 %v156_v34, %v138_v21 }
 0x101   :  { %v161_v39 = vmul.f32 0.7978846, %v157_v35  ;;  %v158_v40 = vadd.f32 %v154_v36, %v130_v24 }
 0x102   :  { %232 = vtanh.f32 %v163_v37  ;;  %v164_v41 = vmul.f32 0.7978846, %v160_v38 }
 0x103   :  { %234 = vtanh.f32 %v161_v39  ;;  %v162_v42 = vmul.f32 0.7978846, %v158_v40 }
 0x104   :  { %236 = vtanh.f32 %v164_v41 }
 0x105   :  { %238 = vtanh.f32 %v162_v42 }
 0x10c   :  { %v233_v43 = vpop.eup %232 }
 0x10d   :  { %v235_v44 = vpop.eup %234  ;;  %v171_v46 = vadd.f32 1.0, %v233_v43 }
 0x10e   :  { %v237_v47 = vpop.eup %236  ;;  %v169_v49 = vadd.f32 1.0, %v235_v44 }
 0x10f   :  { %v239_v50 = vpop.eup %238  ;;  %v175_v51 = vmul.f32 %v171_v46, %v143_v45  ;;  %v172_v53 = vadd.f32 1.0, %v237_v47 }
 0x110   :  { %v173_v54 = vmul.f32 %v169_v49, %v141_v48  ;;  %v170_v56 = vadd.f32 1.0, %v239_v50 }
 0x111   :  { %179 = vst [vmem:[%s314_s3 + $0x10] sm:$0xff] %v175_v51  ;;  %v176_v57 = vmul.f32 %v172_v53, %v144_v52 }
 0x112   :  { %177 = vst [vmem:[%s314_s3] sm:$0xff] %v173_v54  ;;  %v174_v58 = vmul.f32 %v170_v56, %v142_v55 }
 0x113   :  { %180 = vst [vmem:[%s314_s3 + $0x18] sm:$0xff] %v176_v57 }
 0x114   :  { %178 = vst [vmem:[%s314_s3 + $0x8] sm:$0xff] %v174_v58 }

// kernel: decoder_forward.55
= control target key start
LH: loop header
LB: loop body
LE: loop exit
PB: predicated region body
PF: predicated region fallthrough
CT: control target
= control target key end

     0   :  { %v213_v1 = vmov 0   ;;  %v35_v19 = vlaneseq  ;;  %s294_s1 = inlined_call_operand.vmem [shape: bf16[128,256], index: 1, kind: input, shape index: {}]   ;;  %s295_s0 = inlined_call_operand.vmem [shape: f32[8,128], index: 0, kind: input, shape index: {}]   ;;  %s296_s2 = inlined_call_operand.vmem [shape: f32[1,256], index: 2, kind: input, shape index: {}]   ;;  %s297_s3 = inlined_call_operand.vmem [shape: f32[8,256], index: 3, kind: output, shape index: {}]  }
   0x1   :  { %v189_v0 = vld [vmem:[%s294_s1 + $0x4] ss:$8 sps:$4 sm:$0xff]   ;;  %157 = vmatprep.mubr.bf16.mxu0 %v213_v1  ;;  %v191_v2 = vld [vmem:[%s294_s1] ss:$8 sps:$4 sm:$0xff]   ;;  %v192_v3 = vld [vmem:[%s294_s1 + $0x14] ss:$8 sps:$4 sm:$0xff]  }
   0x2   :  { %125 = vmatprep.subr.bf16.mxu0 %v189_v0  ;;  %v194_v4 = vld [vmem:[%s294_s1 + $0x10] ss:$8 sps:$4 sm:$0xff]   ;;  %v195_v5 = vld [vmem:[%s294_s1 + $0x24] ss:$8 sps:$4 sm:$0xff]   ;;  %v197_v6 = vld [vmem:[%s294_s1 + $0x20] ss:$8 sps:$4 sm:$0xff]  }
   0x3   :  { %126 = vmatpush1.bf16.msra.mxu0 %v191_v2  ;;  %v198_v7 = vld [vmem:[%s294_s1 + $0x34] ss:$8 sps:$4 sm:$0xff]   ;;  %v200_v8 = vld [vmem:[%s294_s1 + $0x30] ss:$8 sps:$4 sm:$0xff]   ;;  %v201_v9 = vld [vmem:[%s294_s1 + $0x44] ss:$8 sps:$4 sm:$0xff]  }
   0x4   :  { %127 = vmatprep.subr.bf16.mxu0 %v192_v3  ;;  %v203_v10 = vld [vmem:[%s294_s1 + $0x40] ss:$8 sps:$4 sm:$0xff]   ;;  %v204_v11 = vld [vmem:[%s294_s1 + $0x54] ss:$8 sps:$4 sm:$0xff]   ;;  %v206_v12 = vld [vmem:[%s294_s1 + $0x50] ss:$8 sps:$4 sm:$0xff]  }
   0x5   :  { %v207_v13 = vld [vmem:[%s294_s1 + $0x64] ss:$8 sps:$4 sm:$0xff]   ;;  %v209_v14 = vld [vmem:[%s294_s1 + $0x60] ss:$8 sps:$4 sm:$0xff]   ;;  %v210_v15 = vld [vmem:[%s294_s1 + $0x74] ss:$8 sps:$4 sm:$0xff]  }
   0x6   :  { %v212_v16 = vld [vmem:[%s294_s1 + $0x70] ss:$8 sps:$4 sm:$0xff]   ;;  %v15_v17 = vld [vmem:[%s295_s0] sm:$0xff]  ;;  %v36_v20 = vshrl.u32 %v35_v19, 7 }
   0x7   :  { %128 = vmatpush1.bf16.msra.mxu0 %v194_v4  ;;  %v16_v18 = vpack.c.bf16 %v15_v17, %v15_v17  ;;  %v33_v22 = vld [vmem:[%s296_s2] sm:$0x3] }
   0x8   :  { %129 = vmatprep.subr.bf16.mxu0 %v195_v5  ;;  %v37_v21 = vsub.s32 0, %v36_v20  ;;  %v41_v23 = vsub.s32 1, %v36_v20 }
   0xa   :  { %v38_v24 = vrot.slane %v33_v22, %v37_v21  ;;  %v42_v25 = vrot.slane %v33_v22, %v41_v23 }
   0xb   :  { %130 = vmatpush1.bf16.msra.mxu0 %v197_v6 }
   0xc   :  { %131 = vmatprep.subr.bf16.mxu0 %v198_v7 }
   0xf   :  { %132 = vmatpush1.bf16.msra.mxu0 %v200_v8 }
  0x10   :  { %133 = vmatprep.subr.bf16.mxu0 %v201_v9 }
  0x13   :  { %134 = vmatpush1.bf16.msra.mxu0 %v203_v10 }
  0x14   :  { %135 = vmatprep.subr.bf16.mxu0 %v204_v11 }
  0x17   :  { %136 = vmatpush1.bf16.msra.mxu0 %v206_v12 }
  0x18   :  { %137 = vmatprep.subr.bf16.mxu0 %v207_v13 }
  0x1b   :  { %138 = vmatpush1.bf16.msra.mxu0 %v209_v14 }
  0x1c   :  { %139 = vmatprep.subr.bf16.mxu0 %v210_v15 }
  0x1f   :  { %140 = vmatpush1.bf16.msra.mxu0 %v212_v16 }
  0x22   :  { %158 = vmatmul.mubr.bf16.vlgmr.msra.gmra.mrb[0].mxu0 %v16_v18 }
  0xf5   :  { %v159_v26 = vpop.f32.mrb[0].mxu0 }
  0xf6   :  { %v160_v27 = vadd.f32 %v159_v26, %v38_v24  ;;  %v161_v28 = vpop.f32.mrb[1].mxu0 }
  0xf7   :  { %v162_v29 = vadd.f32 %v161_v28, %v42_v25  ;;  %v163_v30 = vpop.f32.mrb[2].mxu0 }
  0xf8   :  { %166 = vst [vmem:[%s297_s3] sm:$0xff] %v160_v27  ;;  %v164_v31 = vpop.f32.mrb[3].mxu0 }
  0xf9   :  { %167 = vst [vmem:[%s297_s3 + $0x8] sm:$0xff] %v162_v29 }

</bundles_post_ra>
